<compile_context>
chip_gen: v7x
topology: tpu7x:2x2x1
jax: 0.10.0
libtpu: 0.0.40
codegen_flags: <defaults>
</compile_context>

<pallas_src>
import jax
import jax.numpy as jnp
from jax.experimental import pallas as pl
from jax.experimental.pallas import tpu as pltpu


def _round_up(n, m):
    return ((n + m - 1) // m) * m


def _autoenc_kernel(x_ref,
                    w1, b1, w2, b2, w3, b3, w4, b4,
                    uw4, ub4, uw3, ub3, uw2, ub2, uw1, ub1,
                    cw_ref, cb_ref,
                    out_ref):
    """One batch tile.

    x_ref / out_ref: (3, TB, C) VMEM blocks, r-major (leading dim = row within a
    sample).  Linear weights are (in, out) VMEM refs (bf16), biases (1, out) f32.
    cw_ref (3, 15) / cb_ref (1, 3) are f32 SMEM refs (Conv1d(15, 3, 1) params).
    """
    tb = x_ref.shape[1]
    C = x_ref.shape[2]

    def lin(v, w_r, b_r):
        # Low-precision operands on the MXU, f32 accumulation, f32 bias add.
        return jnp.dot(v.astype(w_r.dtype), w_r[...],
                       preferred_element_type=jnp.float32) + b_r[...]

    def relu(v):
        return jnp.maximum(v, 0.0)

    enc_layers = ((w1, b1), (w2, b2), (w3, b3), (w4, b4))
    dec_layers = ((uw4, ub4), (uw3, ub3), (uw2, ub2), (uw1, ub1))

    # streams[r][j] == row (3*j + r) of the module's y0, for every sample in the
    # tile: a (TB, C) f32 slab.  j = 0 is the full bottleneck path, j = 4 the
    # raw-input skip.  No sublane-axis concatenates anywhere.
    streams = []
    for r in range(3):
        xr = x_ref[r]                                   # (TB, C) f32, dense slab
        enc = [xr]
        for w, b in enc_layers:
            enc.append(relu(lin(enc[-1], w, b)))        # x0, x1, x2, x3
        row_streams = []
        for j in range(4):
            v = enc[4 - j]                              # x3, x2, x1, x0
            for w, b in dec_layers[j:]:
                v = relu(lin(v, w, b))
            row_streams.append(v)                       # (TB, C)
        row_streams.append(relu(xr))                    # raw-x skip needs its relu
        streams.append(row_streams)

    # Conv1d(15, 3, kernel_size=1): out[c] = sum_{j,r} cw[c, 3j+r] * y0[3j+r] + cb[c].
    # Applied as SMEM-scalar weighted sums of the (TB, C) slabs.
    for c in range(3):
        acc = jnp.zeros((tb, C), jnp.float32)
        for j in range(5):
            for r in range(3):
                acc = acc + cw_ref[c, 3 * j + r] * streams[r][j]
        out_ref[c] = acc + cb_ref[0, c]


def _pick_batch_tile(batch, c, max_width, vmem_budget_bytes=24 * 1024 * 1024):
    """Largest multiple-of-8 batch tile whose working set fits a conservative VMEM
    budget (kept below v7x's 32 MiB scoped default / 64 MiB physical; v5e/v6e have
    more headroom)."""
    # Per sample (f32 bytes): 15 resident stream slabs of width C, ~8 temporary
    # activation slabs of width <= max padded hidden width, plus the double-buffered
    # (3, TB, C) input/output tiles.
    bytes_per_sample = 4 * (15 * c + 8 * max_width + 4 * 3 * c)
    tile = vmem_budget_bytes // max(bytes_per_sample, 1)
    tile = int(min(tile, 256, max(batch, 8)))
    return max(8, (tile // 8) * 8)


def point_feature_autoencoder(x, params, *, batch_tile=None):
    """Batched forward pass.  x: (B, 3, C) f32; params from prepare_params().
    Returns (B, 3, C) f32."""
    B, rows, C = x.shape
    if rows != 3:
        raise ValueError("each sample must have shape (3, input_channels)")
    if params["w1"].shape[0] != C:
        raise ValueError("params were prepared for a different input_channels")

    widths = [params[k].shape[1] for k in ("w1", "w2", "w3", "w4", "uw1")]
    if batch_tile is None:
        batch_tile = _pick_batch_tile(B, C, max(widths))
    if batch_tile % 8 != 0:
        raise ValueError("batch_tile must be a multiple of 8")

    # r-major layout: (3, B, C) so every (TB, C) row-slab is sublane/lane dense.
    xr = jnp.transpose(x, (1, 0, 2))
    Bp = _round_up(B, batch_tile)
    if Bp != B:
        xr = jnp.pad(xr, ((0, 0), (0, Bp - B), (0, 0)))
    grid = (Bp // batch_tile,)

    weight_names = ("w1", "b1", "w2", "b2", "w3", "b3", "w4", "b4",
                    "uw4", "ub4", "uw3", "ub3", "uw2", "ub2", "uw1", "ub1")
    weights = [params[n] for n in weight_names]

    def resident(a):
        # Full-array VMEM block, same block index every step -> stays resident.
        return pl.BlockSpec(a.shape, lambda i: (0,) * a.ndim)

    in_specs = (
        [pl.BlockSpec((3, batch_tile, C), lambda i: (0, i, 0))]
        + [resident(w) for w in weights]
        + [pl.BlockSpec(memory_space=pltpu.MemorySpace.SMEM),    # cw (3, 15)
           pl.BlockSpec(memory_space=pltpu.MemorySpace.SMEM)]    # cb (1, 3)
    )
    out_spec = pl.BlockSpec((3, batch_tile, C), lambda i: (0, i, 0))

    out = pl.pallas_call(
        _autoenc_kernel,
        grid=grid,
        in_specs=in_specs,
        out_specs=out_spec,
        out_shape=jax.ShapeDtypeStruct((3, Bp, C), jnp.float32),
        compiler_params=pltpu.CompilerParams(
            dimension_semantics=("parallel",)),   # v7x: shard batch tiles over 2 TCs
    )(xr, *weights, params["cw"], params["cb"])

    return jnp.transpose(out[:, :B, :], (1, 0, 2))


def make_raw_params(key, input_channels, output_channels=40):
    """Synthetic module parameters.  Linear weights stored pre-transposed (in, out),
    biases 1-D; Conv1d(15, 3, 1) weight as (3, 15), bias as (3,)."""
    C = input_channels
    shapes = (
        ("w1", (C, C // 2)), ("b1", (C // 2,)),
        ("w2", (C // 2, C // 4)), ("b2", (C // 4,)),
        ("w3", (C // 4, C // 8)), ("b3", (C // 8,)),
        ("w4", (C // 8, output_channels)), ("b4", (output_channels,)),
        ("uw4", (output_channels, C // 8)), ("ub4", (C // 8,)),
        ("uw3", (C // 8, C // 4)), ("ub3", (C // 4,)),
        ("uw2", (C // 4, C // 2)), ("ub2", (C // 2,)),
        ("uw1", (C // 2, C)), ("ub1", (C,)),
        ("cw", (3, 15)), ("cb", (3,)),
    )
    keys = jax.random.split(key, len(shapes))
    return {name: 0.1 * jax.random.normal(k, shp, dtype=jnp.float32)
            for k, (name, shp) in zip(keys, shapes)}


def prepare_params(raw, compute_dtype=jnp.bfloat16, lane=128):
    """Zero-pad hidden widths up to multiples of the 128-lane vreg width (exact:
    relu(0) == 0 and zero rows/cols contribute nothing) and cast matmul weights to
    the MXU compute dtype.  Biases stay f32; Conv1d params stay f32 (for SMEM)."""
    C = raw["w1"].shape[0]
    h1, h2, h3, o = C // 2, C // 4, C // 8, raw["w4"].shape[1]
    H1, H2, H3, O = (_round_up(d, lane) for d in (h1, h2, h3, o))

    def pad_w(w, nrows, ncols):
        out = jnp.zeros((nrows, ncols), jnp.float32)
        out = out.at[:w.shape[0], :w.shape[1]].set(w)
        return out.astype(compute_dtype)

    def pad_b(b, ncols):
        return jnp.zeros((1, ncols), jnp.float32).at[0, :b.shape[0]].set(b)

    return {
        "w1": pad_w(raw["w1"], C, H1), "b1": pad_b(raw["b1"], H1),
        "w2": pad_w(raw["w2"], H1, H2), "b2": pad_b(raw["b2"], H2),
        "w3": pad_w(raw["w3"], H2, H3), "b3": pad_b(raw["b3"], H3),
        "w4": pad_w(raw["w4"], H3, O), "b4": pad_b(raw["b4"], O),
        "uw4": pad_w(raw["uw4"], O, H3), "ub4": pad_b(raw["ub4"], H3),
        "uw3": pad_w(raw["uw3"], H3, H2), "ub3": pad_b(raw["ub3"], H2),
        "uw2": pad_w(raw["uw2"], H2, H1), "ub2": pad_b(raw["ub2"], H1),
        "uw1": pad_w(raw["uw1"], H1, C), "ub1": pad_b(raw["ub1"], C),
        "cw": raw["cw"].astype(jnp.float32),
        "cb": raw["cb"].reshape(1, 3).astype(jnp.float32),
    }


def reference_forward(x, raw, compute_dtype=jnp.bfloat16):
    """Pure-JAX reference with the module's exact structure (concats and all),
    using the same matmul precision the kernel uses (low-precision operands,
    f32 accumulation).  x: (B, 3, C) -> (B, 3, C)."""
    def lin(v, w, b):
        return jnp.dot(v.astype(compute_dtype), w.astype(compute_dtype),
                       preferred_element_type=jnp.float32) + b

    relu = lambda v: jnp.maximum(v, 0.0)

    def one(xs):                                   # (3, C)
        x0 = relu(lin(xs, raw["w1"], raw["b1"]))
        x1 = relu(lin(x0, raw["w2"], raw["b2"]))
        x2 = relu(lin(x1, raw["w3"], raw["b3"]))
        x3 = relu(lin(x2, raw["w4"], raw["b4"]))
        y3 = relu(jnp.concatenate((lin(x3, raw["uw4"], raw["ub4"]), x2), axis=0))
        y2 = relu(jnp.concatenate((lin(y3, raw["uw3"], raw["ub3"]), x1), axis=0))
        y1 = relu(jnp.concatenate((lin(y2, raw["uw2"], raw["ub2"]), x0), axis=0))
        y0 = relu(jnp.concatenate((lin(y1, raw["uw1"], raw["ub1"]), xs), axis=0))
        return raw["cw"] @ y0 + raw["cb"][:, None]

    return jax.vmap(one)(x)


if __name__ == "__main__":
    INPUT_CHANNELS = 128     # divisible by 8 (module requirement); a multiple of 128
                             # keeps the output stores lane-dense
    OUTPUT_CHANNELS = 40
    BATCH = 16
    BATCH_TILE = 8           # small tile -> multi-step grid, exercises the pipeline

    key = jax.random.PRNGKey(0)
    kx, kp = jax.random.split(key)
    x = jax.random.normal(kx, (BATCH, 3, INPUT_CHANNELS), dtype=jnp.float32)
    raw = make_raw_params(kp, INPUT_CHANNELS, OUTPUT_CHANNELS)
    params = prepare_params(raw, compute_dtype=jnp.bfloat16)

    out = point_feature_autoencoder(x, params, batch_tile=BATCH_TILE)
    out = jax.block_until_ready(out)

    ref = reference_forward(x, raw, compute_dtype=jnp.bfloat16)
    assert out.shape == (BATCH, 3, INPUT_CHANNELS)
    assert jnp.allclose(out, ref, rtol=1e-3, atol=1e-3), "mismatch vs reference"

    print("KERNEL_OK")
</pallas_src>

<mosaic_0001>
module attributes {stable_mosaic.version = 11 : i64} {
  func.func @_autoenc_kernel(%arg0: i32, %arg1: memref<3x8x128xf32, #tpu.memory_space<vmem>>, %arg2: memref<128x128xbf16, #tpu.memory_space<vmem>>, %arg3: memref<1x128xf32, #tpu.memory_space<vmem>>, %arg4: memref<128x128xbf16, #tpu.memory_space<vmem>>, %arg5: memref<1x128xf32, #tpu.memory_space<vmem>>, %arg6: memref<128x128xbf16, #tpu.memory_space<vmem>>, %arg7: memref<1x128xf32, #tpu.memory_space<vmem>>, %arg8: memref<128x128xbf16, #tpu.memory_space<vmem>>, %arg9: memref<1x128xf32, #tpu.memory_space<vmem>>, %arg10: memref<128x128xbf16, #tpu.memory_space<vmem>>, %arg11: memref<1x128xf32, #tpu.memory_space<vmem>>, %arg12: memref<128x128xbf16, #tpu.memory_space<vmem>>, %arg13: memref<1x128xf32, #tpu.memory_space<vmem>>, %arg14: memref<128x128xbf16, #tpu.memory_space<vmem>>, %arg15: memref<1x128xf32, #tpu.memory_space<vmem>>, %arg16: memref<128x128xbf16, #tpu.memory_space<vmem>>, %arg17: memref<1x128xf32, #tpu.memory_space<vmem>>, %arg18: memref<3x15xf32, #tpu.memory_space<smem>>, %arg19: memref<1x3xf32, #tpu.memory_space<smem>>, %arg20: memref<3x8x128xf32, #tpu.memory_space<vmem>>) attributes {dimension_semantics = [#tpu.dimension_semantics<parallel>], iteration_bounds = array<i64: 2>, scalar_prefetch = 0 : i64, scratch_operands = 0 : i64, tpu.core_type = #tpu.core_type<tc>, window_params = [{transform_indices = @transform_0, window_bounds = array<i64: 3, 8, 128>}, {pipeline_mode = #tpu.pipeline_mode<synchronous>, transform_indices = @transform_1, window_bounds = array<i64: 128, 128>}, {pipeline_mode = #tpu.pipeline_mode<synchronous>, transform_indices = @transform_2, window_bounds = array<i64: 1, 128>}, {pipeline_mode = #tpu.pipeline_mode<synchronous>, transform_indices = @transform_3, window_bounds = array<i64: 128, 128>}, {pipeline_mode = #tpu.pipeline_mode<synchronous>, transform_indices = @transform_4, window_bounds = array<i64: 1, 128>}, {pipeline_mode = #tpu.pipeline_mode<synchronous>, transform_indices = @transform_5, window_bounds = array<i64: 128, 128>}, {pipeline_mode = #tpu.pipeline_mode<synchronous>, transform_indices = @transform_6, window_bounds = array<i64: 1, 128>}, {pipeline_mode = #tpu.pipeline_mode<synchronous>, transform_indices = @transform_7, window_bounds = array<i64: 128, 128>}, {pipeline_mode = #tpu.pipeline_mode<synchronous>, transform_indices = @transform_8, window_bounds = array<i64: 1, 128>}, {pipeline_mode = #tpu.pipeline_mode<synchronous>, transform_indices = @transform_9, window_bounds = array<i64: 128, 128>}, {pipeline_mode = #tpu.pipeline_mode<synchronous>, transform_indices = @transform_10, window_bounds = array<i64: 1, 128>}, {pipeline_mode = #tpu.pipeline_mode<synchronous>, transform_indices = @transform_11, window_bounds = array<i64: 128, 128>}, {pipeline_mode = #tpu.pipeline_mode<synchronous>, transform_indices = @transform_12, window_bounds = array<i64: 1, 128>}, {pipeline_mode = #tpu.pipeline_mode<synchronous>, transform_indices = @transform_13, window_bounds = array<i64: 128, 128>}, {pipeline_mode = #tpu.pipeline_mode<synchronous>, transform_indices = @transform_14, window_bounds = array<i64: 1, 128>}, {pipeline_mode = #tpu.pipeline_mode<synchronous>, transform_indices = @transform_15, window_bounds = array<i64: 128, 128>}, {pipeline_mode = #tpu.pipeline_mode<synchronous>, transform_indices = @transform_16, window_bounds = array<i64: 1, 128>}, {transform_indices = @transform_17, window_bounds = array<i64: 3, 15>}, {transform_indices = @transform_18, window_bounds = array<i64: 1, 3>}, {transform_indices = @transform_19, window_bounds = array<i64: 3, 8, 128>}]} {
    %c0 = arith.constant 0 : index
    %c0_0 = arith.constant 0 : index
    %c0_1 = arith.constant 0 : index
    %0 = vector.load %arg1[%c0, %c0_0, %c0_1] : memref<3x8x128xf32, #tpu.memory_space<vmem>>, vector<1x8x128xf32>
    %1 = vector.shape_cast %0 : vector<1x8x128xf32> to vector<8x128xf32>
    %2 = arith.truncf %1 : vector<8x128xf32> to vector<8x128xbf16>
    %c0_2 = arith.constant 0 : index
    %c0_3 = arith.constant 0 : index
    %3 = vector.load %arg2[%c0_2, %c0_3] : memref<128x128xbf16, #tpu.memory_space<vmem>>, vector<128x128xbf16>
    %cst = arith.constant dense<0.000000e+00> : vector<8x128xf32>
    %4 = tpu.matmul %2, %3, %cst {dimension_numbers = #tpu.dot_dimension_numbers<[1], [0], [0], [1], [0, 0, 1, 1], [], []>} : vector<8x128xbf16>, vector<128x128xbf16>, vector<8x128xf32> -> vector<8x128xf32>
    %c0_4 = arith.constant 0 : index
    %c0_5 = arith.constant 0 : index
    %5 = vector.load %arg3[%c0_4, %c0_5] : memref<1x128xf32, #tpu.memory_space<vmem>>, vector<1x128xf32>
    %6 = vector.broadcast %5 : vector<1x128xf32> to vector<8x128xf32>
    %7 = arith.addf %4, %6 : vector<8x128xf32>
    %cst_6 = arith.constant 0.000000e+00 : f32
    %8 = vector.broadcast %cst_6 : f32 to vector<8x128xf32>
    %9 = arith.maximumf %7, %8 : vector<8x128xf32>
    %10 = arith.truncf %9 : vector<8x128xf32> to vector<8x128xbf16>
    %c0_7 = arith.constant 0 : index
    %c0_8 = arith.constant 0 : index
    %11 = vector.load %arg4[%c0_7, %c0_8] : memref<128x128xbf16, #tpu.memory_space<vmem>>, vector<128x128xbf16>
    %cst_9 = arith.constant dense<0.000000e+00> : vector<8x128xf32>
    %12 = tpu.matmul %10, %11, %cst_9 {dimension_numbers = #tpu.dot_dimension_numbers<[1], [0], [0], [1], [0, 0, 1, 1], [], []>} : vector<8x128xbf16>, vector<128x128xbf16>, vector<8x128xf32> -> vector<8x128xf32>
    %c0_10 = arith.constant 0 : index
    %c0_11 = arith.constant 0 : index
    %13 = vector.load %arg5[%c0_10, %c0_11] : memref<1x128xf32, #tpu.memory_space<vmem>>, vector<1x128xf32>
    %14 = vector.broadcast %13 : vector<1x128xf32> to vector<8x128xf32>
    %15 = arith.addf %12, %14 : vector<8x128xf32>
    %cst_12 = arith.constant 0.000000e+00 : f32
    %16 = vector.broadcast %cst_12 : f32 to vector<8x128xf32>
    %17 = arith.maximumf %15, %16 : vector<8x128xf32>
    %18 = arith.truncf %17 : vector<8x128xf32> to vector<8x128xbf16>
    %c0_13 = arith.constant 0 : index
    %c0_14 = arith.constant 0 : index
    %19 = vector.load %arg6[%c0_13, %c0_14] : memref<128x128xbf16, #tpu.memory_space<vmem>>, vector<128x128xbf16>
    %cst_15 = arith.constant dense<0.000000e+00> : vector<8x128xf32>
    %20 = tpu.matmul %18, %19, %cst_15 {dimension_numbers = #tpu.dot_dimension_numbers<[1], [0], [0], [1], [0, 0, 1, 1], [], []>} : vector<8x128xbf16>, vector<128x128xbf16>, vector<8x128xf32> -> vector<8x128xf32>
    %c0_16 = arith.constant 0 : index
    %c0_17 = arith.constant 0 : index
    %21 = vector.load %arg7[%c0_16, %c0_17] : memref<1x128xf32, #tpu.memory_space<vmem>>, vector<1x128xf32>
    %22 = vector.broadcast %21 : vector<1x128xf32> to vector<8x128xf32>
    %23 = arith.addf %20, %22 : vector<8x128xf32>
    %cst_18 = arith.constant 0.000000e+00 : f32
    %24 = vector.broadcast %cst_18 : f32 to vector<8x128xf32>
    %25 = arith.maximumf %23, %24 : vector<8x128xf32>
    %26 = arith.truncf %25 : vector<8x128xf32> to vector<8x128xbf16>
    %c0_19 = arith.constant 0 : index
    %c0_20 = arith.constant 0 : index
    %27 = vector.load %arg8[%c0_19, %c0_20] : memref<128x128xbf16, #tpu.memory_space<vmem>>, vector<128x128xbf16>
    %cst_21 = arith.constant dense<0.000000e+00> : vector<8x128xf32>
    %28 = tpu.matmul %26, %27, %cst_21 {dimension_numbers = #tpu.dot_dimension_numbers<[1], [0], [0], [1], [0, 0, 1, 1], [], []>} : vector<8x128xbf16>, vector<128x128xbf16>, vector<8x128xf32> -> vector<8x128xf32>
    %c0_22 = arith.constant 0 : index
    %c0_23 = arith.constant 0 : index
    %29 = vector.load %arg9[%c0_22, %c0_23] : memref<1x128xf32, #tpu.memory_space<vmem>>, vector<1x128xf32>
    %30 = vector.broadcast %29 : vector<1x128xf32> to vector<8x128xf32>
    %31 = arith.addf %28, %30 : vector<8x128xf32>
    %cst_24 = arith.constant 0.000000e+00 : f32
    %32 = vector.broadcast %cst_24 : f32 to vector<8x128xf32>
    %33 = arith.maximumf %31, %32 : vector<8x128xf32>
    %34 = arith.truncf %33 : vector<8x128xf32> to vector<8x128xbf16>
    %c0_25 = arith.constant 0 : index
    %c0_26 = arith.constant 0 : index
    %35 = vector.load %arg10[%c0_25, %c0_26] : memref<128x128xbf16, #tpu.memory_space<vmem>>, vector<128x128xbf16>
    %cst_27 = arith.constant dense<0.000000e+00> : vector<8x128xf32>
    %36 = tpu.matmul %34, %35, %cst_27 {dimension_numbers = #tpu.dot_dimension_numbers<[1], [0], [0], [1], [0, 0, 1, 1], [], []>} : vector<8x128xbf16>, vector<128x128xbf16>, vector<8x128xf32> -> vector<8x128xf32>
    %c0_28 = arith.constant 0 : index
    %c0_29 = arith.constant 0 : index
    %37 = vector.load %arg11[%c0_28, %c0_29] : memref<1x128xf32, #tpu.memory_space<vmem>>, vector<1x128xf32>
    %38 = vector.broadcast %37 : vector<1x128xf32> to vector<8x128xf32>
    %39 = arith.addf %36, %38 : vector<8x128xf32>
    %cst_30 = arith.constant 0.000000e+00 : f32
    %40 = vector.broadcast %cst_30 : f32 to vector<8x128xf32>
    %41 = arith.maximumf %39, %40 : vector<8x128xf32>
    %42 = arith.truncf %41 : vector<8x128xf32> to vector<8x128xbf16>
    %c0_31 = arith.constant 0 : index
    %c0_32 = arith.constant 0 : index
    %43 = vector.load %arg12[%c0_31, %c0_32] : memref<128x128xbf16, #tpu.memory_space<vmem>>, vector<128x128xbf16>
    %cst_33 = arith.constant dense<0.000000e+00> : vector<8x128xf32>
    %44 = tpu.matmul %42, %43, %cst_33 {dimension_numbers = #tpu.dot_dimension_numbers<[1], [0], [0], [1], [0, 0, 1, 1], [], []>} : vector<8x128xbf16>, vector<128x128xbf16>, vector<8x128xf32> -> vector<8x128xf32>
    %c0_34 = arith.constant 0 : index
    %c0_35 = arith.constant 0 : index
    %45 = vector.load %arg13[%c0_34, %c0_35] : memref<1x128xf32, #tpu.memory_space<vmem>>, vector<1x128xf32>
    %46 = vector.broadcast %45 : vector<1x128xf32> to vector<8x128xf32>
    %47 = arith.addf %44, %46 : vector<8x128xf32>
    %cst_36 = arith.constant 0.000000e+00 : f32
    %48 = vector.broadcast %cst_36 : f32 to vector<8x128xf32>
    %49 = arith.maximumf %47, %48 : vector<8x128xf32>
    %50 = arith.truncf %49 : vector<8x128xf32> to vector<8x128xbf16>
    %c0_37 = arith.constant 0 : index
    %c0_38 = arith.constant 0 : index
    %51 = vector.load %arg14[%c0_37, %c0_38] : memref<128x128xbf16, #tpu.memory_space<vmem>>, vector<128x128xbf16>
    %cst_39 = arith.constant dense<0.000000e+00> : vector<8x128xf32>
    %52 = tpu.matmul %50, %51, %cst_39 {dimension_numbers = #tpu.dot_dimension_numbers<[1], [0], [0], [1], [0, 0, 1, 1], [], []>} : vector<8x128xbf16>, vector<128x128xbf16>, vector<8x128xf32> -> vector<8x128xf32>
    %c0_40 = arith.constant 0 : index
    %c0_41 = arith.constant 0 : index
    %53 = vector.load %arg15[%c0_40, %c0_41] : memref<1x128xf32, #tpu.memory_space<vmem>>, vector<1x128xf32>
    %54 = vector.broadcast %53 : vector<1x128xf32> to vector<8x128xf32>
    %55 = arith.addf %52, %54 : vector<8x128xf32>
    %cst_42 = arith.constant 0.000000e+00 : f32
    %56 = vector.broadcast %cst_42 : f32 to vector<8x128xf32>
    %57 = arith.maximumf %55, %56 : vector<8x128xf32>
    %58 = arith.truncf %57 : vector<8x128xf32> to vector<8x128xbf16>
    %c0_43 = arith.constant 0 : index
    %c0_44 = arith.constant 0 : index
    %59 = vector.load %arg16[%c0_43, %c0_44] : memref<128x128xbf16, #tpu.memory_space<vmem>>, vector<128x128xbf16>
    %cst_45 = arith.constant dense<0.000000e+00> : vector<8x128xf32>
    %60 = tpu.matmul %58, %59, %cst_45 {dimension_numbers = #tpu.dot_dimension_numbers<[1], [0], [0], [1], [0, 0, 1, 1], [], []>} : vector<8x128xbf16>, vector<128x128xbf16>, vector<8x128xf32> -> vector<8x128xf32>
    %c0_46 = arith.constant 0 : index
    %c0_47 = arith.constant 0 : index
    %61 = vector.load %arg17[%c0_46, %c0_47] : memref<1x128xf32, #tpu.memory_space<vmem>>, vector<1x128xf32>
    %62 = vector.broadcast %61 : vector<1x128xf32> to vector<8x128xf32>
    %63 = arith.addf %60, %62 : vector<8x128xf32>
    %cst_48 = arith.constant 0.000000e+00 : f32
    %64 = vector.broadcast %cst_48 : f32 to vector<8x128xf32>
    %65 = arith.maximumf %63, %64 : vector<8x128xf32>
    %66 = arith.truncf %25 : vector<8x128xf32> to vector<8x128xbf16>
    %c0_49 = arith.constant 0 : index
    %c0_50 = arith.constant 0 : index
    %67 = vector.load %arg12[%c0_49, %c0_50] : memref<128x128xbf16, #tpu.memory_space<vmem>>, vector<128x128xbf16>
    %cst_51 = arith.constant dense<0.000000e+00> : vector<8x128xf32>
    %68 = tpu.matmul %66, %67, %cst_51 {dimension_numbers = #tpu.dot_dimension_numbers<[1], [0], [0], [1], [0, 0, 1, 1], [], []>} : vector<8x128xbf16>, vector<128x128xbf16>, vector<8x128xf32> -> vector<8x128xf32>
    %c0_52 = arith.constant 0 : index
    %c0_53 = arith.constant 0 : index
    %69 = vector.load %arg13[%c0_52, %c0_53] : memref<1x128xf32, #tpu.memory_space<vmem>>, vector<1x128xf32>
    %70 = vector.broadcast %69 : vector<1x128xf32> to vector<8x128xf32>
    %71 = arith.addf %68, %70 : vector<8x128xf32>
    %cst_54 = arith.constant 0.000000e+00 : f32
    %72 = vector.broadcast %cst_54 : f32 to vector<8x128xf32>
    %73 = arith.maximumf %71, %72 : vector<8x128xf32>
    %74 = arith.truncf %73 : vector<8x128xf32> to vector<8x128xbf16>
    %c0_55 = arith.constant 0 : index
    %c0_56 = arith.constant 0 : index
    %75 = vector.load %arg14[%c0_55, %c0_56] : memref<128x128xbf16, #tpu.memory_space<vmem>>, vector<128x128xbf16>
    %cst_57 = arith.constant dense<0.000000e+00> : vector<8x128xf32>
    %76 = tpu.matmul %74, %75, %cst_57 {dimension_numbers = #tpu.dot_dimension_numbers<[1], [0], [0], [1], [0, 0, 1, 1], [], []>} : vector<8x128xbf16>, vector<128x128xbf16>, vector<8x128xf32> -> vector<8x128xf32>
    %c0_58 = arith.constant 0 : index
    %c0_59 = arith.constant 0 : index
    %77 = vector.load %arg15[%c0_58, %c0_59] : memref<1x128xf32, #tpu.memory_space<vmem>>, vector<1x128xf32>
    %78 = vector.broadcast %77 : vector<1x128xf32> to vector<8x128xf32>
    %79 = arith.addf %76, %78 : vector<8x128xf32>
    %cst_60 = arith.constant 0.000000e+00 : f32
    %80 = vector.broadcast %cst_60 : f32 to vector<8x128xf32>
    %81 = arith.maximumf %79, %80 : vector<8x128xf32>
    %82 = arith.truncf %81 : vector<8x128xf32> to vector<8x128xbf16>
    %c0_61 = arith.constant 0 : index
    %c0_62 = arith.constant 0 : index
    %83 = vector.load %arg16[%c0_61, %c0_62] : memref<128x128xbf16, #tpu.memory_space<vmem>>, vector<128x128xbf16>
    %cst_63 = arith.constant dense<0.000000e+00> : vector<8x128xf32>
    %84 = tpu.matmul %82, %83, %cst_63 {dimension_numbers = #tpu.dot_dimension_numbers<[1], [0], [0], [1], [0, 0, 1, 1], [], []>} : vector<8x128xbf16>, vector<128x128xbf16>, vector<8x128xf32> -> vector<8x128xf32>
    %c0_64 = arith.constant 0 : index
    %c0_65 = arith.constant 0 : index
    %85 = vector.load %arg17[%c0_64, %c0_65] : memref<1x128xf32, #tpu.memory_space<vmem>>, vector<1x128xf32>
    %86 = vector.broadcast %85 : vector<1x128xf32> to vector<8x128xf32>
    %87 = arith.addf %84, %86 : vector<8x128xf32>
    %cst_66 = arith.constant 0.000000e+00 : f32
    %88 = vector.broadcast %cst_66 : f32 to vector<8x128xf32>
    %89 = arith.maximumf %87, %88 : vector<8x128xf32>
    %90 = arith.truncf %17 : vector<8x128xf32> to vector<8x128xbf16>
    %c0_67 = arith.constant 0 : index
    %c0_68 = arith.constant 0 : index
    %91 = vector.load %arg14[%c0_67, %c0_68] : memref<128x128xbf16, #tpu.memory_space<vmem>>, vector<128x128xbf16>
    %cst_69 = arith.constant dense<0.000000e+00> : vector<8x128xf32>
    %92 = tpu.matmul %90, %91, %cst_69 {dimension_numbers = #tpu.dot_dimension_numbers<[1], [0], [0], [1], [0, 0, 1, 1], [], []>} : vector<8x128xbf16>, vector<128x128xbf16>, vector<8x128xf32> -> vector<8x128xf32>
    %c0_70 = arith.constant 0 : index
    %c0_71 = arith.constant 0 : index
    %93 = vector.load %arg15[%c0_70, %c0_71] : memref<1x128xf32, #tpu.memory_space<vmem>>, vector<1x128xf32>
    %94 = vector.broadcast %93 : vector<1x128xf32> to vector<8x128xf32>
    %95 = arith.addf %92, %94 : vector<8x128xf32>
    %cst_72 = arith.constant 0.000000e+00 : f32
    %96 = vector.broadcast %cst_72 : f32 to vector<8x128xf32>
    %97 = arith.maximumf %95, %96 : vector<8x128xf32>
    %98 = arith.truncf %97 : vector<8x128xf32> to vector<8x128xbf16>
    %c0_73 = arith.constant 0 : index
    %c0_74 = arith.constant 0 : index
    %99 = vector.load %arg16[%c0_73, %c0_74] : memref<128x128xbf16, #tpu.memory_space<vmem>>, vector<128x128xbf16>
    %cst_75 = arith.constant dense<0.000000e+00> : vector<8x128xf32>
    %100 = tpu.matmul %98, %99, %cst_75 {dimension_numbers = #tpu.dot_dimension_numbers<[1], [0], [0], [1], [0, 0, 1, 1], [], []>} : vector<8x128xbf16>, vector<128x128xbf16>, vector<8x128xf32> -> vector<8x128xf32>
    %c0_76 = arith.constant 0 : index
    %c0_77 = arith.constant 0 : index
    %101 = vector.load %arg17[%c0_76, %c0_77] : memref<1x128xf32, #tpu.memory_space<vmem>>, vector<1x128xf32>
    %102 = vector.broadcast %101 : vector<1x128xf32> to vector<8x128xf32>
    %103 = arith.addf %100, %102 : vector<8x128xf32>
    %cst_78 = arith.constant 0.000000e+00 : f32
    %104 = vector.broadcast %cst_78 : f32 to vector<8x128xf32>
    %105 = arith.maximumf %103, %104 : vector<8x128xf32>
    %106 = arith.truncf %9 : vector<8x128xf32> to vector<8x128xbf16>
    %c0_79 = arith.constant 0 : index
    %c0_80 = arith.constant 0 : index
    %107 = vector.load %arg16[%c0_79, %c0_80] : memref<128x128xbf16, #tpu.memory_space<vmem>>, vector<128x128xbf16>
    %cst_81 = arith.constant dense<0.000000e+00> : vector<8x128xf32>
    %108 = tpu.matmul %106, %107, %cst_81 {dimension_numbers = #tpu.dot_dimension_numbers<[1], [0], [0], [1], [0, 0, 1, 1], [], []>} : vector<8x128xbf16>, vector<128x128xbf16>, vector<8x128xf32> -> vector<8x128xf32>
    %c0_82 = arith.constant 0 : index
    %c0_83 = arith.constant 0 : index
    %109 = vector.load %arg17[%c0_82, %c0_83] : memref<1x128xf32, #tpu.memory_space<vmem>>, vector<1x128xf32>
    %110 = vector.broadcast %109 : vector<1x128xf32> to vector<8x128xf32>
    %111 = arith.addf %108, %110 : vector<8x128xf32>
    %cst_84 = arith.constant 0.000000e+00 : f32
    %112 = vector.broadcast %cst_84 : f32 to vector<8x128xf32>
    %113 = arith.maximumf %111, %112 : vector<8x128xf32>
    %cst_85 = arith.constant 0.000000e+00 : f32
    %114 = vector.broadcast %cst_85 : f32 to vector<8x128xf32>
    %115 = arith.maximumf %1, %114 : vector<8x128xf32>
    %c1 = arith.constant 1 : index
    %c0_86 = arith.constant 0 : index
    %c0_87 = arith.constant 0 : index
    %116 = vector.load %arg1[%c1, %c0_86, %c0_87] : memref<3x8x128xf32, #tpu.memory_space<vmem>>, vector<1x8x128xf32>
    %117 = vector.shape_cast %116 : vector<1x8x128xf32> to vector<8x128xf32>
    %118 = arith.truncf %117 : vector<8x128xf32> to vector<8x128xbf16>
    %c0_88 = arith.constant 0 : index
    %c0_89 = arith.constant 0 : index
    %119 = vector.load %arg2[%c0_88, %c0_89] : memref<128x128xbf16, #tpu.memory_space<vmem>>, vector<128x128xbf16>
    %cst_90 = arith.constant dense<0.000000e+00> : vector<8x128xf32>
    %120 = tpu.matmul %118, %119, %cst_90 {dimension_numbers = #tpu.dot_dimension_numbers<[1], [0], [0], [1], [0, 0, 1, 1], [], []>} : vector<8x128xbf16>, vector<128x128xbf16>, vector<8x128xf32> -> vector<8x128xf32>
    %c0_91 = arith.constant 0 : index
    %c0_92 = arith.constant 0 : index
    %121 = vector.load %arg3[%c0_91, %c0_92] : memref<1x128xf32, #tpu.memory_space<vmem>>, vector<1x128xf32>
    %122 = vector.broadcast %121 : vector<1x128xf32> to vector<8x128xf32>
    %123 = arith.addf %120, %122 : vector<8x128xf32>
    %cst_93 = arith.constant 0.000000e+00 : f32
    %124 = vector.broadcast %cst_93 : f32 to vector<8x128xf32>
    %125 = arith.maximumf %123, %124 : vector<8x128xf32>
    %126 = arith.truncf %125 : vector<8x128xf32> to vector<8x128xbf16>
    %c0_94 = arith.constant 0 : index
    %c0_95 = arith.constant 0 : index
    %127 = vector.load %arg4[%c0_94, %c0_95] : memref<128x128xbf16, #tpu.memory_space<vmem>>, vector<128x128xbf16>
    %cst_96 = arith.constant dense<0.000000e+00> : vector<8x128xf32>
    %128 = tpu.matmul %126, %127, %cst_96 {dimension_numbers = #tpu.dot_dimension_numbers<[1], [0], [0], [1], [0, 0, 1, 1], [], []>} : vector<8x128xbf16>, vector<128x128xbf16>, vector<8x128xf32> -> vector<8x128xf32>
    %c0_97 = arith.constant 0 : index
    %c0_98 = arith.constant 0 : index
    %129 = vector.load %arg5[%c0_97, %c0_98] : memref<1x128xf32, #tpu.memory_space<vmem>>, vector<1x128xf32>
    %130 = vector.broadcast %129 : vector<1x128xf32> to vector<8x128xf32>
    %131 = arith.addf %128, %130 : vector<8x128xf32>
    %cst_99 = arith.constant 0.000000e+00 : f32
    %132 = vector.broadcast %cst_99 : f32 to vector<8x128xf32>
    %133 = arith.maximumf %131, %132 : vector<8x128xf32>
    %134 = arith.truncf %133 : vector<8x128xf32> to vector<8x128xbf16>
    %c0_100 = arith.constant 0 : index
    %c0_101 = arith.constant 0 : index
    %135 = vector.load %arg6[%c0_100, %c0_101] : memref<128x128xbf16, #tpu.memory_space<vmem>>, vector<128x128xbf16>
    %cst_102 = arith.constant dense<0.000000e+00> : vector<8x128xf32>
    %136 = tpu.matmul %134, %135, %cst_102 {dimension_numbers = #tpu.dot_dimension_numbers<[1], [0], [0], [1], [0, 0, 1, 1], [], []>} : vector<8x128xbf16>, vector<128x128xbf16>, vector<8x128xf32> -> vector<8x128xf32>
    %c0_103 = arith.constant 0 : index
    %c0_104 = arith.constant 0 : index
    %137 = vector.load %arg7[%c0_103, %c0_104] : memref<1x128xf32, #tpu.memory_space<vmem>>, vector<1x128xf32>
    %138 = vector.broadcast %137 : vector<1x128xf32> to vector<8x128xf32>
    %139 = arith.addf %136, %138 : vector<8x128xf32>
    %cst_105 = arith.constant 0.000000e+00 : f32
    %140 = vector.broadcast %cst_105 : f32 to vector<8x128xf32>
    %141 = arith.maximumf %139, %140 : vector<8x128xf32>
    %142 = arith.truncf %141 : vector<8x128xf32> to vector<8x128xbf16>
    %c0_106 = arith.constant 0 : index
    %c0_107 = arith.constant 0 : index
    %143 = vector.load %arg8[%c0_106, %c0_107] : memref<128x128xbf16, #tpu.memory_space<vmem>>, vector<128x128xbf16>
    %cst_108 = arith.constant dense<0.000000e+00> : vector<8x128xf32>
    %144 = tpu.matmul %142, %143, %cst_108 {dimension_numbers = #tpu.dot_dimension_numbers<[1], [0], [0], [1], [0, 0, 1, 1], [], []>} : vector<8x128xbf16>, vector<128x128xbf16>, vector<8x128xf32> -> vector<8x128xf32>
    %c0_109 = arith.constant 0 : index
    %c0_110 = arith.constant 0 : index
    %145 = vector.load %arg9[%c0_109, %c0_110] : memref<1x128xf32, #tpu.memory_space<vmem>>, vector<1x128xf32>
    %146 = vector.broadcast %145 : vector<1x128xf32> to vector<8x128xf32>
    %147 = arith.addf %144, %146 : vector<8x128xf32>
    %cst_111 = arith.constant 0.000000e+00 : f32
    %148 = vector.broadcast %cst_111 : f32 to vector<8x128xf32>
    %149 = arith.maximumf %147, %148 : vector<8x128xf32>
    %150 = arith.truncf %149 : vector<8x128xf32> to vector<8x128xbf16>
    %c0_112 = arith.constant 0 : index
    %c0_113 = arith.constant 0 : index
    %151 = vector.load %arg10[%c0_112, %c0_113] : memref<128x128xbf16, #tpu.memory_space<vmem>>, vector<128x128xbf16>
    %cst_114 = arith.constant dense<0.000000e+00> : vector<8x128xf32>
    %152 = tpu.matmul %150, %151, %cst_114 {dimension_numbers = #tpu.dot_dimension_numbers<[1], [0], [0], [1], [0, 0, 1, 1], [], []>} : vector<8x128xbf16>, vector<128x128xbf16>, vector<8x128xf32> -> vector<8x128xf32>
    %c0_115 = arith.constant 0 : index
    %c0_116 = arith.constant 0 : index
    %153 = vector.load %arg11[%c0_115, %c0_116] : memref<1x128xf32, #tpu.memory_space<vmem>>, vector<1x128xf32>
    %154 = vector.broadcast %153 : vector<1x128xf32> to vector<8x128xf32>
    %155 = arith.addf %152, %154 : vector<8x128xf32>
    %cst_117 = arith.constant 0.000000e+00 : f32
    %156 = vector.broadcast %cst_117 : f32 to vector<8x128xf32>
    %157 = arith.maximumf %155, %156 : vector<8x128xf32>
    %158 = arith.truncf %157 : vector<8x128xf32> to vector<8x128xbf16>
    %c0_118 = arith.constant 0 : index
    %c0_119 = arith.constant 0 : index
    %159 = vector.load %arg12[%c0_118, %c0_119] : memref<128x128xbf16, #tpu.memory_space<vmem>>, vector<128x128xbf16>
    %cst_120 = arith.constant dense<0.000000e+00> : vector<8x128xf32>
    %160 = tpu.matmul %158, %159, %cst_120 {dimension_numbers = #tpu.dot_dimension_numbers<[1], [0], [0], [1], [0, 0, 1, 1], [], []>} : vector<8x128xbf16>, vector<128x128xbf16>, vector<8x128xf32> -> vector<8x128xf32>
    %c0_121 = arith.constant 0 : index
    %c0_122 = arith.constant 0 : index
    %161 = vector.load %arg13[%c0_121, %c0_122] : memref<1x128xf32, #tpu.memory_space<vmem>>, vector<1x128xf32>
    %162 = vector.broadcast %161 : vector<1x128xf32> to vector<8x128xf32>
    %163 = arith.addf %160, %162 : vector<8x128xf32>
    %cst_123 = arith.constant 0.000000e+00 : f32
    %164 = vector.broadcast %cst_123 : f32 to vector<8x128xf32>
    %165 = arith.maximumf %163, %164 : vector<8x128xf32>
    %166 = arith.truncf %165 : vector<8x128xf32> to vector<8x128xbf16>
    %c0_124 = arith.constant 0 : index
    %c0_125 = arith.constant 0 : index
    %167 = vector.load %arg14[%c0_124, %c0_125] : memref<128x128xbf16, #tpu.memory_space<vmem>>, vector<128x128xbf16>
    %cst_126 = arith.constant dense<0.000000e+00> : vector<8x128xf32>
    %168 = tpu.matmul %166, %167, %cst_126 {dimension_numbers = #tpu.dot_dimension_numbers<[1], [0], [0], [1], [0, 0, 1, 1], [], []>} : vector<8x128xbf16>, vector<128x128xbf16>, vector<8x128xf32> -> vector<8x128xf32>
    %c0_127 = arith.constant 0 : index
    %c0_128 = arith.constant 0 : index
    %169 = vector.load %arg15[%c0_127, %c0_128] : memref<1x128xf32, #tpu.memory_space<vmem>>, vector<1x128xf32>
    %170 = vector.broadcast %169 : vector<1x128xf32> to vector<8x128xf32>
    %171 = arith.addf %168, %170 : vector<8x128xf32>
    %cst_129 = arith.constant 0.000000e+00 : f32
    %172 = vector.broadcast %cst_129 : f32 to vector<8x128xf32>
    %173 = arith.maximumf %171, %172 : vector<8x128xf32>
    %174 = arith.truncf %173 : vector<8x128xf32> to vector<8x128xbf16>
    %c0_130 = arith.constant 0 : index
    %c0_131 = arith.constant 0 : index
    %175 = vector.load %arg16[%c0_130, %c0_131] : memref<128x128xbf16, #tpu.memory_space<vmem>>, vector<128x128xbf16>
    %cst_132 = arith.constant dense<0.000000e+00> : vector<8x128xf32>
    %176 = tpu.matmul %174, %175, %cst_132 {dimension_numbers = #tpu.dot_dimension_numbers<[1], [0], [0], [1], [0, 0, 1, 1], [], []>} : vector<8x128xbf16>, vector<128x128xbf16>, vector<8x128xf32> -> vector<8x128xf32>
    %c0_133 = arith.constant 0 : index
    %c0_134 = arith.constant 0 : index
    %177 = vector.load %arg17[%c0_133, %c0_134] : memref<1x128xf32, #tpu.memory_space<vmem>>, vector<1x128xf32>
    %178 = vector.broadcast %177 : vector<1x128xf32> to vector<8x128xf32>
    %179 = arith.addf %176, %178 : vector<8x128xf32>
    %cst_135 = arith.constant 0.000000e+00 : f32
    %180 = vector.broadcast %cst_135 : f32 to vector<8x128xf32>
    %181 = arith.maximumf %179, %180 : vector<8x128xf32>
    %182 = arith.truncf %141 : vector<8x128xf32> to vector<8x128xbf16>
    %c0_136 = arith.constant 0 : index
    %c0_137 = arith.constant 0 : index
    %183 = vector.load %arg12[%c0_136, %c0_137] : memref<128x128xbf16, #tpu.memory_space<vmem>>, vector<128x128xbf16>
    %cst_138 = arith.constant dense<0.000000e+00> : vector<8x128xf32>
    %184 = tpu.matmul %182, %183, %cst_138 {dimension_numbers = #tpu.dot_dimension_numbers<[1], [0], [0], [1], [0, 0, 1, 1], [], []>} : vector<8x128xbf16>, vector<128x128xbf16>, vector<8x128xf32> -> vector<8x128xf32>
    %c0_139 = arith.constant 0 : index
    %c0_140 = arith.constant 0 : index
    %185 = vector.load %arg13[%c0_139, %c0_140] : memref<1x128xf32, #tpu.memory_space<vmem>>, vector<1x128xf32>
    %186 = vector.broadcast %185 : vector<1x128xf32> to vector<8x128xf32>
    %187 = arith.addf %184, %186 : vector<8x128xf32>
    %cst_141 = arith.constant 0.000000e+00 : f32
    %188 = vector.broadcast %cst_141 : f32 to vector<8x128xf32>
    %189 = arith.maximumf %187, %188 : vector<8x128xf32>
    %190 = arith.truncf %189 : vector<8x128xf32> to vector<8x128xbf16>
    %c0_142 = arith.constant 0 : index
    %c0_143 = arith.constant 0 : index
    %191 = vector.load %arg14[%c0_142, %c0_143] : memref<128x128xbf16, #tpu.memory_space<vmem>>, vector<128x128xbf16>
    %cst_144 = arith.constant dense<0.000000e+00> : vector<8x128xf32>
    %192 = tpu.matmul %190, %191, %cst_144 {dimension_numbers = #tpu.dot_dimension_numbers<[1], [0], [0], [1], [0, 0, 1, 1], [], []>} : vector<8x128xbf16>, vector<128x128xbf16>, vector<8x128xf32> -> vector<8x128xf32>
    %c0_145 = arith.constant 0 : index
    %c0_146 = arith.constant 0 : index
    %193 = vector.load %arg15[%c0_145, %c0_146] : memref<1x128xf32, #tpu.memory_space<vmem>>, vector<1x128xf32>
    %194 = vector.broadcast %193 : vector<1x128xf32> to vector<8x128xf32>
    %195 = arith.addf %192, %194 : vector<8x128xf32>
    %cst_147 = arith.constant 0.000000e+00 : f32
    %196 = vector.broadcast %cst_147 : f32 to vector<8x128xf32>
    %197 = arith.maximumf %195, %196 : vector<8x128xf32>
    %198 = arith.truncf %197 : vector<8x128xf32> to vector<8x128xbf16>
    %c0_148 = arith.constant 0 : index
    %c0_149 = arith.constant 0 : index
    %199 = vector.load %arg16[%c0_148, %c0_149] : memref<128x128xbf16, #tpu.memory_space<vmem>>, vector<128x128xbf16>
    %cst_150 = arith.constant dense<0.000000e+00> : vector<8x128xf32>
    %200 = tpu.matmul %198, %199, %cst_150 {dimension_numbers = #tpu.dot_dimension_numbers<[1], [0], [0], [1], [0, 0, 1, 1], [], []>} : vector<8x128xbf16>, vector<128x128xbf16>, vector<8x128xf32> -> vector<8x128xf32>
    %c0_151 = arith.constant 0 : index
    %c0_152 = arith.constant 0 : index
    %201 = vector.load %arg17[%c0_151, %c0_152] : memref<1x128xf32, #tpu.memory_space<vmem>>, vector<1x128xf32>
    %202 = vector.broadcast %201 : vector<1x128xf32> to vector<8x128xf32>
    %203 = arith.addf %200, %202 : vector<8x128xf32>
    %cst_153 = arith.constant 0.000000e+00 : f32
    %204 = vector.broadcast %cst_153 : f32 to vector<8x128xf32>
    %205 = arith.maximumf %203, %204 : vector<8x128xf32>
    %206 = arith.truncf %133 : vector<8x128xf32> to vector<8x128xbf16>
    %c0_154 = arith.constant 0 : index
    %c0_155 = arith.constant 0 : index
    %207 = vector.load %arg14[%c0_154, %c0_155] : memref<128x128xbf16, #tpu.memory_space<vmem>>, vector<128x128xbf16>
    %cst_156 = arith.constant dense<0.000000e+00> : vector<8x128xf32>
    %208 = tpu.matmul %206, %207, %cst_156 {dimension_numbers = #tpu.dot_dimension_numbers<[1], [0], [0], [1], [0, 0, 1, 1], [], []>} : vector<8x128xbf16>, vector<128x128xbf16>, vector<8x128xf32> -> vector<8x128xf32>
    %c0_157 = arith.constant 0 : index
    %c0_158 = arith.constant 0 : index
    %209 = vector.load %arg15[%c0_157, %c0_158] : memref<1x128xf32, #tpu.memory_space<vmem>>, vector<1x128xf32>
    %210 = vector.broadcast %209 : vector<1x128xf32> to vector<8x128xf32>
    %211 = arith.addf %208, %210 : vector<8x128xf32>
    %cst_159 = arith.constant 0.000000e+00 : f32
    %212 = vector.broadcast %cst_159 : f32 to vector<8x128xf32>
    %213 = arith.maximumf %211, %212 : vector<8x128xf32>
    %214 = arith.truncf %213 : vector<8x128xf32> to vector<8x128xbf16>
    %c0_160 = arith.constant 0 : index
    %c0_161 = arith.constant 0 : index
    %215 = vector.load %arg16[%c0_160, %c0_161] : memref<128x128xbf16, #tpu.memory_space<vmem>>, vector<128x128xbf16>
    %cst_162 = arith.constant dense<0.000000e+00> : vector<8x128xf32>
    %216 = tpu.matmul %214, %215, %cst_162 {dimension_numbers = #tpu.dot_dimension_numbers<[1], [0], [0], [1], [0, 0, 1, 1], [], []>} : vector<8x128xbf16>, vector<128x128xbf16>, vector<8x128xf32> -> vector<8x128xf32>
    %c0_163 = arith.constant 0 : index
    %c0_164 = arith.constant 0 : index
    %217 = vector.load %arg17[%c0_163, %c0_164] : memref<1x128xf32, #tpu.memory_space<vmem>>, vector<1x128xf32>
    %218 = vector.broadcast %217 : vector<1x128xf32> to vector<8x128xf32>
    %219 = arith.addf %216, %218 : vector<8x128xf32>
    %cst_165 = arith.constant 0.000000e+00 : f32
    %220 = vector.broadcast %cst_165 : f32 to vector<8x128xf32>
    %221 = arith.maximumf %219, %220 : vector<8x128xf32>
    %222 = arith.truncf %125 : vector<8x128xf32> to vector<8x128xbf16>
    %c0_166 = arith.constant 0 : index
    %c0_167 = arith.constant 0 : index
    %223 = vector.load %arg16[%c0_166, %c0_167] : memref<128x128xbf16, #tpu.memory_space<vmem>>, vector<128x128xbf16>
    %cst_168 = arith.constant dense<0.000000e+00> : vector<8x128xf32>
    %224 = tpu.matmul %222, %223, %cst_168 {dimension_numbers = #tpu.dot_dimension_numbers<[1], [0], [0], [1], [0, 0, 1, 1], [], []>} : vector<8x128xbf16>, vector<128x128xbf16>, vector<8x128xf32> -> vector<8x128xf32>
    %c0_169 = arith.constant 0 : index
    %c0_170 = arith.constant 0 : index
    %225 = vector.load %arg17[%c0_169, %c0_170] : memref<1x128xf32, #tpu.memory_space<vmem>>, vector<1x128xf32>
    %226 = vector.broadcast %225 : vector<1x128xf32> to vector<8x128xf32>
    %227 = arith.addf %224, %226 : vector<8x128xf32>
    %cst_171 = arith.constant 0.000000e+00 : f32
    %228 = vector.broadcast %cst_171 : f32 to vector<8x128xf32>
    %229 = arith.maximumf %227, %228 : vector<8x128xf32>
    %cst_172 = arith.constant 0.000000e+00 : f32
    %230 = vector.broadcast %cst_172 : f32 to vector<8x128xf32>
    %231 = arith.maximumf %117, %230 : vector<8x128xf32>
    %c2 = arith.constant 2 : index
    %c0_173 = arith.constant 0 : index
    %c0_174 = arith.constant 0 : index
    %232 = vector.load %arg1[%c2, %c0_173, %c0_174] : memref<3x8x128xf32, #tpu.memory_space<vmem>>, vector<1x8x128xf32>
    %233 = vector.shape_cast %232 : vector<1x8x128xf32> to vector<8x128xf32>
    %234 = arith.truncf %233 : vector<8x128xf32> to vector<8x128xbf16>
    %c0_175 = arith.constant 0 : index
    %c0_176 = arith.constant 0 : index
    %235 = vector.load %arg2[%c0_175, %c0_176] : memref<128x128xbf16, #tpu.memory_space<vmem>>, vector<128x128xbf16>
    %cst_177 = arith.constant dense<0.000000e+00> : vector<8x128xf32>
    %236 = tpu.matmul %234, %235, %cst_177 {dimension_numbers = #tpu.dot_dimension_numbers<[1], [0], [0], [1], [0, 0, 1, 1], [], []>} : vector<8x128xbf16>, vector<128x128xbf16>, vector<8x128xf32> -> vector<8x128xf32>
    %c0_178 = arith.constant 0 : index
    %c0_179 = arith.constant 0 : index
    %237 = vector.load %arg3[%c0_178, %c0_179] : memref<1x128xf32, #tpu.memory_space<vmem>>, vector<1x128xf32>
    %238 = vector.broadcast %237 : vector<1x128xf32> to vector<8x128xf32>
    %239 = arith.addf %236, %238 : vector<8x128xf32>
    %cst_180 = arith.constant 0.000000e+00 : f32
    %240 = vector.broadcast %cst_180 : f32 to vector<8x128xf32>
    %241 = arith.maximumf %239, %240 : vector<8x128xf32>
    %242 = arith.truncf %241 : vector<8x128xf32> to vector<8x128xbf16>
    %c0_181 = arith.constant 0 : index
    %c0_182 = arith.constant 0 : index
    %243 = vector.load %arg4[%c0_181, %c0_182] : memref<128x128xbf16, #tpu.memory_space<vmem>>, vector<128x128xbf16>
    %cst_183 = arith.constant dense<0.000000e+00> : vector<8x128xf32>
    %244 = tpu.matmul %242, %243, %cst_183 {dimension_numbers = #tpu.dot_dimension_numbers<[1], [0], [0], [1], [0, 0, 1, 1], [], []>} : vector<8x128xbf16>, vector<128x128xbf16>, vector<8x128xf32> -> vector<8x128xf32>
    %c0_184 = arith.constant 0 : index
    %c0_185 = arith.constant 0 : index
    %245 = vector.load %arg5[%c0_184, %c0_185] : memref<1x128xf32, #tpu.memory_space<vmem>>, vector<1x128xf32>
    %246 = vector.broadcast %245 : vector<1x128xf32> to vector<8x128xf32>
    %247 = arith.addf %244, %246 : vector<8x128xf32>
    %cst_186 = arith.constant 0.000000e+00 : f32
    %248 = vector.broadcast %cst_186 : f32 to vector<8x128xf32>
    %249 = arith.maximumf %247, %248 : vector<8x128xf32>
    %250 = arith.truncf %249 : vector<8x128xf32> to vector<8x128xbf16>
    %c0_187 = arith.constant 0 : index
    %c0_188 = arith.constant 0 : index
    %251 = vector.load %arg6[%c0_187, %c0_188] : memref<128x128xbf16, #tpu.memory_space<vmem>>, vector<128x128xbf16>
    %cst_189 = arith.constant dense<0.000000e+00> : vector<8x128xf32>
    %252 = tpu.matmul %250, %251, %cst_189 {dimension_numbers = #tpu.dot_dimension_numbers<[1], [0], [0], [1], [0, 0, 1, 1], [], []>} : vector<8x128xbf16>, vector<128x128xbf16>, vector<8x128xf32> -> vector<8x128xf32>
    %c0_190 = arith.constant 0 : index
    %c0_191 = arith.constant 0 : index
    %253 = vector.load %arg7[%c0_190, %c0_191] : memref<1x128xf32, #tpu.memory_space<vmem>>, vector<1x128xf32>
    %254 = vector.broadcast %253 : vector<1x128xf32> to vector<8x128xf32>
    %255 = arith.addf %252, %254 : vector<8x128xf32>
    %cst_192 = arith.constant 0.000000e+00 : f32
    %256 = vector.broadcast %cst_192 : f32 to vector<8x128xf32>
    %257 = arith.maximumf %255, %256 : vector<8x128xf32>
    %258 = arith.truncf %257 : vector<8x128xf32> to vector<8x128xbf16>
    %c0_193 = arith.constant 0 : index
    %c0_194 = arith.constant 0 : index
    %259 = vector.load %arg8[%c0_193, %c0_194] : memref<128x128xbf16, #tpu.memory_space<vmem>>, vector<128x128xbf16>
    %cst_195 = arith.constant dense<0.000000e+00> : vector<8x128xf32>
    %260 = tpu.matmul %258, %259, %cst_195 {dimension_numbers = #tpu.dot_dimension_numbers<[1], [0], [0], [1], [0, 0, 1, 1], [], []>} : vector<8x128xbf16>, vector<128x128xbf16>, vector<8x128xf32> -> vector<8x128xf32>
    %c0_196 = arith.constant 0 : index
    %c0_197 = arith.constant 0 : index
    %261 = vector.load %arg9[%c0_196, %c0_197] : memref<1x128xf32, #tpu.memory_space<vmem>>, vector<1x128xf32>
    %262 = vector.broadcast %261 : vector<1x128xf32> to vector<8x128xf32>
    %263 = arith.addf %260, %262 : vector<8x128xf32>
    %cst_198 = arith.constant 0.000000e+00 : f32
    %264 = vector.broadcast %cst_198 : f32 to vector<8x128xf32>
    %265 = arith.maximumf %263, %264 : vector<8x128xf32>
    %266 = arith.truncf %265 : vector<8x128xf32> to vector<8x128xbf16>
    %c0_199 = arith.constant 0 : index
    %c0_200 = arith.constant 0 : index
    %267 = vector.load %arg10[%c0_199, %c0_200] : memref<128x128xbf16, #tpu.memory_space<vmem>>, vector<128x128xbf16>
    %cst_201 = arith.constant dense<0.000000e+00> : vector<8x128xf32>
    %268 = tpu.matmul %266, %267, %cst_201 {dimension_numbers = #tpu.dot_dimension_numbers<[1], [0], [0], [1], [0, 0, 1, 1], [], []>} : vector<8x128xbf16>, vector<128x128xbf16>, vector<8x128xf32> -> vector<8x128xf32>
    %c0_202 = arith.constant 0 : index
    %c0_203 = arith.constant 0 : index
    %269 = vector.load %arg11[%c0_202, %c0_203] : memref<1x128xf32, #tpu.memory_space<vmem>>, vector<1x128xf32>
    %270 = vector.broadcast %269 : vector<1x128xf32> to vector<8x128xf32>
    %271 = arith.addf %268, %270 : vector<8x128xf32>
    %cst_204 = arith.constant 0.000000e+00 : f32
    %272 = vector.broadcast %cst_204 : f32 to vector<8x128xf32>
    %273 = arith.maximumf %271, %272 : vector<8x128xf32>
    %274 = arith.truncf %273 : vector<8x128xf32> to vector<8x128xbf16>
    %c0_205 = arith.constant 0 : index
    %c0_206 = arith.constant 0 : index
    %275 = vector.load %arg12[%c0_205, %c0_206] : memref<128x128xbf16, #tpu.memory_space<vmem>>, vector<128x128xbf16>
    %cst_207 = arith.constant dense<0.000000e+00> : vector<8x128xf32>
    %276 = tpu.matmul %274, %275, %cst_207 {dimension_numbers = #tpu.dot_dimension_numbers<[1], [0], [0], [1], [0, 0, 1, 1], [], []>} : vector<8x128xbf16>, vector<128x128xbf16>, vector<8x128xf32> -> vector<8x128xf32>
    %c0_208 = arith.constant 0 : index
    %c0_209 = arith.constant 0 : index
    %277 = vector.load %arg13[%c0_208, %c0_209] : memref<1x128xf32, #tpu.memory_space<vmem>>, vector<1x128xf32>
    %278 = vector.broadcast %277 : vector<1x128xf32> to vector<8x128xf32>
    %279 = arith.addf %276, %278 : vector<8x128xf32>
    %cst_210 = arith.constant 0.000000e+00 : f32
    %280 = vector.broadcast %cst_210 : f32 to vector<8x128xf32>
    %281 = arith.maximumf %279, %280 : vector<8x128xf32>
    %282 = arith.truncf %281 : vector<8x128xf32> to vector<8x128xbf16>
    %c0_211 = arith.constant 0 : index
    %c0_212 = arith.constant 0 : index
    %283 = vector.load %arg14[%c0_211, %c0_212] : memref<128x128xbf16, #tpu.memory_space<vmem>>, vector<128x128xbf16>
    %cst_213 = arith.constant dense<0.000000e+00> : vector<8x128xf32>
    %284 = tpu.matmul %282, %283, %cst_213 {dimension_numbers = #tpu.dot_dimension_numbers<[1], [0], [0], [1], [0, 0, 1, 1], [], []>} : vector<8x128xbf16>, vector<128x128xbf16>, vector<8x128xf32> -> vector<8x128xf32>
    %c0_214 = arith.constant 0 : index
    %c0_215 = arith.constant 0 : index
    %285 = vector.load %arg15[%c0_214, %c0_215] : memref<1x128xf32, #tpu.memory_space<vmem>>, vector<1x128xf32>
    %286 = vector.broadcast %285 : vector<1x128xf32> to vector<8x128xf32>
    %287 = arith.addf %284, %286 : vector<8x128xf32>
    %cst_216 = arith.constant 0.000000e+00 : f32
    %288 = vector.broadcast %cst_216 : f32 to vector<8x128xf32>
    %289 = arith.maximumf %287, %288 : vector<8x128xf32>
    %290 = arith.truncf %289 : vector<8x128xf32> to vector<8x128xbf16>
    %c0_217 = arith.constant 0 : index
    %c0_218 = arith.constant 0 : index
    %291 = vector.load %arg16[%c0_217, %c0_218] : memref<128x128xbf16, #tpu.memory_space<vmem>>, vector<128x128xbf16>
    %cst_219 = arith.constant dense<0.000000e+00> : vector<8x128xf32>
    %292 = tpu.matmul %290, %291, %cst_219 {dimension_numbers = #tpu.dot_dimension_numbers<[1], [0], [0], [1], [0, 0, 1, 1], [], []>} : vector<8x128xbf16>, vector<128x128xbf16>, vector<8x128xf32> -> vector<8x128xf32>
    %c0_220 = arith.constant 0 : index
    %c0_221 = arith.constant 0 : index
    %293 = vector.load %arg17[%c0_220, %c0_221] : memref<1x128xf32, #tpu.memory_space<vmem>>, vector<1x128xf32>
    %294 = vector.broadcast %293 : vector<1x128xf32> to vector<8x128xf32>
    %295 = arith.addf %292, %294 : vector<8x128xf32>
    %cst_222 = arith.constant 0.000000e+00 : f32
    %296 = vector.broadcast %cst_222 : f32 to vector<8x128xf32>
    %297 = arith.maximumf %295, %296 : vector<8x128xf32>
    %298 = arith.truncf %257 : vector<8x128xf32> to vector<8x128xbf16>
    %c0_223 = arith.constant 0 : index
    %c0_224 = arith.constant 0 : index
    %299 = vector.load %arg12[%c0_223, %c0_224] : memref<128x128xbf16, #tpu.memory_space<vmem>>, vector<128x128xbf16>
    %cst_225 = arith.constant dense<0.000000e+00> : vector<8x128xf32>
    %300 = tpu.matmul %298, %299, %cst_225 {dimension_numbers = #tpu.dot_dimension_numbers<[1], [0], [0], [1], [0, 0, 1, 1], [], []>} : vector<8x128xbf16>, vector<128x128xbf16>, vector<8x128xf32> -> vector<8x128xf32>
    %c0_226 = arith.constant 0 : index
    %c0_227 = arith.constant 0 : index
    %301 = vector.load %arg13[%c0_226, %c0_227] : memref<1x128xf32, #tpu.memory_space<vmem>>, vector<1x128xf32>
    %302 = vector.broadcast %301 : vector<1x128xf32> to vector<8x128xf32>
    %303 = arith.addf %300, %302 : vector<8x128xf32>
    %cst_228 = arith.constant 0.000000e+00 : f32
    %304 = vector.broadcast %cst_228 : f32 to vector<8x128xf32>
    %305 = arith.maximumf %303, %304 : vector<8x128xf32>
    %306 = arith.truncf %305 : vector<8x128xf32> to vector<8x128xbf16>
    %c0_229 = arith.constant 0 : index
    %c0_230 = arith.constant 0 : index
    %307 = vector.load %arg14[%c0_229, %c0_230] : memref<128x128xbf16, #tpu.memory_space<vmem>>, vector<128x128xbf16>
    %cst_231 = arith.constant dense<0.000000e+00> : vector<8x128xf32>
    %308 = tpu.matmul %306, %307, %cst_231 {dimension_numbers = #tpu.dot_dimension_numbers<[1], [0], [0], [1], [0, 0, 1, 1], [], []>} : vector<8x128xbf16>, vector<128x128xbf16>, vector<8x128xf32> -> vector<8x128xf32>
    %c0_232 = arith.constant 0 : index
    %c0_233 = arith.constant 0 : index
    %309 = vector.load %arg15[%c0_232, %c0_233] : memref<1x128xf32, #tpu.memory_space<vmem>>, vector<1x128xf32>
    %310 = vector.broadcast %309 : vector<1x128xf32> to vector<8x128xf32>
    %311 = arith.addf %308, %310 : vector<8x128xf32>
    %cst_234 = arith.constant 0.000000e+00 : f32
    %312 = vector.broadcast %cst_234 : f32 to vector<8x128xf32>
    %313 = arith.maximumf %311, %312 : vector<8x128xf32>
    %314 = arith.truncf %313 : vector<8x128xf32> to vector<8x128xbf16>
    %c0_235 = arith.constant 0 : index
    %c0_236 = arith.constant 0 : index
    %315 = vector.load %arg16[%c0_235, %c0_236] : memref<128x128xbf16, #tpu.memory_space<vmem>>, vector<128x128xbf16>
    %cst_237 = arith.constant dense<0.000000e+00> : vector<8x128xf32>
    %316 = tpu.matmul %314, %315, %cst_237 {dimension_numbers = #tpu.dot_dimension_numbers<[1], [0], [0], [1], [0, 0, 1, 1], [], []>} : vector<8x128xbf16>, vector<128x128xbf16>, vector<8x128xf32> -> vector<8x128xf32>
    %c0_238 = arith.constant 0 : index
    %c0_239 = arith.constant 0 : index
    %317 = vector.load %arg17[%c0_238, %c0_239] : memref<1x128xf32, #tpu.memory_space<vmem>>, vector<1x128xf32>
    %318 = vector.broadcast %317 : vector<1x128xf32> to vector<8x128xf32>
    %319 = arith.addf %316, %318 : vector<8x128xf32>
    %cst_240 = arith.constant 0.000000e+00 : f32
    %320 = vector.broadcast %cst_240 : f32 to vector<8x128xf32>
    %321 = arith.maximumf %319, %320 : vector<8x128xf32>
    %322 = arith.truncf %249 : vector<8x128xf32> to vector<8x128xbf16>
    %c0_241 = arith.constant 0 : index
    %c0_242 = arith.constant 0 : index
    %323 = vector.load %arg14[%c0_241, %c0_242] : memref<128x128xbf16, #tpu.memory_space<vmem>>, vector<128x128xbf16>
    %cst_243 = arith.constant dense<0.000000e+00> : vector<8x128xf32>
    %324 = tpu.matmul %322, %323, %cst_243 {dimension_numbers = #tpu.dot_dimension_numbers<[1], [0], [0], [1], [0, 0, 1, 1], [], []>} : vector<8x128xbf16>, vector<128x128xbf16>, vector<8x128xf32> -> vector<8x128xf32>
    %c0_244 = arith.constant 0 : index
    %c0_245 = arith.constant 0 : index
    %325 = vector.load %arg15[%c0_244, %c0_245] : memref<1x128xf32, #tpu.memory_space<vmem>>, vector<1x128xf32>
    %326 = vector.broadcast %325 : vector<1x128xf32> to vector<8x128xf32>
    %327 = arith.addf %324, %326 : vector<8x128xf32>
    %cst_246 = arith.constant 0.000000e+00 : f32
    %328 = vector.broadcast %cst_246 : f32 to vector<8x128xf32>
    %329 = arith.maximumf %327, %328 : vector<8x128xf32>
    %330 = arith.truncf %329 : vector<8x128xf32> to vector<8x128xbf16>
    %c0_247 = arith.constant 0 : index
    %c0_248 = arith.constant 0 : index
    %331 = vector.load %arg16[%c0_247, %c0_248] : memref<128x128xbf16, #tpu.memory_space<vmem>>, vector<128x128xbf16>
    %cst_249 = arith.constant dense<0.000000e+00> : vector<8x128xf32>
    %332 = tpu.matmul %330, %331, %cst_249 {dimension_numbers = #tpu.dot_dimension_numbers<[1], [0], [0], [1], [0, 0, 1, 1], [], []>} : vector<8x128xbf16>, vector<128x128xbf16>, vector<8x128xf32> -> vector<8x128xf32>
    %c0_250 = arith.constant 0 : index
    %c0_251 = arith.constant 0 : index
    %333 = vector.load %arg17[%c0_250, %c0_251] : memref<1x128xf32, #tpu.memory_space<vmem>>, vector<1x128xf32>
    %334 = vector.broadcast %333 : vector<1x128xf32> to vector<8x128xf32>
    %335 = arith.addf %332, %334 : vector<8x128xf32>
    %cst_252 = arith.constant 0.000000e+00 : f32
    %336 = vector.broadcast %cst_252 : f32 to vector<8x128xf32>
    %337 = arith.maximumf %335, %336 : vector<8x128xf32>
    %338 = arith.truncf %241 : vector<8x128xf32> to vector<8x128xbf16>
    %c0_253 = arith.constant 0 : index
    %c0_254 = arith.constant 0 : index
    %339 = vector.load %arg16[%c0_253, %c0_254] : memref<128x128xbf16, #tpu.memory_space<vmem>>, vector<128x128xbf16>
    %cst_255 = arith.constant dense<0.000000e+00> : vector<8x128xf32>
    %340 = tpu.matmul %338, %339, %cst_255 {dimension_numbers = #tpu.dot_dimension_numbers<[1], [0], [0], [1], [0, 0, 1, 1], [], []>} : vector<8x128xbf16>, vector<128x128xbf16>, vector<8x128xf32> -> vector<8x128xf32>
    %c0_256 = arith.constant 0 : index
    %c0_257 = arith.constant 0 : index
    %341 = vector.load %arg17[%c0_256, %c0_257] : memref<1x128xf32, #tpu.memory_space<vmem>>, vector<1x128xf32>
    %342 = vector.broadcast %341 : vector<1x128xf32> to vector<8x128xf32>
    %343 = arith.addf %340, %342 : vector<8x128xf32>
    %cst_258 = arith.constant 0.000000e+00 : f32
    %344 = vector.broadcast %cst_258 : f32 to vector<8x128xf32>
    %345 = arith.maximumf %343, %344 : vector<8x128xf32>
    %cst_259 = arith.constant 0.000000e+00 : f32
    %346 = vector.broadcast %cst_259 : f32 to vector<8x128xf32>
    %347 = arith.maximumf %233, %346 : vector<8x128xf32>
    %cst_260 = arith.constant 0.000000e+00 : f32
    %348 = vector.broadcast %cst_260 : f32 to vector<8x128xf32>
    %c0_261 = arith.constant 0 : index
    %c0_262 = arith.constant 0 : index
    %349 = memref.load %arg18[%c0_261, %c0_262] : memref<3x15xf32, #tpu.memory_space<smem>>
    %350 = vector.broadcast %349 : f32 to vector<8x128xf32>
    %351 = arith.mulf %350, %65 : vector<8x128xf32>
    %352 = arith.addf %348, %351 : vector<8x128xf32>
    %c0_263 = arith.constant 0 : index
    %c1_264 = arith.constant 1 : index
    %353 = memref.load %arg18[%c0_263, %c1_264] : memref<3x15xf32, #tpu.memory_space<smem>>
    %354 = vector.broadcast %353 : f32 to vector<8x128xf32>
    %355 = arith.mulf %354, %181 : vector<8x128xf32>
    %356 = arith.addf %352, %355 : vector<8x128xf32>
    %c0_265 = arith.constant 0 : index
    %c2_266 = arith.constant 2 : index
    %357 = memref.load %arg18[%c0_265, %c2_266] : memref<3x15xf32, #tpu.memory_space<smem>>
    %358 = vector.broadcast %357 : f32 to vector<8x128xf32>
    %359 = arith.mulf %358, %297 : vector<8x128xf32>
    %360 = arith.addf %356, %359 : vector<8x128xf32>
    %c0_267 = arith.constant 0 : index
    %c3 = arith.constant 3 : index
    %361 = memref.load %arg18[%c0_267, %c3] : memref<3x15xf32, #tpu.memory_space<smem>>
    %362 = vector.broadcast %361 : f32 to vector<8x128xf32>
    %363 = arith.mulf %362, %89 : vector<8x128xf32>
    %364 = arith.addf %360, %363 : vector<8x128xf32>
    %c0_268 = arith.constant 0 : index
    %c4 = arith.constant 4 : index
    %365 = memref.load %arg18[%c0_268, %c4] : memref<3x15xf32, #tpu.memory_space<smem>>
    %366 = vector.broadcast %365 : f32 to vector<8x128xf32>
    %367 = arith.mulf %366, %205 : vector<8x128xf32>
    %368 = arith.addf %364, %367 : vector<8x128xf32>
    %c0_269 = arith.constant 0 : index
    %c5 = arith.constant 5 : index
    %369 = memref.load %arg18[%c0_269, %c5] : memref<3x15xf32, #tpu.memory_space<smem>>
    %370 = vector.broadcast %369 : f32 to vector<8x128xf32>
    %371 = arith.mulf %370, %321 : vector<8x128xf32>
    %372 = arith.addf %368, %371 : vector<8x128xf32>
    %c0_270 = arith.constant 0 : index
    %c6 = arith.constant 6 : index
    %373 = memref.load %arg18[%c0_270, %c6] : memref<3x15xf32, #tpu.memory_space<smem>>
    %374 = vector.broadcast %373 : f32 to vector<8x128xf32>
    %375 = arith.mulf %374, %105 : vector<8x128xf32>
    %376 = arith.addf %372, %375 : vector<8x128xf32>
    %c0_271 = arith.constant 0 : index
    %c7 = arith.constant 7 : index
    %377 = memref.load %arg18[%c0_271, %c7] : memref<3x15xf32, #tpu.memory_space<smem>>
    %378 = vector.broadcast %377 : f32 to vector<8x128xf32>
    %379 = arith.mulf %378, %221 : vector<8x128xf32>
    %380 = arith.addf %376, %379 : vector<8x128xf32>
    %c0_272 = arith.constant 0 : index
    %c8 = arith.constant 8 : index
    %381 = memref.load %arg18[%c0_272, %c8] : memref<3x15xf32, #tpu.memory_space<smem>>
    %382 = vector.broadcast %381 : f32 to vector<8x128xf32>
    %383 = arith.mulf %382, %337 : vector<8x128xf32>
    %384 = arith.addf %380, %383 : vector<8x128xf32>
    %c0_273 = arith.constant 0 : index
    %c9 = arith.constant 9 : index
    %385 = memref.load %arg18[%c0_273, %c9] : memref<3x15xf32, #tpu.memory_space<smem>>
    %386 = vector.broadcast %385 : f32 to vector<8x128xf32>
    %387 = arith.mulf %386, %113 : vector<8x128xf32>
    %388 = arith.addf %384, %387 : vector<8x128xf32>
    %c0_274 = arith.constant 0 : index
    %c10 = arith.constant 10 : index
    %389 = memref.load %arg18[%c0_274, %c10] : memref<3x15xf32, #tpu.memory_space<smem>>
    %390 = vector.broadcast %389 : f32 to vector<8x128xf32>
    %391 = arith.mulf %390, %229 : vector<8x128xf32>
    %392 = arith.addf %388, %391 : vector<8x128xf32>
    %c0_275 = arith.constant 0 : index
    %c11 = arith.constant 11 : index
    %393 = memref.load %arg18[%c0_275, %c11] : memref<3x15xf32, #tpu.memory_space<smem>>
    %394 = vector.broadcast %393 : f32 to vector<8x128xf32>
    %395 = arith.mulf %394, %345 : vector<8x128xf32>
    %396 = arith.addf %392, %395 : vector<8x128xf32>
    %c0_276 = arith.constant 0 : index
    %c12 = arith.constant 12 : index
    %397 = memref.load %arg18[%c0_276, %c12] : memref<3x15xf32, #tpu.memory_space<smem>>
    %398 = vector.broadcast %397 : f32 to vector<8x128xf32>
    %399 = arith.mulf %398, %115 : vector<8x128xf32>
    %400 = arith.addf %396, %399 : vector<8x128xf32>
    %c0_277 = arith.constant 0 : index
    %c13 = arith.constant 13 : index
    %401 = memref.load %arg18[%c0_277, %c13] : memref<3x15xf32, #tpu.memory_space<smem>>
    %402 = vector.broadcast %401 : f32 to vector<8x128xf32>
    %403 = arith.mulf %402, %231 : vector<8x128xf32>
    %404 = arith.addf %400, %403 : vector<8x128xf32>
    %c0_278 = arith.constant 0 : index
    %c14 = arith.constant 14 : index
    %405 = memref.load %arg18[%c0_278, %c14] : memref<3x15xf32, #tpu.memory_space<smem>>
    %406 = vector.broadcast %405 : f32 to vector<8x128xf32>
    %407 = arith.mulf %406, %347 : vector<8x128xf32>
    %408 = arith.addf %404, %407 : vector<8x128xf32>
    %c0_279 = arith.constant 0 : index
    %c0_280 = arith.constant 0 : index
    %409 = memref.load %arg19[%c0_279, %c0_280] : memref<1x3xf32, #tpu.memory_space<smem>>
    %410 = vector.broadcast %409 : f32 to vector<8x128xf32>
    %411 = arith.addf %408, %410 : vector<8x128xf32>
    %c0_281 = arith.constant 0 : index
    %c0_282 = arith.constant 0 : index
    %c0_283 = arith.constant 0 : index
    %412 = vector.load %arg20[%c0_281, %c0_282, %c0_283] : memref<3x8x128xf32, #tpu.memory_space<vmem>>, vector<1x8x128xf32>
    %413 = vector.shape_cast %412 : vector<1x8x128xf32> to vector<8x128xf32>
    %414 = vector.shape_cast %411 : vector<8x128xf32> to vector<1x8x128xf32>
    tpu.vector_store %arg20[%c0_281, %c0_282, %c0_283], %414 {strides = array<i32>} : memref<3x8x128xf32, #tpu.memory_space<vmem>>, vector<1x8x128xf32>,
    %cst_284 = arith.constant 0.000000e+00 : f32
    %415 = vector.broadcast %cst_284 : f32 to vector<8x128xf32>
    %c1_285 = arith.constant 1 : index
    %c0_286 = arith.constant 0 : index
    %416 = memref.load %arg18[%c1_285, %c0_286] : memref<3x15xf32, #tpu.memory_space<smem>>
    %417 = vector.broadcast %416 : f32 to vector<8x128xf32>
    %418 = arith.mulf %417, %65 : vector<8x128xf32>
    %419 = arith.addf %415, %418 : vector<8x128xf32>
    %c1_287 = arith.constant 1 : index
    %c1_288 = arith.constant 1 : index
    %420 = memref.load %arg18[%c1_287, %c1_288] : memref<3x15xf32, #tpu.memory_space<smem>>
    %421 = vector.broadcast %420 : f32 to vector<8x128xf32>
    %422 = arith.mulf %421, %181 : vector<8x128xf32>
    %423 = arith.addf %419, %422 : vector<8x128xf32>
    %c1_289 = arith.constant 1 : index
    %c2_290 = arith.constant 2 : index
    %424 = memref.load %arg18[%c1_289, %c2_290] : memref<3x15xf32, #tpu.memory_space<smem>>
    %425 = vector.broadcast %424 : f32 to vector<8x128xf32>
    %426 = arith.mulf %425, %297 : vector<8x128xf32>
    %427 = arith.addf %423, %426 : vector<8x128xf32>
    %c1_291 = arith.constant 1 : index
    %c3_292 = arith.constant 3 : index
    %428 = memref.load %arg18[%c1_291, %c3_292] : memref<3x15xf32, #tpu.memory_space<smem>>
    %429 = vector.broadcast %428 : f32 to vector<8x128xf32>
    %430 = arith.mulf %429, %89 : vector<8x128xf32>
    %431 = arith.addf %427, %430 : vector<8x128xf32>
    %c1_293 = arith.constant 1 : index
    %c4_294 = arith.constant 4 : index
    %432 = memref.load %arg18[%c1_293, %c4_294] : memref<3x15xf32, #tpu.memory_space<smem>>
    %433 = vector.broadcast %432 : f32 to vector<8x128xf32>
    %434 = arith.mulf %433, %205 : vector<8x128xf32>
    %435 = arith.addf %431, %434 : vector<8x128xf32>
    %c1_295 = arith.constant 1 : index
    %c5_296 = arith.constant 5 : index
    %436 = memref.load %arg18[%c1_295, %c5_296] : memref<3x15xf32, #tpu.memory_space<smem>>
    %437 = vector.broadcast %436 : f32 to vector<8x128xf32>
    %438 = arith.mulf %437, %321 : vector<8x128xf32>
    %439 = arith.addf %435, %438 : vector<8x128xf32>
    %c1_297 = arith.constant 1 : index
    %c6_298 = arith.constant 6 : index
    %440 = memref.load %arg18[%c1_297, %c6_298] : memref<3x15xf32, #tpu.memory_space<smem>>
    %441 = vector.broadcast %440 : f32 to vector<8x128xf32>
    %442 = arith.mulf %441, %105 : vector<8x128xf32>
    %443 = arith.addf %439, %442 : vector<8x128xf32>
    %c1_299 = arith.constant 1 : index
    %c7_300 = arith.constant 7 : index
    %444 = memref.load %arg18[%c1_299, %c7_300] : memref<3x15xf32, #tpu.memory_space<smem>>
    %445 = vector.broadcast %444 : f32 to vector<8x128xf32>
    %446 = arith.mulf %445, %221 : vector<8x128xf32>
    %447 = arith.addf %443, %446 : vector<8x128xf32>
    %c1_301 = arith.constant 1 : index
    %c8_302 = arith.constant 8 : index
    %448 = memref.load %arg18[%c1_301, %c8_302] : memref<3x15xf32, #tpu.memory_space<smem>>
    %449 = vector.broadcast %448 : f32 to vector<8x128xf32>
    %450 = arith.mulf %449, %337 : vector<8x128xf32>
    %451 = arith.addf %447, %450 : vector<8x128xf32>
    %c1_303 = arith.constant 1 : index
    %c9_304 = arith.constant 9 : index
    %452 = memref.load %arg18[%c1_303, %c9_304] : memref<3x15xf32, #tpu.memory_space<smem>>
    %453 = vector.broadcast %452 : f32 to vector<8x128xf32>
    %454 = arith.mulf %453, %113 : vector<8x128xf32>
    %455 = arith.addf %451, %454 : vector<8x128xf32>
    %c1_305 = arith.constant 1 : index
    %c10_306 = arith.constant 10 : index
    %456 = memref.load %arg18[%c1_305, %c10_306] : memref<3x15xf32, #tpu.memory_space<smem>>
    %457 = vector.broadcast %456 : f32 to vector<8x128xf32>
    %458 = arith.mulf %457, %229 : vector<8x128xf32>
    %459 = arith.addf %455, %458 : vector<8x128xf32>
    %c1_307 = arith.constant 1 : index
    %c11_308 = arith.constant 11 : index
    %460 = memref.load %arg18[%c1_307, %c11_308] : memref<3x15xf32, #tpu.memory_space<smem>>
    %461 = vector.broadcast %460 : f32 to vector<8x128xf32>
    %462 = arith.mulf %461, %345 : vector<8x128xf32>
    %463 = arith.addf %459, %462 : vector<8x128xf32>
    %c1_309 = arith.constant 1 : index
    %c12_310 = arith.constant 12 : index
    %464 = memref.load %arg18[%c1_309, %c12_310] : memref<3x15xf32, #tpu.memory_space<smem>>
    %465 = vector.broadcast %464 : f32 to vector<8x128xf32>
    %466 = arith.mulf %465, %115 : vector<8x128xf32>
    %467 = arith.addf %463, %466 : vector<8x128xf32>
    %c1_311 = arith.constant 1 : index
    %c13_312 = arith.constant 13 : index
    %468 = memref.load %arg18[%c1_311, %c13_312] : memref<3x15xf32, #tpu.memory_space<smem>>
    %469 = vector.broadcast %468 : f32 to vector<8x128xf32>
    %470 = arith.mulf %469, %231 : vector<8x128xf32>
    %471 = arith.addf %467, %470 : vector<8x128xf32>
    %c1_313 = arith.constant 1 : index
    %c14_314 = arith.constant 14 : index
    %472 = memref.load %arg18[%c1_313, %c14_314] : memref<3x15xf32, #tpu.memory_space<smem>>
    %473 = vector.broadcast %472 : f32 to vector<8x128xf32>
    %474 = arith.mulf %473, %347 : vector<8x128xf32>
    %475 = arith.addf %471, %474 : vector<8x128xf32>
    %c0_315 = arith.constant 0 : index
    %c1_316 = arith.constant 1 : index
    %476 = memref.load %arg19[%c0_315, %c1_316] : memref<1x3xf32, #tpu.memory_space<smem>>
    %477 = vector.broadcast %476 : f32 to vector<8x128xf32>
    %478 = arith.addf %475, %477 : vector<8x128xf32>
    %c1_317 = arith.constant 1 : index
    %c0_318 = arith.constant 0 : index
    %c0_319 = arith.constant 0 : index
    %479 = vector.load %arg20[%c1_317, %c0_318, %c0_319] : memref<3x8x128xf32, #tpu.memory_space<vmem>>, vector<1x8x128xf32>
    %480 = vector.shape_cast %479 : vector<1x8x128xf32> to vector<8x128xf32>
    %481 = vector.shape_cast %478 : vector<8x128xf32> to vector<1x8x128xf32>
    tpu.vector_store %arg20[%c1_317, %c0_318, %c0_319], %481 {strides = array<i32>} : memref<3x8x128xf32, #tpu.memory_space<vmem>>, vector<1x8x128xf32>,
    %cst_320 = arith.constant 0.000000e+00 : f32
    %482 = vector.broadcast %cst_320 : f32 to vector<8x128xf32>
    %c2_321 = arith.constant 2 : index
    %c0_322 = arith.constant 0 : index
    %483 = memref.load %arg18[%c2_321, %c0_322] : memref<3x15xf32, #tpu.memory_space<smem>>
    %484 = vector.broadcast %483 : f32 to vector<8x128xf32>
    %485 = arith.mulf %484, %65 : vector<8x128xf32>
    %486 = arith.addf %482, %485 : vector<8x128xf32>
    %c2_323 = arith.constant 2 : index
    %c1_324 = arith.constant 1 : index
    %487 = memref.load %arg18[%c2_323, %c1_324] : memref<3x15xf32, #tpu.memory_space<smem>>
    %488 = vector.broadcast %487 : f32 to vector<8x128xf32>
    %489 = arith.mulf %488, %181 : vector<8x128xf32>
    %490 = arith.addf %486, %489 : vector<8x128xf32>
    %c2_325 = arith.constant 2 : index
    %c2_326 = arith.constant 2 : index
    %491 = memref.load %arg18[%c2_325, %c2_326] : memref<3x15xf32, #tpu.memory_space<smem>>
    %492 = vector.broadcast %491 : f32 to vector<8x128xf32>
    %493 = arith.mulf %492, %297 : vector<8x128xf32>
    %494 = arith.addf %490, %493 : vector<8x128xf32>
    %c2_327 = arith.constant 2 : index
    %c3_328 = arith.constant 3 : index
    %495 = memref.load %arg18[%c2_327, %c3_328] : memref<3x15xf32, #tpu.memory_space<smem>>
    %496 = vector.broadcast %495 : f32 to vector<8x128xf32>
    %497 = arith.mulf %496, %89 : vector<8x128xf32>
    %498 = arith.addf %494, %497 : vector<8x128xf32>
    %c2_329 = arith.constant 2 : index
    %c4_330 = arith.constant 4 : index
    %499 = memref.load %arg18[%c2_329, %c4_330] : memref<3x15xf32, #tpu.memory_space<smem>>
    %500 = vector.broadcast %499 : f32 to vector<8x128xf32>
    %501 = arith.mulf %500, %205 : vector<8x128xf32>
    %502 = arith.addf %498, %501 : vector<8x128xf32>
    %c2_331 = arith.constant 2 : index
    %c5_332 = arith.constant 5 : index
    %503 = memref.load %arg18[%c2_331, %c5_332] : memref<3x15xf32, #tpu.memory_space<smem>>
    %504 = vector.broadcast %503 : f32 to vector<8x128xf32>
    %505 = arith.mulf %504, %321 : vector<8x128xf32>
    %506 = arith.addf %502, %505 : vector<8x128xf32>
    %c2_333 = arith.constant 2 : index
    %c6_334 = arith.constant 6 : index
    %507 = memref.load %arg18[%c2_333, %c6_334] : memref<3x15xf32, #tpu.memory_space<smem>>
    %508 = vector.broadcast %507 : f32 to vector<8x128xf32>
    %509 = arith.mulf %508, %105 : vector<8x128xf32>
    %510 = arith.addf %506, %509 : vector<8x128xf32>
    %c2_335 = arith.constant 2 : index
    %c7_336 = arith.constant 7 : index
    %511 = memref.load %arg18[%c2_335, %c7_336] : memref<3x15xf32, #tpu.memory_space<smem>>
    %512 = vector.broadcast %511 : f32 to vector<8x128xf32>
    %513 = arith.mulf %512, %221 : vector<8x128xf32>
    %514 = arith.addf %510, %513 : vector<8x128xf32>
    %c2_337 = arith.constant 2 : index
    %c8_338 = arith.constant 8 : index
    %515 = memref.load %arg18[%c2_337, %c8_338] : memref<3x15xf32, #tpu.memory_space<smem>>
    %516 = vector.broadcast %515 : f32 to vector<8x128xf32>
    %517 = arith.mulf %516, %337 : vector<8x128xf32>
    %518 = arith.addf %514, %517 : vector<8x128xf32>
    %c2_339 = arith.constant 2 : index
    %c9_340 = arith.constant 9 : index
    %519 = memref.load %arg18[%c2_339, %c9_340] : memref<3x15xf32, #tpu.memory_space<smem>>
    %520 = vector.broadcast %519 : f32 to vector<8x128xf32>
    %521 = arith.mulf %520, %113 : vector<8x128xf32>
    %522 = arith.addf %518, %521 : vector<8x128xf32>
    %c2_341 = arith.constant 2 : index
    %c10_342 = arith.constant 10 : index
    %523 = memref.load %arg18[%c2_341, %c10_342] : memref<3x15xf32, #tpu.memory_space<smem>>
    %524 = vector.broadcast %523 : f32 to vector<8x128xf32>
    %525 = arith.mulf %524, %229 : vector<8x128xf32>
    %526 = arith.addf %522, %525 : vector<8x128xf32>
    %c2_343 = arith.constant 2 : index
    %c11_344 = arith.constant 11 : index
    %527 = memref.load %arg18[%c2_343, %c11_344] : memref<3x15xf32, #tpu.memory_space<smem>>
    %528 = vector.broadcast %527 : f32 to vector<8x128xf32>
    %529 = arith.mulf %528, %345 : vector<8x128xf32>
    %530 = arith.addf %526, %529 : vector<8x128xf32>
    %c2_345 = arith.constant 2 : index
    %c12_346 = arith.constant 12 : index
    %531 = memref.load %arg18[%c2_345, %c12_346] : memref<3x15xf32, #tpu.memory_space<smem>>
    %532 = vector.broadcast %531 : f32 to vector<8x128xf32>
    %533 = arith.mulf %532, %115 : vector<8x128xf32>
    %534 = arith.addf %530, %533 : vector<8x128xf32>
    %c2_347 = arith.constant 2 : index
    %c13_348 = arith.constant 13 : index
    %535 = memref.load %arg18[%c2_347, %c13_348] : memref<3x15xf32, #tpu.memory_space<smem>>
    %536 = vector.broadcast %535 : f32 to vector<8x128xf32>
    %537 = arith.mulf %536, %231 : vector<8x128xf32>
    %538 = arith.addf %534, %537 : vector<8x128xf32>
    %c2_349 = arith.constant 2 : index
    %c14_350 = arith.constant 14 : index
    %539 = memref.load %arg18[%c2_349, %c14_350] : memref<3x15xf32, #tpu.memory_space<smem>>
    %540 = vector.broadcast %539 : f32 to vector<8x128xf32>
    %541 = arith.mulf %540, %347 : vector<8x128xf32>
    %542 = arith.addf %538, %541 : vector<8x128xf32>
    %c0_351 = arith.constant 0 : index
    %c2_352 = arith.constant 2 : index
    %543 = memref.load %arg19[%c0_351, %c2_352] : memref<1x3xf32, #tpu.memory_space<smem>>
    %544 = vector.broadcast %543 : f32 to vector<8x128xf32>
    %545 = arith.addf %542, %544 : vector<8x128xf32>
    %c2_353 = arith.constant 2 : index
    %c0_354 = arith.constant 0 : index
    %c0_355 = arith.constant 0 : index
    %546 = vector.load %arg20[%c2_353, %c0_354, %c0_355] : memref<3x8x128xf32, #tpu.memory_space<vmem>>, vector<1x8x128xf32>
    %547 = vector.shape_cast %546 : vector<1x8x128xf32> to vector<8x128xf32>
    %548 = vector.shape_cast %545 : vector<8x128xf32> to vector<1x8x128xf32>
    tpu.vector_store %arg20[%c2_353, %c0_354, %c0_355], %548 {strides = array<i32>} : memref<3x8x128xf32, #tpu.memory_space<vmem>>, vector<1x8x128xf32>,
    return
  }
  func.func @transform_0(%arg0: i32) -> (i32, i32, i32) {
    %c0_i32 = arith.constant 0 : i32
    %c0_i32_0 = arith.constant 0 : i32
    %c0_i32_1 = arith.constant 0 : i32
    return %c0_i32, %arg0, %c0_i32_0 : i32, i32, i32
  }
  func.func @transform_1(%arg0: i32) -> (i32, i32) {
    %c0_i32 = arith.constant 0 : i32
    %c0_i32_0 = arith.constant 0 : i32
    %c0_i32_1 = arith.constant 0 : i32
    return %c0_i32, %c0_i32_0 : i32, i32
  }
  func.func @transform_2(%arg0: i32) -> (i32, i32) {
    %c0_i32 = arith.constant 0 : i32
    %c0_i32_0 = arith.constant 0 : i32
    %c0_i32_1 = arith.constant 0 : i32
    return %c0_i32, %c0_i32_0 : i32, i32
  }
  func.func @transform_3(%arg0: i32) -> (i32, i32) {
    %c0_i32 = arith.constant 0 : i32
    %c0_i32_0 = arith.constant 0 : i32
    %c0_i32_1 = arith.constant 0 : i32
    return %c0_i32, %c0_i32_0 : i32, i32
  }
  func.func @transform_4(%arg0: i32) -> (i32, i32) {
    %c0_i32 = arith.constant 0 : i32
    %c0_i32_0 = arith.constant 0 : i32
    %c0_i32_1 = arith.constant 0 : i32
    return %c0_i32, %c0_i32_0 : i32, i32
  }
  func.func @transform_5(%arg0: i32) -> (i32, i32) {
    %c0_i32 = arith.constant 0 : i32
    %c0_i32_0 = arith.constant 0 : i32
    %c0_i32_1 = arith.constant 0 : i32
    return %c0_i32, %c0_i32_0 : i32, i32
  }
  func.func @transform_6(%arg0: i32) -> (i32, i32) {
    %c0_i32 = arith.constant 0 : i32
    %c0_i32_0 = arith.constant 0 : i32
    %c0_i32_1 = arith.constant 0 : i32
    return %c0_i32, %c0_i32_0 : i32, i32
  }
  func.func @transform_7(%arg0: i32) -> (i32, i32) {
    %c0_i32 = arith.constant 0 : i32
    %c0_i32_0 = arith.constant 0 : i32
    %c0_i32_1 = arith.constant 0 : i32
    return %c0_i32, %c0_i32_0 : i32, i32
  }
  func.func @transform_8(%arg0: i32) -> (i32, i32) {
    %c0_i32 = arith.constant 0 : i32
    %c0_i32_0 = arith.constant 0 : i32
    %c0_i32_1 = arith.constant 0 : i32
    return %c0_i32, %c0_i32_0 : i32, i32
  }
  func.func @transform_9(%arg0: i32) -> (i32, i32) {
    %c0_i32 = arith.constant 0 : i32
    %c0_i32_0 = arith.constant 0 : i32
    %c0_i32_1 = arith.constant 0 : i32
    return %c0_i32, %c0_i32_0 : i32, i32
  }
  func.func @transform_10(%arg0: i32) -> (i32, i32) {
    %c0_i32 = arith.constant 0 : i32
    %c0_i32_0 = arith.constant 0 : i32
    %c0_i32_1 = arith.constant 0 : i32
    return %c0_i32, %c0_i32_0 : i32, i32
  }
  func.func @transform_11(%arg0: i32) -> (i32, i32) {
    %c0_i32 = arith.constant 0 : i32
    %c0_i32_0 = arith.constant 0 : i32
    %c0_i32_1 = arith.constant 0 : i32
    return %c0_i32, %c0_i32_0 : i32, i32
  }
  func.func @transform_12(%arg0: i32) -> (i32, i32) {
    %c0_i32 = arith.constant 0 : i32
    %c0_i32_0 = arith.constant 0 : i32
    %c0_i32_1 = arith.constant 0 : i32
    return %c0_i32, %c0_i32_0 : i32, i32
  }
  func.func @transform_13(%arg0: i32) -> (i32, i32) {
    %c0_i32 = arith.constant 0 : i32
    %c0_i32_0 = arith.constant 0 : i32
    %c0_i32_1 = arith.constant 0 : i32
    return %c0_i32, %c0_i32_0 : i32, i32
  }
  func.func @transform_14(%arg0: i32) -> (i32, i32) {
    %c0_i32 = arith.constant 0 : i32
    %c0_i32_0 = arith.constant 0 : i32
    %c0_i32_1 = arith.constant 0 : i32
    return %c0_i32, %c0_i32_0 : i32, i32
  }
  func.func @transform_15(%arg0: i32) -> (i32, i32) {
    %c0_i32 = arith.constant 0 : i32
    %c0_i32_0 = arith.constant 0 : i32
    %c0_i32_1 = arith.constant 0 : i32
    return %c0_i32, %c0_i32_0 : i32, i32
  }
  func.func @transform_16(%arg0: i32) -> (i32, i32) {
    %c0_i32 = arith.constant 0 : i32
    %c0_i32_0 = arith.constant 0 : i32
    %c0_i32_1 = arith.constant 0 : i32
    return %c0_i32, %c0_i32_0 : i32, i32
  }
  func.func @transform_17(%arg0: i32) -> (i32, i32) {
    %c0_i32 = arith.constant 0 : i32
    %c0_i32_0 = arith.constant 0 : i32
    %c0_i32_1 = arith.constant 0 : i32
    return %c0_i32, %c0_i32_0 : i32, i32
  }
  func.func @transform_18(%arg0: i32) -> (i32, i32) {
    %c0_i32 = arith.constant 0 : i32
    %c0_i32_0 = arith.constant 0 : i32
    %c0_i32_1 = arith.constant 0 : i32
    return %c0_i32, %c0_i32_0 : i32, i32
  }
  func.func @transform_19(%arg0: i32) -> (i32, i32, i32) {
    %c0_i32 = arith.constant 0 : i32
    %c0_i32_0 = arith.constant 0 : i32
    %c0_i32_1 = arith.constant 0 : i32
    return %c0_i32, %arg0, %c0_i32_0 : i32, i32, i32
  }
}

</mosaic_0001>

<bundles_post_ra>
// kernel: tpu_custom_call.1
= control target key start
LH: loop header
LB: loop body
LE: loop exit
PB: predicated region body
PF: predicated region fallthrough
CT: control target
= control target key end

     0   :  { %s7228_s0 = inlined_call_operand.hbm [shape: f32[3,16,128], index: 0, kind: input, shape index: {}]   ;;  %s7229_s1 = inlined_call_operand.hbm [shape: bf16[128,128], index: 1, kind: input, shape index: {}]   ;;  %s7230_s2 = inlined_call_operand.vmem [shape: f32[1,128], index: 2, kind: input, shape index: {}]   ;;  %s7231_s3 = inlined_call_operand.hbm [shape: bf16[128,128], index: 3, kind: input, shape index: {}]   ;;  %s7232_s4 = inlined_call_operand.vmem [shape: f32[1,128], index: 4, kind: input, shape index: {}]   ;;  %s7233_s5 = inlined_call_operand.hbm [shape: bf16[128,128], index: 5, kind: input, shape index: {}]   ;;  %s7234_s6 = inlined_call_operand.vmem [shape: f32[1,128], index: 6, kind: input, shape index: {}]   ;;  %s7235_s7 = inlined_call_operand.hbm [shape: bf16[128,128], index: 7, kind: input, shape index: {}]   ;;  %s7236_s8 = inlined_call_operand.vmem [shape: f32[1,128], index: 8, kind: input, shape index: {}]   ;;  %s7237_s9 = inlined_call_operand.hbm [shape: bf16[128,128], index: 9, kind: input, shape index: {}]   ;;  %s7238_s10 = inlined_call_operand.vmem [shape: f32[1,128], index: 10, kind: input, shape index: {}]   ;;  %s7239_s11 = inlined_call_operand.hbm [shape: bf16[128,128], index: 11, kind: input, shape index: {}]   ;;  %s7240_s12 = inlined_call_operand.vmem [shape: f32[1,128], index: 12, kind: input, shape index: {}]   ;;  %s7241_s13 = inlined_call_operand.hbm [shape: bf16[128,128], index: 13, kind: input, shape index: {}]   ;;  %s7242_s14 = inlined_call_operand.vmem [shape: f32[1,128], index: 14, kind: input, shape index: {}]   ;;  %s7243_s15 = inlined_call_operand.hbm [shape: bf16[128,128], index: 15, kind: input, shape index: {}]   ;;  %s7244_s16 = inlined_call_operand.vmem [shape: f32[1,128], index: 16, kind: input, shape index: {}]   ;;  %s7245_s17 = inlined_call_operand.vmem [shape: f32[3,15], index: 17, kind: input, shape index: {}]   ;;  %s7246_s18 = inlined_call_operand.vmem [shape: f32[1,3], index: 18, kind: input, shape index: {}]   ;;  %s7247_s19 = inlined_call_operand.hbm [shape: f32[3,16,128], index: 19, kind: output, shape index: {}]  }
   0x1   :  { %7283 = sst [smem:[#allocation42_spill]] %s7228_s0 }
   0x2   :  { %7284 = sst [smem:[#allocation43_spill]] %s7229_s1 }
   0x3   :  { %7285 = sst [smem:[#allocation44_spill]] %s7230_s2 }
   0x4   :  { %7286 = sst [smem:[#allocation45_spill]] %s7231_s3 }
   0x5   :  { %7287 = sst [smem:[#allocation46_spill]] %s7232_s4 }
   0x6   :  { %7288 = sst [smem:[#allocation47_spill]] %s7233_s5 }
   0x7   :  { %7289 = sst [smem:[#allocation48_spill]] %s7234_s6 }
   0x8   :  { %7290 = sst [smem:[#allocation49_spill]] %s7235_s7 }
   0x9   :  { %7291 = sst [smem:[#allocation50_spill]] %s7236_s8 }
   0xa   :  { %7292 = sst [smem:[#allocation51_spill]] %s7237_s9 }
   0xb   :  { %7293 = sst [smem:[#allocation52_spill]] %s7238_s10 }
   0xc   :  { %7294 = sst [smem:[#allocation53_spill]] %s7239_s11 }
   0xd   :  { %7295 = sst [smem:[#allocation54_spill]] %s7240_s12 }
   0xe   :  { %7296 = sst [smem:[#allocation55_spill]] %s7241_s13 }
   0xf   :  { %7297 = sst [smem:[#allocation56_spill]] %s7242_s14 }
  0x10   :  { %7298 = sst [smem:[#allocation57_spill]] %s7243_s15 }
  0x11   :  { %7299 = sst [smem:[#allocation58_spill]] %s7244_s16 }
  0x12   :  { %7300 = sst [smem:[#allocation59_spill]] %s7245_s17 }
  0x13   :  { %7301 = sst [smem:[#allocation60_spill]] %s7247_s19 }
  0x14   :  { %24 = vsyncpa [#allocation3], 0 }
  0x15   :  { %26 = vsyncpa [#allocation3 + $0x1], 0 }
  0x16   :  { %27 = vsyncpa [#allocation7], 0 }
  0x17   :  { %28 = vsyncpa [#allocation10], 0 }
  0x18   :  { %29 = vsyncpa [#allocation13], 0 }
  0x19   :  { %30 = vsyncpa [#allocation16], 0 }
  0x1a   :  { %31 = vsyncpa [#allocation5], 0 }
  0x1b   :  { %32 = vsyncpa [#allocation20], 0 }
  0x1c   :  { %33 = vsyncpa [#allocation4], 0 }
  0x1d   :  { %35 = vsyncpa [#allocation4 + $0x1], 0  ;;  %s5635_s0 = smov 0   ;;  %s5637_s30 = smov 0  }
  0x1e   :  { %s5639_s20 = smov 0   ;;  %s5641_s21 = smov 0  }
  0x1f LB: > { %s5513_s1 = smov [#allocation6]   ;;  %s5656_s2 = sadd.s32 4294967295, %s5511_s21   ;;  %s5511_s21 = sphi %s5641_s21, %s7373_s21   ;;  %s5507_s20 = sphi %s5639_s20, %s7372_s20   ;;  %s5503_s30 = sphi %s5637_s30, %s7371_s30   ;;  %s5499_s0 = sphi %s5635_s0, %s7370_s0  }
  0x20   : > { %s488_s22 = sshll.u32 %s5513_s1, 4  ;;  %p3474_p0 = scmp.ge.s32.totalorder %s5511_s21, 1  ;;  %s5661_s22 = int_to_ptr.vmem [resolvable:$true] %s488_s22 }
  0x21   : > { %p7260_p1 = scmp.eq.s32.totalorder %s5656_s2, 0  ;;  %p476_p2 = scmp.lt.s32.totalorder %s5511_s21, 3 }
  0x22   : > { %s5514_s24 = smov [#allocation9]   ;;  %s5515_s26 = smov [#allocation12]  }
  0x23   : > { %p5663_p3 = pnand %p3474_p0, %p476_p2  ;;  %s520_s25 = sshll.u32 %s5514_s24, 4  ;;  %s5676_s25 = int_to_ptr.vmem [resolvable:$true] %s520_s25 }
  0x24   : > { %s552_s27 = sshll.u32 %s5515_s26, 4  ;;  %s7304_s1 = sld [smem:[#allocation43_spill]]  ;;  %s5678_s27 = int_to_ptr.vmem [resolvable:$true] %s552_s27 }
  0x25   : > { %s7302_s23 = scalar_select %p5663_p3, 1, 0 }
  0x26   : > { %p4887_p5 = pneg %p5663_p3 }
  0x28   : > { %p5672_p6 = pnand %p4887_p5, %p7260_p1 }
  0x2a   : > { %s5137_s19 = scalar_lea.hbm %s7304_s1, 1024  ;;  %p5688_p8 = pneg %p5672_p6 }
  0x2b   : > { %p5138_p7 = scmp.ne.s32.totalorder %s7304_s1, %s5137_s19  ;;  %p5144_p11 = scmp.lt.u32.totalorder %s5137_s19, %s7304_s1 }
  0x2d   : > { %p5140_p9 = pnand %p5688_p8, %p5138_p7 }
  0x2f   : > { %p5141_p10 = pneg %p5140_p9 }
  0x31   : > { %p5146_p12 = pnand %p5144_p11, %p5141_p10 }
  0x33   : > { %5149 = shalt.err (!%p5146_p12)
}
  0x34   : > { %s5150_s14 = scalar_lea.vmem %s5661_s22, 1024  ;;  %p5158_p5 = scmp.lt.s32.totalorder %s5661_s22, %s5661_s22 }
  0x35   : > { %p5151_p13 = scmp.ne.s32.totalorder %s5661_s22, %s5150_s14  ;;  %p5159_p4 = scmp.lt.s32.totalorder %s5150_s14, %s5150_s14 }
  0x37   : > { %p5153_p0 = pnand %p5151_p13, %p5688_p8  ;;  %p5160_p7 = por %p5159_p4, %p5158_p5 }
  0x39   : > { %p5154_p2 = pneg %p5153_p0 }
  0x3b   : > { %p5161_p9 = pnand %p5160_p7, %p5154_p2 }
  0x3d   : > { %5164 = shalt.err (!%p5161_p9)
}
  0x3e   : > { %s5516_s16 = smov 64   ;;  %s5517_s12 = smov 4  }
  0x3f   : > { %4890 = dma.hbm_to_vmem [thread:$0]  (!%p5672_p6), %s7304_s1, 1024, %s5661_s22, [#allocation7], %s5516_s16, %s5516_s16, %s5517_s12  }
  0x40   : > { %s7306_s5 = sld [smem:[#allocation47_spill]] }
  0x46   : > { %s5165_s14 = scalar_lea.hbm %s7306_s5, 1024 }
  0x47   : > { %p5166_p4 = scmp.ne.s32.totalorder %s7306_s5, %s5165_s14  ;;  %p5172_p12 = scmp.lt.u32.totalorder %s5165_s14, %s7306_s5 }
  0x49   : > { %p5168_p10 = pnand %p5166_p4, %p5688_p8 }
  0x4b   : > { %p5169_p11 = pneg %p5168_p10 }
  0x4d   : > { %p5174_p13 = pnand %p5172_p12, %p5169_p11 }
  0x4f   : > { %5177 = shalt.err (!%p5174_p13)
}
  0x50   : > { %s5178_s22 = scalar_lea.vmem %s5676_s25, 1024  ;;  %p5186_p7 = scmp.lt.s32.totalorder %s5676_s25, %s5676_s25 }
  0x51   : > { %p5179_p0 = scmp.ne.s32.totalorder %s5676_s25, %s5178_s22  ;;  %p5187_p9 = scmp.lt.s32.totalorder %s5178_s22, %s5178_s22 }
  0x53   : > { %p5181_p2 = pnand %p5179_p0, %p5688_p8  ;;  %p5188_p4 = por %p5187_p9, %p5186_p7 }
  0x55   : > { %p5182_p5 = pneg %p5181_p2 }
  0x57   : > { %p5189_p10 = pnand %p5188_p4, %p5182_p5 }
  0x59   : > { %5192 = shalt.err (!%p5189_p10)
}
  0x5a   : > { %4896 = dma.hbm_to_vmem [thread:$0]  (!%p5672_p6), %s7306_s5, 1024, %s5676_s25, [#allocation10], %s5516_s16, %s5516_s16, %s5517_s12  }
  0x5b   : > { %s7307_s9 = sld [smem:[#allocation51_spill]] }
  0x61   : > { %s5193_s19 = scalar_lea.hbm %s7307_s9, 1024 }
  0x62   : > { %p5194_p11 = scmp.ne.s32.totalorder %s7307_s9, %s5193_s19  ;;  %p5200_p0 = scmp.lt.u32.totalorder %s5193_s19, %s7307_s9 }
  0x64   : > { %p5196_p12 = pnand %p5194_p11, %p5688_p8 }
  0x66   : > { %p5197_p13 = pneg %p5196_p12 }
  0x68   : > { %p5202_p2 = pnand %p5200_p0, %p5197_p13 }
  0x6a   : > { %5205 = shalt.err (!%p5202_p2)
}
  0x6b   : > { %s5206_s25 = scalar_lea.vmem %s5678_s27, 1024  ;;  %p5214_p4 = scmp.lt.s32.totalorder %s5678_s27, %s5678_s27 }
  0x6c   : > { %p5207_p5 = scmp.ne.s32.totalorder %s5678_s27, %s5206_s25  ;;  %p5215_p10 = scmp.lt.s32.totalorder %s5206_s25, %s5206_s25 }
  0x6e   : > { %p5209_p7 = pnand %p5207_p5, %p5688_p8  ;;  %p5216_p11 = por %p5215_p10, %p5214_p4 }
  0x70   : > { %p5210_p9 = pneg %p5209_p7 }
  0x72   : > { %p5217_p12 = pnand %p5216_p11, %p5210_p9 }
  0x74   : > { %5220 = shalt.err (!%p5217_p12)
}
  0x75   : > { %4902 = dma.hbm_to_vmem [thread:$0]  (!%p5672_p6), %s7307_s9, 1024, %s5678_s27, [#allocation13], %s5516_s16, %s5516_s16, %s5517_s12  }
  0x76   : > { %s5518_s6 = smov [#allocation15]   ;;  %s5519_s10 = smov [#allocation8]  }
  0x77   : > { %s584_s8 = sshll.u32 %s5518_s6, 4  ;;  %s504_s19 = sshll.u32 %s5519_s10, 4  ;;  %s585_s8 = int_to_ptr.vmem [resolvable:$true] %s584_s8  ;;  %s505_s19 = int_to_ptr.vmem [resolvable:$true] %s504_s19 }
  0x78   : > { %s7308_s13 = sld [smem:[#allocation55_spill]] }
  0x7e   : > { %s5221_s26 = scalar_lea.hbm %s7308_s13, 1024 }
  0x7f   : > { %p5222_p13 = scmp.ne.s32.totalorder %s7308_s13, %s5221_s26  ;;  %p5228_p5 = scmp.lt.u32.totalorder %s5221_s26, %s7308_s13 }
  0x81   : > { %p5224_p0 = pnand %p5222_p13, %p5688_p8 }
  0x83   : > { %p5225_p2 = pneg %p5224_p0 }
  0x85   : > { %p5230_p7 = pnand %p5228_p5, %p5225_p2 }
  0x87   : > { %5233 = shalt.err (!%p5230_p7)
}
  0x88   : > { %s5234_s27 = scalar_lea.vmem %s585_s8, 1024  ;;  %p5242_p11 = scmp.lt.s32.totalorder %s585_s8, %s585_s8 }
  0x89   : > { %p5235_p9 = scmp.ne.s32.totalorder %s585_s8, %s5234_s27  ;;  %p5243_p12 = scmp.lt.s32.totalorder %s5234_s27, %s5234_s27 }
  0x8b   : > { %p5237_p4 = pnand %p5235_p9, %p5688_p8  ;;  %p5244_p1 = por %p5243_p12, %p5242_p11 }
  0x8d   : > { %p5238_p10 = pneg %p5237_p4 }
  0x8f   : > { %p5245_p3 = pnand %p5244_p1, %p5238_p10 }
  0x91   : > { %5248 = shalt.err (!%p5245_p3)
}
  0x92   : > { %4908 = dma.hbm_to_vmem [thread:$0]  (!%p5672_p6), %s7308_s13, 1024, %s585_s8, [#allocation16], %s5516_s16, %s5516_s16, %s5517_s12  }
  0x93   : > { %s7309_s28 = sld [smem:[#allocation45_spill]] }
  0x99   : > { %s5249_s29 = scalar_lea.hbm %s7309_s28, 1024 }
  0x9a   : > { %p5250_p1 = scmp.ne.s32.totalorder %s7309_s28, %s5249_s29  ;;  %p5256_p0 = scmp.lt.u32.totalorder %s5249_s29, %s7309_s28 }
  0x9c   : > { %p5252_p3 = pnand %p5250_p1, %p5688_p8 }
  0x9e   : > { %p5253_p13 = pneg %p5252_p3 }
  0xa0   : > { %p5258_p2 = pnand %p5256_p0, %p5253_p13 }
  0xa2   : > { %5261 = shalt.err (!%p5258_p2)
}
  0xa3   : > { %s5262_s27 = scalar_lea.vmem %s505_s19, 1024  ;;  %p5270_p4 = scmp.lt.s32.totalorder %s505_s19, %s505_s19 }
  0xa4   : > { %p5263_p5 = scmp.ne.s32.totalorder %s505_s19, %s5262_s27  ;;  %p5271_p10 = scmp.lt.s32.totalorder %s5262_s27, %s5262_s27 }
  0xa6   : > { %p5265_p7 = pnand %p5263_p5, %p5688_p8  ;;  %p5272_p11 = por %p5271_p10, %p5270_p4 }
  0xa8   : > { %p5266_p9 = pneg %p5265_p7 }
  0xaa   : > { %p5273_p12 = pnand %p5272_p11, %p5266_p9 }
  0xac   : > { %5276 = shalt.err (!%p5273_p12)
}
  0xad   : > { %4893 = dma.hbm_to_vmem [thread:$0]  (!%p5672_p6), %s7309_s28, 1024, %s505_s19, [#allocation7], %s5516_s16, %s5516_s16, %s5517_s12  }
  0xae   : > { %s5520_s4 = smov [#allocation11]   ;;  %s5521_s10 = smov [#allocation14]  }
  0xaf   : > { %s536_s6 = sshll.u32 %s5520_s4, 4  ;;  %s568_s29 = sshll.u32 %s5521_s10, 4  ;;  %s537_s6 = int_to_ptr.vmem [resolvable:$true] %s536_s6  ;;  %s569_s29 = int_to_ptr.vmem [resolvable:$true] %s568_s29 }
  0xb0   : > { %s7310_s7 = sld [smem:[#allocation49_spill]] }
  0xb6   : > { %s5277_s25 = scalar_lea.hbm %s7310_s7, 1024 }
  0xb7   : > { %p5278_p1 = scmp.ne.s32.totalorder %s7310_s7, %s5277_s25  ;;  %p5284_p0 = scmp.lt.u32.totalorder %s5277_s25, %s7310_s7 }
  0xb9   : > { %p5280_p3 = pnand %p5278_p1, %p5688_p8 }
  0xbb   : > { %p5281_p13 = pneg %p5280_p3 }
  0xbd   : > { %p5286_p2 = pnand %p5284_p0, %p5281_p13 }
  0xbf   : > { %5289 = shalt.err (!%p5286_p2)
}
  0xc0   : > { %s5290_s19 = scalar_lea.vmem %s537_s6, 1024  ;;  %p5298_p4 = scmp.lt.s32.totalorder %s537_s6, %s537_s6 }
  0xc1   : > { %p5291_p5 = scmp.ne.s32.totalorder %s537_s6, %s5290_s19  ;;  %p5299_p10 = scmp.lt.s32.totalorder %s5290_s19, %s5290_s19 }
  0xc3   : > { %p5293_p7 = pnand %p5291_p5, %p5688_p8  ;;  %p5300_p11 = por %p5299_p10, %p5298_p4 }
  0xc5   : > { %p5294_p9 = pneg %p5293_p7 }
  0xc7   : > { %p5301_p12 = pnand %p5300_p11, %p5294_p9 }
  0xc9   : > { %5304 = shalt.err (!%p5301_p12)
}
  0xca   : > { %4899 = dma.hbm_to_vmem [thread:$0]  (!%p5672_p6), %s7310_s7, 1024, %s537_s6, [#allocation10], %s5516_s16, %s5516_s16, %s5517_s12  }
  0xcb   : > { %s7311_s11 = sld [smem:[#allocation53_spill]] }
  0xd1   : > { %s5305_s26 = scalar_lea.hbm %s7311_s11, 1024 }
  0xd2   : > { %p5306_p1 = scmp.ne.s32.totalorder %s7311_s11, %s5305_s26  ;;  %p5312_p0 = scmp.lt.u32.totalorder %s5305_s26, %s7311_s11 }
  0xd4   : > { %p5308_p3 = pnand %p5306_p1, %p5688_p8 }
  0xd6   : > { %p5309_p13 = pneg %p5308_p3 }
  0xd8   : > { %p5314_p2 = pnand %p5312_p0, %p5309_p13 }
  0xda   : > { %5317 = shalt.err (!%p5314_p2)
}
  0xdb   : > { %s5318_s8 = scalar_lea.vmem %s569_s29, 1024  ;;  %p5326_p4 = scmp.lt.s32.totalorder %s569_s29, %s569_s29 }
  0xdc   : > { %p5319_p5 = scmp.ne.s32.totalorder %s569_s29, %s5318_s8  ;;  %p5327_p10 = scmp.lt.s32.totalorder %s5318_s8, %s5318_s8 }
  0xde   : > { %p5321_p7 = pnand %p5319_p5, %p5688_p8  ;;  %p5328_p11 = por %p5327_p10, %p5326_p4 }
  0xe0   : > { %p5322_p9 = pneg %p5321_p7 }
  0xe2   : > { %p5329_p12 = pnand %p5328_p11, %p5322_p9 }
  0xe4   : > { %5332 = shalt.err (!%p5329_p12)
}
  0xe5   : > { %4905 = dma.hbm_to_vmem [thread:$0]  (!%p5672_p6), %s7311_s11, 1024, %s569_s29, [#allocation13], %s5516_s16, %s5516_s16, %s5517_s12  }
  0xe6   : > { %s5522_s5 = smov [#allocation17]   ;;  %s7312_s17 = sld [smem:[#allocation59_spill]] }
  0xe7   : > { %s600_s1 = sshll.u32 %s5522_s5, 4  ;;  %s7313_s15 = sld [smem:[#allocation57_spill]]  ;;  %s601_s1 = int_to_ptr.vmem [resolvable:$true] %s600_s1 }
  0xec   : > { %s617_s26 = sshll.u32 %s7312_s17, 4  ;;  %s5851_s26 = int_to_ptr.vmem [resolvable:$true] %s617_s26 }
  0xed   : > { %s5333_s22 = scalar_lea.hbm %s7313_s15, 1024 }
  0xee   : > { %p5334_p1 = scmp.ne.s32.totalorder %s7313_s15, %s5333_s22  ;;  %p5340_p0 = scmp.lt.u32.totalorder %s5333_s22, %s7313_s15 }
  0xf0   : > { %p5336_p3 = pnand %p5334_p1, %p5688_p8 }
  0xf2   : > { %p5337_p13 = pneg %p5336_p3 }
  0xf4   : > { %p5342_p2 = pnand %p5340_p0, %p5337_p13 }
  0xf6   : > { %5345 = shalt.err (!%p5342_p2)
}
  0xf7   : > { %s5346_s19 = scalar_lea.vmem %s601_s1, 1024  ;;  %p5354_p4 = scmp.lt.s32.totalorder %s601_s1, %s601_s1 }
  0xf8   : > { %p5347_p5 = scmp.ne.s32.totalorder %s601_s1, %s5346_s19  ;;  %p5355_p10 = scmp.lt.s32.totalorder %s5346_s19, %s5346_s19 }
  0xfa   : > { %p5349_p7 = pnand %p5347_p5, %p5688_p8  ;;  %p5356_p11 = por %p5355_p10, %p5354_p4 }
  0xfc   : > { %p5350_p9 = pneg %p5349_p7 }
  0xfe   : > { %p5357_p12 = pnand %p5356_p11, %p5350_p9 }
 0x100   : > { %5360 = shalt.err (!%p5357_p12)
}
 0x101   : > { %4911 = dma.hbm_to_vmem [thread:$0]  (!%p5672_p6), %s7313_s15, 1024, %s601_s1, [#allocation16], %s5516_s16, %s5516_s16, %s5517_s12  }
 0x102   : > { %s628_s25 = sshll.u32 %s7246_s18, 4  ;;  %s5361_s22 = scalar_lea.vmem %s5851_s26, 64  ;;  %s629_s25 = int_to_ptr.vmem [resolvable:$true] %s628_s25 }
 0x103   : > { %p5362_p1 = scmp.ne.s32.totalorder %s5851_s26, %s5361_s22  ;;  %p5369_p0 = scmp.lt.s32.totalorder %s5851_s26, %s5851_s26 }
 0x104   : > { %p5370_p2 = scmp.lt.s32.totalorder %s5361_s22, %s5361_s22 }
 0x105   : > { %p5364_p3 = pnand %p5362_p1, %p5688_p8 }
 0x106   : > { %p5371_p5 = por %p5370_p2, %p5369_p0 }
 0x107   : > { %p5365_p13 = pneg %p5364_p3 }
 0x109   : > { %p5372_p7 = pnand %p5371_p5, %p5365_p13 }
 0x10b   : > { %5375 = shalt.err (!%p5372_p7)
}
 0x10c   : > { %s5523_s27 = smov [#allocation18]   ;;  %s5376_s16 = scalar_lea.vmem %s629_s25, 16 }
 0x10d   : > { %4914 = dma.vmem_to_smem (!%p5672_p6), %s5851_s26, 64, %s5523_s27, [#allocation5]  }
 0x10e   : > { %p5377_p9 = scmp.ne.s32.totalorder %s629_s25, %s5376_s16  ;;  %p5384_p11 = scmp.lt.s32.totalorder %s629_s25, %s629_s25 }
 0x10f   : > { %p5385_p12 = scmp.lt.s32.totalorder %s5376_s16, %s5376_s16 }
 0x110   : > { %p5379_p4 = pnand %p5377_p9, %p5688_p8 }
 0x111   : > { %p5386_p1 = por %p5385_p12, %p5384_p11 }
 0x112   : > { %p5380_p10 = pneg %p5379_p4 }
 0x114   : > { %p5387_p3 = pnand %p5386_p1, %p5380_p10 }
 0x116   : > { %5390 = shalt.err (!%p5387_p3)
}
 0x117   : > { %s5524_s12 = smov [#allocation19]   ;;  %s3473_s24 = sadd.s32 4294967294, %s5511_s21  }
 0x118   : > { %4917 = dma.vmem_to_smem (!%p5672_p6), %s629_s25, 16, %s5524_s12, [#allocation20]  }
 0x119   : > { %s5892_s1 = sadd.s32 1, %s5511_s21   ;;  %s48_s26 = sadd.s32 1, %s5507_s20 }
 0x11a   : > { %s45_s3 = ssub.s32 %s5511_s21, %s5892_s1  ;;  %p55_p13 = scmp.ne.s32.totalorder %s5507_s20, %s5503_s30 }
 0x11b   : > { %p46_p8 = scmp.eq.s32.totalorder %s45_s3, 0  ;;  %p56_p0 = scmp.eq.s32.totalorder %s5511_s21, 0 }
 0x11c   : > { %p61_p2 = scmp.ne.s32.totalorder %s5503_s30, %s5499_s0  ;;  %p7314_p7 = scmp.eq.s32.totalorder %s5656_s2, 0 }
 0x11d   : > { %s5903_s8 = scalar_select %p46_p8, %s5507_s20, %s48_s26  }
 0x11e   : > { %p57_p5 = por %p56_p0, %p55_p13  ;;  %p5907_p9 = por %p7314_p7, %p61_p2 }
 0x11f   : > { %p463_p6 = scmp.eq.s32.totalorder %s5656_s2, 1  ;;  %p469_p4 = scmp.eq.s32.totalorder %s3473_s24, 1 }
 0x120   : > { %p4936_p10 = scmp.lt.s32.totalorder %s5511_s21, 2  ;;  %s639_s6 = sand.u32 1, %s5507_s20  }
 0x121   : > { %p5914_p11 = por %p463_p6, %p55_p13  ;;  %p5918_p12 = por %p469_p4, %p61_p2 }
 0x122   : > { %s4841_s4 = smul.u32 24, %s639_s6  ;;  %s3486_s10 = sshll.u32 %s5511_s21, 7 }
 0x123   : > { %s7316_s19 = scalar_select %p5914_p11, 1, 0 }
 0x124   : > { %s7317_s5 = scalar_select %p5918_p12, 1, 0 }
 0x125   : > { %p5923_p1 = pnand %p4936_p10, %p57_p5  ;;  %s7319_s27 = sld [smem:[#allocation42_spill]] }
 0x126   : > { %s643_s12 = scalar_lea.vmem [#allocation2], %s4841_s4  ;;  %s5934_s3 = scalar_lea.sflag [#allocation3], %s639_s6 }
 0x127   : > { %s649_s24 = sshll.u32 %s643_s12, 4  ;;  %p5393_p8 = pneg %p5923_p1  ;;  %s5932_s24 = int_to_ptr.vmem [resolvable:$true] %s649_s24 }
 0x12b   : > { %s5930_s16 = scalar_lea.hbm %s7319_s27, %s3486_s10  ;;  %s5396_s22 = scalar_lea.hbm %s7319_s27, 768 }
 0x12c   : > { %s5391_s26 = scalar_lea.hbm %s5930_s16, 384  ;;  %p5397_p2 = scmp.lt.u32.totalorder %s5930_s16, %s7319_s27 }
 0x12d   : > { %p5392_p3 = scmp.ne.s32.totalorder %s5930_s16, %s5391_s26  ;;  %p5398_p5 = scmp.lt.u32.totalorder %s5396_s22, %s5391_s26 }
 0x12e   : > { %p5400_p6 = scmp.lt.u32.totalorder %s5391_s26, %s5930_s16 }
 0x12f   : > { %p5394_p13 = pnand %p5393_p8, %p5392_p3  ;;  %p5399_p7 = por %p5398_p5, %p5397_p2 }
 0x131   : > { %p5395_p0 = pneg %p5394_p13  ;;  %p5401_p4 = por %p5400_p6, %p5399_p7 }
 0x133   : > { %p5402_p10 = pnand %p5401_p4, %p5395_p0 }
 0x135   : > { %5405 = shalt.err (!%p5402_p10)
}
 0x136   : > { %s5406_s6 = scalar_lea.vmem %s5932_s24, 384  ;;  %s5525_s4 = smov [#allocation2]  }
 0x137   : > { %p5407_p3 = scmp.ne.s32.totalorder %s5932_s24, %s5406_s6  ;;  %s5411_s12 = sshll.u32 %s5525_s4, 4  ;;  %s5412_s12 = int_to_ptr.vmem [resolvable:$false] %s5411_s12 }
 0x138   : > { %s5413_s7 = scalar_lea.vmem %s5412_s12, 768  ;;  %p5414_p11 = scmp.lt.s32.totalorder %s5932_s24, %s5412_s12 }
 0x139   : > { %p5409_p13 = pnand %p5407_p3, %p5393_p8  ;;  %p5415_p2 = scmp.lt.s32.totalorder %s5413_s7, %s5406_s6 }
 0x13b   : > { %p5410_p12 = pneg %p5409_p13  ;;  %p5416_p5 = por %p5415_p2, %p5414_p11 }
 0x13d   : > { %p5417_p7 = pnand %p5416_p5, %p5410_p12 }
 0x13f   : > { %5420 = shalt.err (!%p5417_p7)
}
 0x140   : > { %s5526_s9 = smov 256   ;;  %s5527_s26 = smov 128  }
 0x141   : > { %s5528_s10 = smov 8   ;;  %p7320_p8 = scmp.ne.s32.totalorder %s7302_s23, 0 }
 0x142   : > { %4921 = dma.hbm_to_vmem [thread:$0]  (!%p5923_p1), %s5930_s16, 384, %s5932_s24, %s5934_s3, %s5526_s9, %s5527_s26, %s5528_s10  }
 0x143   : > { %661 = sbr.rel (%p7320_p8) target bundleno = 6128 (0x17f0), region = 96 }
 0x14a   : > { %s5965_s25 = sand.u32 1, %s5503_s30  }
 0x14b   : > { %s7276_s22 = smul.u32 24, %s5965_s25  ;;  %s664_s6 = scalar_lea.sflag [#allocation3], %s5965_s25 }
 0x14d   : > { %s5971_s4 = scalar_lea.vmem [#allocation2], %s7276_s22 }
 0x14e   : > { %5466 = dma.done.wait (%p5907_p9), %s664_s6, 384  }
 0x14f   : > { %5468 = vsyncadd (%p5907_p9), %s664_s6, 4294966912  ;;  %p7321_p11 = scmp.eq.s32.totalorder %s5656_s2, 0 }
 0x151   : > { %5470 = dma.done.wait (%p7321_p11), [#allocation7], 2048   ;;  %p7322_p12 = pmov %p7321_p11 }
 0x152   : > { %p7323_p1 = pmov %p7321_p11 }
 0x153   : > { %5472 = vsyncadd (%p7322_p12), [#allocation7], 4294965248 }
 0x154   : > { %5474 = dma.done.wait (%p7323_p1), [#allocation10], 2048   ;;  %p7324_p0 = pmov %p7323_p1 }
 0x156   : > { %5476 = vsyncadd (%p7324_p0), [#allocation10], 4294965248  ;;  %p7325_p6 = pmov %p7324_p0 }
 0x157   : > { %p7326_p4 = pmov %p7324_p0 }
 0x158   : > { %5478 = dma.done.wait (%p7325_p6), [#allocation13], 2048  }
 0x159   : > { %5480 = vsyncadd (%p7326_p4), [#allocation13], 4294965248  ;;  %p7327_p9 = pmov %p7324_p0 }
 0x15a   : > { %p7328_p10 = pmov %p7324_p0 }
 0x15b   : > { %5482 = dma.done.wait (%p7327_p9), [#allocation16], 2048  }
 0x15c   : > { %5484 = vsyncadd (%p7328_p10), [#allocation16], 4294965248  ;;  %p7329_p3 = pmov %p7324_p0 }
 0x15d   : > { %p7330_p13 = pmov %p7324_p0 }
 0x15e   : > { %5486 = dma.done.wait (%p7329_p3), [#allocation5], 64  }
 0x15f   : > { %5488 = vsyncadd (%p7330_p13), [#allocation5], 4294967232  ;;  %p7331_p2 = pmov %p7324_p0 }
 0x160   : > { %p7332_p5 = pmov %p7324_p0 }
 0x161   : > { %5490 = dma.done.wait (%p7331_p2), [#allocation20], 16  }
 0x162   : > { %5492 = vsyncadd (%p7332_p5), [#allocation20], 4294967280 }
 0x163   : > { %712 = sfence }
 0x164   : > { %v5000_v0 = vld [vmem:[#allocation6] sm:$0xff]   ;;  %v5529_v1 = vmov 0.0   ;;  %v5001_v2 = vld [vmem:[#allocation6 + $0x8] sm:$0xff]   ;;  %vm5530_vm0 = vmmov 0   ;;  %v5002_v3 = vld [vmem:[#allocation6 + $0x10] sm:$0xff]   ;;  %s7333_s14 = sld [smem:[#allocation44_spill]] }
 0x165   : > { %4001 = vmatprep.subr.bf16.mxu0 %v5529_v1  ;;  %4021 = vmatprep.subr.bf16.mxu1 %v5529_v1  ;;  %v6009_v4 = vld [vmem:[#allocation8] sm:$0xff]   ;;  %v5003_v5 = vld [vmem:[#allocation6 + $0x18] sm:$0xff]   ;;  %v6011_v6 = vld [vmem:[#allocation8 + $0x8] sm:$0xff]   ;;  %s7334_s3 = sld [smem:[#allocation46_spill]]  ;;  %s7341_s9 = sld [smem:[#allocation48_spill]] }
 0x166   : > { %4002 = vmatpush3.bf16.msra.mxu0 %v5000_v0  ;;  %4017 = vmatprep.mubr.msk.bf16.mxu0 %vm5530_vm0, %v5529_v1  ;;  %v5004_v7 = vld [vmem:[#allocation6 + $0x20] sm:$0xff]   ;;  %v6017_v8 = vld [vmem:[#allocation8 + $0x10] sm:$0xff]   ;;  %v6021_v9 = vld [vmem:[#allocation6 + $0x28] sm:$0xff]   ;;  %s7345_s6 = sld [smem:[#allocation50_spill]]  ;;  %s7348_s16 = sld [smem:[#allocation52_spill]] }
 0x167   : > { %4003 = vmatprep.subr.bf16.mxu0 %v5529_v1  ;;  %4037 = vmatprep.mubr.msk.bf16.mxu1 %vm5530_vm0, %v5529_v1  ;;  %v6023_v10 = vld [vmem:[#allocation8 + $0x18] sm:$0xff]   ;;  %v6028_v11 = vld [vmem:[#allocation6 + $0x30] sm:$0xff]   ;;  %v6030_v12 = vld [vmem:[#allocation8 + $0x20] sm:$0xff]   ;;  %s7350_s7 = sld [smem:[#allocation54_spill]]  ;;  %s7351_s23 = sld [smem:[#allocation56_spill]] }
 0x168   : > { %4022 = vmatpush3.bf16.msra.mxu1 %v6009_v4  ;;  %v6036_v13 = vld [vmem:[#allocation6 + $0x38] sm:$0xff]   ;;  %v764_v14 = vld [vmem:[%s5971_s4] sm:$0xff]  ;;  %v6059_v19 = vld [vmem:[#allocation9] sm:$0xff]   ;;  %s3095_s29 = sld [smem:[#allocation18]]  ;;  %s7364_s10 = sld [smem:[#allocation58_spill]] }
 0x169   : > { %4023 = vmatprep.subr.bf16.mxu1 %v5529_v1  ;;  %v6039_v15 = vld [vmem:[#allocation8 + $0x28] sm:$0xff]   ;;  %v765_v16 = vpack.c.bf16 %v764_v14, %v764_v14  ;;  %v6051_v17 = vld [vmem:[#allocation8 + $0x30] sm:$0xff]   ;;  %v6055_v18 = vld [vmem:[#allocation8 + $0x38] sm:$0xff]   ;;  %s3586_s24 = sld [smem:[#allocation18 + $0x80]]  ;;  %s3572_s11 = sld [smem:[#allocation18 + $0x1]] }
 0x16a   : > { %4004 = vmatpush3.bf16.msra.mxu0 %v5001_v2  ;;  %v6062_v20 = vld [vmem:[#allocation9 + $0x8] sm:$0xff]   ;;  %v6066_v21 = vld [vmem:[#allocation9 + $0x10] sm:$0xff]   ;;  %v6070_v22 = vld [vmem:[#allocation9 + $0x18] sm:$0xff]   ;;  %s3603_s22 = sld [smem:[#allocation18 + $0x100]]  ;;  %s3587_s13 = sld [smem:[#allocation18 + $0x81]] }
 0x16b   : > { %4005 = vmatprep.subr.bf16.mxu0 %v5529_v1  ;;  %v6074_v23 = vld [vmem:[#allocation9 + $0x20] sm:$0xff]   ;;  %v6078_v24 = vld [vmem:[#allocation9 + $0x28] sm:$0xff]   ;;  %v6086_v25 = vld [vmem:[%s7333_s14] ss:$0 sm:$0xff]  ;;  %s3604_s15 = sld [smem:[#allocation18 + $0x101]]  ;;  %s3588_s12 = sld [smem:[#allocation18 + $0x82]] }
 0x16c   : > { %4024 = vmatpush3.bf16.msra.mxu1 %v6011_v6  ;;  %v6094_v33 = vld [vmem:[#allocation9 + $0x30] sm:$0xff]   ;;  %v6098_v34 = vld [vmem:[#allocation9 + $0x38] sm:$0xff]   ;;  %v6102_v35 = vld [vmem:[#allocation11] sm:$0xff]   ;;  %s3605_s26 = sld [smem:[#allocation18 + $0x102]]  ;;  %s7118_s17 = sld [smem:[#allocation18 + $0xb]] }
 0x16d   : > { %4025 = vmatprep.subr.bf16.mxu1 %v5529_v1  ;;  %v6105_v36 = vld [vmem:[#allocation11 + $0x8] sm:$0xff]   ;;  %v6109_v37 = vld [vmem:[#allocation11 + $0x10] sm:$0xff]   ;;  %v6113_v38 = vld [vmem:[#allocation11 + $0x18] sm:$0xff]   ;;  %p7367_p8 = scmp.ne.s32.totalorder %s7316_s19, 0 }
 0x16e   : > { %4006 = vmatpush3.bf16.msra.mxu0 %v5002_v3  ;;  %v6117_v39 = vld [vmem:[#allocation11 + $0x20] sm:$0xff]   ;;  %v6121_v40 = vld [vmem:[#allocation11 + $0x28] sm:$0xff]   ;;  %v6129_v41 = vld [vmem:[%s7334_s3] ss:$0 sm:$0xff] }
 0x16f   : > { %4007 = vmatprep.subr.bf16.mxu0 %v5529_v1  ;;  %v6137_v49 = vld [vmem:[#allocation11 + $0x30] sm:$0xff]   ;;  %v6141_v50 = vld [vmem:[#allocation11 + $0x38] sm:$0xff]   ;;  %v6145_v51 = vld [vmem:[#allocation12] sm:$0xff]  }
 0x170   : > { %4026 = vmatpush3.bf16.msra.mxu1 %v6017_v8  ;;  %7335 = vst [vmem:[#allocation30_spill] sm:$0xff] %v6145_v51  ;;  %v6148_v52 = vld [vmem:[#allocation12 + $0x8] sm:$0xff]   ;;  %v6152_v53 = vld [vmem:[#allocation12 + $0x10] sm:$0xff]   ;;  %v6156_v54 = vld [vmem:[#allocation12 + $0x18] sm:$0xff]  }
 0x171   : > { %4027 = vmatprep.subr.bf16.mxu1 %v5529_v1  ;;  %7336 = vst [vmem:[#allocation31_spill] sm:$0xff] %v6148_v52  ;;  %7337 = vst [vmem:[#allocation32_spill] sm:$0xff] %v6152_v53  ;;  %v6160_v55 = vld [vmem:[#allocation12 + $0x20] sm:$0xff]   ;;  %v6164_v56 = vld [vmem:[#allocation12 + $0x28] sm:$0xff]  }
 0x172   : > { %4008 = vmatpush3.bf16.msra.mxu0 %v5003_v5  ;;  %7338 = vst [vmem:[#allocation33_spill] sm:$0xff] %v6156_v54  ;;  %7339 = vst [vmem:[#allocation34_spill] sm:$0xff] %v6160_v55  ;;  %v6172_v57 = vld [vmem:[%s7341_s9] ss:$0 sm:$0xff]  ;;  %v6184_v3 = vld [vmem:[#allocation12 + $0x38] sm:$0xff]  }
 0x173   : > { %4009 = vmatprep.subr.bf16.mxu0 %v5529_v1  ;;  %7340 = vst [vmem:[#allocation35_spill] sm:$0xff] %v6164_v56  ;;  %7342 = vst [vmem:[#allocation36_spill] sm:$0xff] %v6172_v57  ;;  %v6180_v2 = vld [vmem:[#allocation12 + $0x30] sm:$0xff]   ;;  %v6188_v5 = vld [vmem:[#allocation14] sm:$0xff]  }
 0x174   : > { %4028 = vmatpush3.bf16.msra.mxu1 %v6023_v10  ;;  %7343 = vst [vmem:[#allocation37_spill] sm:$0xff] %v6180_v2  ;;  %7344 = vst [vmem:[#allocation38_spill] sm:$0xff] %v6184_v3  ;;  %v6195_v14 = vld [vmem:[#allocation14 + $0x10] sm:$0xff]  }
 0x175   : > { %4029 = vmatprep.subr.bf16.mxu1 %v5529_v1 }
 0x176   : > { %4010 = vmatpush3.bf16.msra.mxu0 %v5004_v7  ;;  %v6191_v7 = vld [vmem:[#allocation14 + $0x8] sm:$0xff]  }
 0x177   : > { %4011 = vmatprep.subr.bf16.mxu0 %v5529_v1 }
 0x178   : > { %4030 = vmatpush3.bf16.msra.mxu1 %v6030_v12 }
 0x179   : > { %4031 = vmatprep.subr.bf16.mxu1 %v5529_v1 }
 0x17a   : > { %4012 = vmatpush3.bf16.msra.mxu0 %v6021_v9 }
 0x17b   : > { %4013 = vmatprep.subr.bf16.mxu0 %v5529_v1 }
 0x17c   : > { %4032 = vmatpush3.bf16.msra.mxu1 %v6039_v15 }
 0x17d   : > { %4033 = vmatprep.subr.bf16.mxu1 %v5529_v1 }
 0x17e   : > { %4014 = vmatpush3.bf16.msra.mxu0 %v6028_v11 }
 0x17f   : > { %4015 = vmatprep.subr.bf16.mxu0 %v5529_v1 }
 0x180   : > { %4034 = vmatpush3.bf16.msra.mxu1 %v6051_v17 }
 0x181   : > { %4035 = vmatprep.subr.bf16.mxu1 %v5529_v1 }
 0x182   : > { %4016 = vmatpush3.bf16.msra.mxu0 %v6036_v13 }
 0x183   : > { %4041 = vmatprep.subr.bf16.mxu0 %v5529_v1 }
 0x184   : > { %4036 = vmatpush3.bf16.msra.mxu1 %v6055_v18 }
 0x185   : > { %4018 = vmatmul.mubr.bf16.vlgmr.msra.gmra.mrb[0].mxu0 %v765_v16  ;;  %4061 = vmatprep.subr.bf16.mxu1 %v5529_v1  ;;  %v6199_v16 = vld [vmem:[#allocation14 + $0x18] sm:$0xff]  }
 0x186   : > { %4057 = vmatprep.mubr.msk.bf16.mxu0 %vm5530_vm0, %v5529_v1  ;;  %4042 = vmatpush3.bf16.msra.mxu0 %v6059_v19 }
 0x187   : > { %4043 = vmatprep.subr.bf16.mxu0 %v5529_v1 }
 0x18a   : > { %4044 = vmatpush3.bf16.msra.mxu0 %v6062_v20 }
 0x18b   : > { %4045 = vmatprep.subr.bf16.mxu0 %v5529_v1 }
 0x18e   : > { %4046 = vmatpush3.bf16.msra.mxu0 %v6066_v21 }
 0x18f   : > { %4047 = vmatprep.subr.bf16.mxu0 %v5529_v1 }
 0x192   : > { %4048 = vmatpush3.bf16.msra.mxu0 %v6070_v22 }
 0x193   : > { %4049 = vmatprep.subr.bf16.mxu0 %v5529_v1 }
 0x196   : > { %4050 = vmatpush3.bf16.msra.mxu0 %v6074_v23 }
 0x197   : > { %4051 = vmatprep.subr.bf16.mxu0 %v5529_v1 }
 0x19a   : > { %4052 = vmatpush3.bf16.msra.mxu0 %v6078_v24 }
 0x19b   : > { %4053 = vmatprep.subr.bf16.mxu0 %v5529_v1 }
 0x19e   : > { %4054 = vmatpush3.bf16.msra.mxu0 %v6094_v33 }
 0x19f   : > { %4055 = vmatprep.subr.bf16.mxu0 %v5529_v1 }
 0x1a2   : > { %4056 = vmatpush3.bf16.msra.mxu0 %v6098_v34 }
 0x1a3   : > { %4081 = vmatprep.subr.bf16.mxu0 %v5529_v1 }
 0x258   : > { %v871_v26 = vpop.f32.mrb[0].mxu0 }
 0x259   : > { %v872_v27 = vadd.f32 %v6086_v25, %v871_v26  ;;  %v4019_v28 = vpop.f32.mrb[1].mxu0  ;;  %v6203_v26 = vld [vmem:[#allocation14 + $0x20] sm:$0xff]  }
 0x25a   : > { %v874_v29 = vpop.f32.mrb[2].mxu0  ;;  %v6215_v28 = vld [vmem:[%s7345_s6] ss:$0 sm:$0xff] }
 0x25b   : > { %v877_v30 = vmax.f32 %v872_v27, 0.0  ;;  %v4020_v31 = vpop.f32.mrb[3].mxu0  ;;  %v6207_v27 = vld [vmem:[#allocation14 + $0x28] sm:$0xff]   ;;  %7346 = vst [vmem:[#allocation39_spill] sm:$0xff] %v6215_v28 }
 0x25d   : > { %v6089_v32 = vpack.c.bf16 %v877_v30, %v877_v30 }
 0x25f   : > { %4038 = vmatmul.mubr.bf16.vlgmr.msra.gmra.mrb[0].mxu1 %v6089_v32 }
 0x260   : > { %4077 = vmatprep.mubr.msk.bf16.mxu1 %vm5530_vm0, %v5529_v1  ;;  %4062 = vmatpush3.bf16.msra.mxu1 %v6102_v35 }
 0x261   : > { %4063 = vmatprep.subr.bf16.mxu1 %v5529_v1 }
 0x264   : > { %4064 = vmatpush3.bf16.msra.mxu1 %v6105_v36 }
 0x265   : > { %4065 = vmatprep.subr.bf16.mxu1 %v5529_v1 }
 0x268   : > { %4066 = vmatpush3.bf16.msra.mxu1 %v6109_v37 }
 0x269   : > { %4067 = vmatprep.subr.bf16.mxu1 %v5529_v1 }
 0x26c   : > { %4068 = vmatpush3.bf16.msra.mxu1 %v6113_v38 }
 0x26d   : > { %4069 = vmatprep.subr.bf16.mxu1 %v5529_v1 }
 0x270   : > { %4070 = vmatpush3.bf16.msra.mxu1 %v6117_v39 }
 0x271   : > { %4071 = vmatprep.subr.bf16.mxu1 %v5529_v1 }
 0x274   : > { %4072 = vmatpush3.bf16.msra.mxu1 %v6121_v40 }
 0x275   : > { %4073 = vmatprep.subr.bf16.mxu1 %v5529_v1 }
 0x278   : > { %4074 = vmatpush3.bf16.msra.mxu1 %v6137_v49 }
 0x279   : > { %4075 = vmatprep.subr.bf16.mxu1 %v5529_v1 }
 0x27c   : > { %4076 = vmatpush3.bf16.msra.mxu1 %v6141_v50 }
 0x27d   : > { %4101 = vmatprep.subr.bf16.mxu1 %v5529_v1 }
 0x332   : > { %v984_v42 = vpop.f32.mrb[0].mxu1 }
 0x333   : > { %v985_v43 = vadd.f32 %v6129_v41, %v984_v42  ;;  %v4039_v44 = vpop.f32.mrb[1].mxu1 }
 0x334   : > { %v987_v45 = vpop.f32.mrb[2].mxu1 }
 0x335   : > { %v990_v46 = vmax.f32 %v985_v43, 0.0  ;;  %v4040_v47 = vpop.f32.mrb[3].mxu1 }
 0x336   : > { %v6224_v47 = vld [vmem:[#allocation14 + $0x38] sm:$0xff]  }
 0x337   : > { %v6132_v48 = vpack.c.bf16 %v990_v46, %v990_v46  ;;  %v6220_v46 = vld [vmem:[#allocation14 + $0x30] sm:$0xff]   ;;  %7347 = vst [vmem:[#allocation40_spill] sm:$0xff] %v6224_v47 }
 0x339   : > { %4058 = vmatmul.mubr.bf16.vlgmr.msra.gmra.mrb[4].mxu0 %v6132_v48 }
 0x33a   : > { %4097 = vmatprep.mubr.msk.bf16.mxu0 %vm5530_vm0, %v5529_v1  ;;  %4082 = vmatpush3.bf16.msra.mxu0 %v6145_v51 }
 0x33b   : > { %4083 = vmatprep.subr.bf16.mxu0 %v5529_v1 }
 0x33e   : > { %4084 = vmatpush3.bf16.msra.mxu0 %v6148_v52 }
 0x33f   : > { %4085 = vmatprep.subr.bf16.mxu0 %v5529_v1 }
 0x342   : > { %4086 = vmatpush3.bf16.msra.mxu0 %v6152_v53 }
 0x343   : > { %4087 = vmatprep.subr.bf16.mxu0 %v5529_v1 }
 0x346   : > { %4088 = vmatpush3.bf16.msra.mxu0 %v6156_v54 }
 0x347   : > { %4089 = vmatprep.subr.bf16.mxu0 %v5529_v1 }
 0x34a   : > { %4090 = vmatpush3.bf16.msra.mxu0 %v6160_v55 }
 0x34b   : > { %4091 = vmatprep.subr.bf16.mxu0 %v5529_v1 }
 0x34e   : > { %4092 = vmatpush3.bf16.msra.mxu0 %v6164_v56 }
 0x34f   : > { %4093 = vmatprep.subr.bf16.mxu0 %v5529_v1 }
 0x352   : > { %4094 = vmatpush3.bf16.msra.mxu0 %v6180_v2  ;;  %v6268_v2 = vld [vmem:[#allocation17] sm:$0xff]  }
 0x353   : > { %4095 = vmatprep.subr.bf16.mxu0 %v5529_v1 }
 0x356   : > { %4096 = vmatpush3.bf16.msra.mxu0 %v6184_v3  ;;  %v6264_v3 = vld [vmem:[#allocation15 + $0x38] sm:$0xff]  }
 0x357   : > { %4121 = vmatprep.subr.bf16.mxu0 %v5529_v1 }
 0x40c   : > { %v1097_v58 = vpop.f32.mrb[4].mxu0 }
 0x40d   : > { %v1098_v59 = vadd.f32 %v6172_v57, %v1097_v58  ;;  %v4059_v60 = vpop.f32.mrb[5].mxu0  ;;  %v6228_v58 = vld [vmem:[#allocation15] sm:$0xff]  }
 0x40e   : > { %v1100_v61 = vpop.f32.mrb[6].mxu0  ;;  %v6235_v60 = vld [vmem:[#allocation15 + $0x10] sm:$0xff]  }
 0x40f   : > { %v1103_v62 = vmax.f32 %v1098_v59, 0.0  ;;  %v4060_v63 = vpop.f32.mrb[7].mxu0  ;;  %v6231_v59 = vld [vmem:[#allocation15 + $0x8] sm:$0xff]   ;;  %v6239_v61 = vld [vmem:[#allocation15 + $0x18] sm:$0xff]  }
 0x410   : > { %v6247_v63 = vld [vmem:[#allocation15 + $0x28] sm:$0xff]  }
 0x411   : > { %v6175_v0 = vpack.c.bf16 %v1103_v62, %v1103_v62  ;;  %v6243_v62 = vld [vmem:[#allocation15 + $0x20] sm:$0xff]  }
 0x413   : > { %4078 = vmatmul.mubr.bf16.vlgmr.msra.gmra.mrb[4].mxu1 %v6175_v0 }
 0x414   : > { %4117 = vmatprep.mubr.msk.bf16.mxu1 %vm5530_vm0, %v5529_v1  ;;  %4102 = vmatpush3.bf16.msra.mxu1 %v6188_v5 }
 0x415   : > { %4103 = vmatprep.subr.bf16.mxu1 %v5529_v1 }
 0x418   : > { %4104 = vmatpush3.bf16.msra.mxu1 %v6191_v7 }
 0x419   : > { %4105 = vmatprep.subr.bf16.mxu1 %v5529_v1 }
 0x41c   : > { %4106 = vmatpush3.bf16.msra.mxu1 %v6195_v14 }
 0x41d   : > { %4107 = vmatprep.subr.bf16.mxu1 %v5529_v1 }
 0x420   : > { %4108 = vmatpush3.bf16.msra.mxu1 %v6199_v16 }
 0x421   : > { %4109 = vmatprep.subr.bf16.mxu1 %v5529_v1 }
 0x424   : > { %4110 = vmatpush3.bf16.msra.mxu1 %v6203_v26 }
 0x425   : > { %4111 = vmatprep.subr.bf16.mxu1 %v5529_v1 }
 0x428   : > { %4112 = vmatpush3.bf16.msra.mxu1 %v6207_v27 }
 0x429   : > { %4113 = vmatprep.subr.bf16.mxu1 %v5529_v1 }
 0x42c   : > { %4114 = vmatpush3.bf16.msra.mxu1 %v6220_v46 }
 0x42d   : > { %4115 = vmatprep.subr.bf16.mxu1 %v5529_v1 }
 0x430   : > { %4116 = vmatpush3.bf16.msra.mxu1 %v6224_v47 }
 0x431   : > { %4141 = vmatprep.subr.bf16.mxu1 %v5529_v1 }
 0x4e6   : > { %v1210_v29 = vpop.f32.mrb[4].mxu1 }
 0x4e7   : > { %v1211_v30 = vadd.f32 %v6215_v28, %v1210_v29  ;;  %v4079_v31 = vpop.f32.mrb[5].mxu1  ;;  %v6251_v29 = vld [vmem:[#allocation15 + $0x30] sm:$0xff]  }
 0x4e8   : > { %v1213_v42 = vpop.f32.mrb[6].mxu1 }
 0x4e9   : > { %v1216_v43 = vmax.f32 %v1211_v30, 0.0  ;;  %v4080_v44 = vpop.f32.mrb[7].mxu1  ;;  %v6259_v30 = vld [vmem:[%s7348_s16] ss:$0 sm:$0xff] }
 0x4ea   : > { %7349 = vst [vmem:[#allocation41_spill] sm:$0xff] %v6259_v30 }
 0x4eb   : > { %v1217_v45 = vpack.c.bf16 %v1216_v43, %v1216_v43 }
 0x4ed   : > { %4098 = vmatmul.mubr.bf16.vlgmr.msra.gmra.mrb[8].mxu0 %v1217_v45 }
 0x4ee   : > { %4137 = vmatprep.mubr.msk.bf16.mxu0 %vm5530_vm0, %v5529_v1  ;;  %4122 = vmatpush3.bf16.msra.mxu0 %v6228_v58 }
 0x4ef   : > { %4123 = vmatprep.subr.bf16.mxu0 %v5529_v1 }
 0x4f2   : > { %4124 = vmatpush3.bf16.msra.mxu0 %v6231_v59 }
 0x4f3   : > { %4125 = vmatprep.subr.bf16.mxu0 %v5529_v1 }
 0x4f6   : > { %4126 = vmatpush3.bf16.msra.mxu0 %v6235_v60 }
 0x4f7   : > { %4127 = vmatprep.subr.bf16.mxu0 %v5529_v1 }
 0x4fa   : > { %4128 = vmatpush3.bf16.msra.mxu0 %v6239_v61 }
 0x4fb   : > { %4129 = vmatprep.subr.bf16.mxu0 %v5529_v1 }
 0x4fe   : > { %4130 = vmatpush3.bf16.msra.mxu0 %v6243_v62 }
 0x4ff   : > { %4131 = vmatprep.subr.bf16.mxu0 %v5529_v1 }
 0x502   : > { %4132 = vmatpush3.bf16.msra.mxu0 %v6247_v63 }
 0x503   : > { %4133 = vmatprep.subr.bf16.mxu0 %v5529_v1 }
 0x506   : > { %4134 = vmatpush3.bf16.msra.mxu0 %v6251_v29 }
 0x507   : > { %4135 = vmatprep.subr.bf16.mxu0 %v5529_v1 }
 0x50a   : > { %4136 = vmatpush3.bf16.msra.mxu0 %v6264_v3 }
 0x50b   : > { %4161 = vmatprep.subr.bf16.mxu0 %v5529_v1 }
 0x5c0   : > { %v1323_v31 = vpop.f32.mrb[8].mxu0 }
 0x5c1   : > { %v1324_v42 = vadd.f32 %v6259_v30, %v1323_v31  ;;  %v4099_v43 = vpop.f32.mrb[9].mxu0  ;;  %v6271_v31 = vld [vmem:[#allocation17 + $0x8] sm:$0xff]  }
 0x5c2   : > { %v1326_v44 = vpop.f32.mrb[10].mxu0  ;;  %v6287_v43 = vld [vmem:[#allocation17 + $0x28] sm:$0xff]  }
 0x5c3   : > { %v1329_v45 = vmax.f32 %v1324_v42, 0.0  ;;  %v4100_v28 = vpop.f32.mrb[11].mxu0  ;;  %v6283_v42 = vld [vmem:[#allocation17 + $0x20] sm:$0xff]   ;;  %v6291_v44 = vld [vmem:[#allocation17 + $0x30] sm:$0xff]  }
 0x5c4   : > { %v6279_v28 = vld [vmem:[#allocation17 + $0x18] sm:$0xff]  }
 0x5c5   : > { %v1330_v57 = vpack.c.bf16 %v1329_v45, %v1329_v45  ;;  %v6299_v45 = vld [vmem:[%s7350_s7] ss:$0 sm:$0xff] }
 0x5c7   : > { %4118 = vmatmul.mubr.bf16.vlgmr.msra.gmra.mrb[8].mxu1 %v1330_v57  ;;  %v6275_v57 = vld [vmem:[#allocation17 + $0x10] sm:$0xff]  }
 0x5c8   : > { %4157 = vmatprep.mubr.msk.bf16.mxu1 %vm5530_vm0, %v5529_v1  ;;  %4142 = vmatpush3.bf16.msra.mxu1 %v6268_v2 }
 0x5c9   : > { %4143 = vmatprep.subr.bf16.mxu1 %v5529_v1 }
 0x5cc   : > { %4144 = vmatpush3.bf16.msra.mxu1 %v6271_v31 }
 0x5cd   : > { %4145 = vmatprep.subr.bf16.mxu1 %v5529_v1 }
 0x5d0   : > { %4146 = vmatpush3.bf16.msra.mxu1 %v6275_v57 }
 0x5d1   : > { %4147 = vmatprep.subr.bf16.mxu1 %v5529_v1 }
 0x5d4   : > { %4148 = vmatpush3.bf16.msra.mxu1 %v6279_v28 }
 0x5d5   : > { %4149 = vmatprep.subr.bf16.mxu1 %v5529_v1 }
 0x5d8   : > { %4150 = vmatpush3.bf16.msra.mxu1 %v6283_v42 }
 0x5d9   : > { %4151 = vmatprep.subr.bf16.mxu1 %v5529_v1 }
 0x5dc   : > { %4152 = vmatpush3.bf16.msra.mxu1 %v6287_v43 }
 0x5dd   : > { %4153 = vmatprep.subr.bf16.mxu1 %v5529_v1 }
 0x5e0   : > { %4154 = vmatpush3.bf16.msra.mxu1 %v6291_v44 }
 0x5e1   : > { %4155 = vmatprep.subr.bf16.mxu1 %v5529_v1 }
 0x69a   : > { %v1436_v30 = vpop.f32.mrb[8].mxu1 }
 0x69b   : > { %v1437_v56 = vadd.f32 %v6299_v45, %v1436_v30  ;;  %v4119_v55 = vpop.f32.mrb[9].mxu1 }
 0x69c   : > { %v1439_v54 = vpop.f32.mrb[10].mxu1 }
 0x69d   : > { %v1442_v53 = vmax.f32 %v1437_v56, 0.0  ;;  %v4120_v52 = vpop.f32.mrb[11].mxu1 }
 0x69e   : > { %v6346_v52 = vld [vmem:[%s7351_s23] ss:$0 sm:$0xff] }
 0x69f   : > { %v1443_v51 = vpack.c.bf16 %v1442_v53, %v1442_v53 }
 0x6a1   : > { %4138 = vmatmul.mubr.bf16.vlgmr.msra.gmra.mrb[12].mxu0 %v1443_v51  ;;  %v6337_v51 = vld [vmem:[#allocation17 + $0x38] sm:$0xff]  }
 0x6a2   : > { %4162 = vmatpush3.bf16.msra.mxu0 %v6188_v5  ;;  %4177 = vmatprep.mubr.msk.bf16.mxu0 %vm5530_vm0, %v5529_v1 }
 0x6a3   : > { %4163 = vmatprep.subr.bf16.mxu0 %v5529_v1  ;;  %4156 = vmatpush3.bf16.msra.mxu1 %v6337_v51 }
 0x6a4   : > { %4181 = vmatprep.subr.bf16.mxu1 %v5529_v1 }
 0x6a6   : > { %4164 = vmatpush3.bf16.msra.mxu0 %v6191_v7 }
 0x6a7   : > { %4165 = vmatprep.subr.bf16.mxu0 %v5529_v1 }
 0x6aa   : > { %4166 = vmatpush3.bf16.msra.mxu0 %v6195_v14 }
 0x6ab   : > { %4167 = vmatprep.subr.bf16.mxu0 %v5529_v1 }
 0x6ae   : > { %4168 = vmatpush3.bf16.msra.mxu0 %v6199_v16 }
 0x6af   : > { %4169 = vmatprep.subr.bf16.mxu0 %v5529_v1 }
 0x6b2   : > { %4170 = vmatpush3.bf16.msra.mxu0 %v6203_v26 }
 0x6b3   : > { %4171 = vmatprep.subr.bf16.mxu0 %v5529_v1 }
 0x6b6   : > { %4172 = vmatpush3.bf16.msra.mxu0 %v6207_v27 }
 0x6b7   : > { %4173 = vmatprep.subr.bf16.mxu0 %v5529_v1 }
 0x6ba   : > { %4174 = vmatpush3.bf16.msra.mxu0 %v6220_v46 }
 0x6bb   : > { %4175 = vmatprep.subr.bf16.mxu0 %v5529_v1 }
 0x6be   : > { %4176 = vmatpush3.bf16.msra.mxu0 %v6224_v47 }
 0x6bf   : > { %4201 = vmatprep.subr.bf16.mxu0 %v5529_v1 }
 0x6c1   : > { %4178 = vmatmul.mubr.bf16.vlgmr.msra.gmra.mrb[16].mxu0 %v6175_v0 }
 0x6c2   : > { %4202 = vmatpush3.bf16.msra.mxu0 %v6268_v2  ;;  %4217 = vmatprep.mubr.msk.bf16.mxu0 %vm5530_vm0, %v5529_v1 }
 0x6c3   : > { %4203 = vmatprep.subr.bf16.mxu0 %v5529_v1 }
 0x6c6   : > { %4204 = vmatpush3.bf16.msra.mxu0 %v6271_v31 }
 0x6c7   : > { %4205 = vmatprep.subr.bf16.mxu0 %v5529_v1 }
 0x6ca   : > { %4206 = vmatpush3.bf16.msra.mxu0 %v6275_v57 }
 0x6cb   : > { %4207 = vmatprep.subr.bf16.mxu0 %v5529_v1 }
 0x6ce   : > { %4208 = vmatpush3.bf16.msra.mxu0 %v6279_v28 }
 0x6cf   : > { %4209 = vmatprep.subr.bf16.mxu0 %v5529_v1 }
 0x6d2   : > { %4210 = vmatpush3.bf16.msra.mxu0 %v6283_v42 }
 0x6d3   : > { %4211 = vmatprep.subr.bf16.mxu0 %v5529_v1 }
 0x6d6   : > { %4212 = vmatpush3.bf16.msra.mxu0 %v6287_v43 }
 0x6d7   : > { %4213 = vmatprep.subr.bf16.mxu0 %v5529_v1 }
 0x6da   : > { %4214 = vmatpush3.bf16.msra.mxu0 %v6291_v44 }
 0x6db   : > { %4215 = vmatprep.subr.bf16.mxu0 %v5529_v1 }
 0x6de   : > { %4216 = vmatpush3.bf16.msra.mxu0 %v6337_v51 }
 0x6df   : > { %4241 = vmatprep.subr.bf16.mxu0 %v5529_v1 }
 0x774   : > { %v1549_v53 = vpop.f32.mrb[12].mxu0 }
 0x775   : > { %v1550_v54 = vadd.f32 %v6346_v52, %v1549_v53  ;;  %v4139_v55 = vpop.f32.mrb[13].mxu0 }
 0x776   : > { %v1552_v56 = vpop.f32.mrb[14].mxu0 }
 0x777   : > { %v1555_v0 = vmax.f32 %v1550_v54, 0.0  ;;  %v4140_v30 = vpop.f32.mrb[15].mxu0 }
 0x779   : > { %v1556_v47 = vpack.c.bf16 %v1555_v0, %v1555_v0 }
 0x77b   : > { %4158 = vmatmul.mubr.bf16.vlgmr.msra.gmra.mrb[12].mxu1 %v1556_v47 }
 0x77c   : > { %4182 = vmatpush3.bf16.msra.mxu1 %v6228_v58  ;;  %4197 = vmatprep.mubr.msk.bf16.mxu1 %vm5530_vm0, %v5529_v1 }
 0x77d   : > { %4183 = vmatprep.subr.bf16.mxu1 %v5529_v1 }
 0x780   : > { %4184 = vmatpush3.bf16.msra.mxu1 %v6231_v59 }
 0x781   : > { %4185 = vmatprep.subr.bf16.mxu1 %v5529_v1 }
 0x784   : > { %4186 = vmatpush3.bf16.msra.mxu1 %v6235_v60 }
 0x785   : > { %4187 = vmatprep.subr.bf16.mxu1 %v5529_v1 }
 0x788   : > { %4188 = vmatpush3.bf16.msra.mxu1 %v6239_v61 }
 0x789   : > { %4189 = vmatprep.subr.bf16.mxu1 %v5529_v1 }
 0x78c   : > { %4190 = vmatpush3.bf16.msra.mxu1 %v6243_v62 }
 0x78d   : > { %4191 = vmatprep.subr.bf16.mxu1 %v5529_v1 }
 0x790   : > { %4192 = vmatpush3.bf16.msra.mxu1 %v6247_v63 }
 0x791   : > { %4193 = vmatprep.subr.bf16.mxu1 %v5529_v1 }
 0x794   : > { %v1703_v47 = vpop.f32.mrb[16].mxu0  ;;  %4194 = vmatpush3.bf16.msra.mxu1 %v6251_v29 }
 0x795   : > { %v1704_v53 = vadd.f32 %v6299_v45, %v1703_v47  ;;  %v4179_v54 = vpop.f32.mrb[17].mxu0  ;;  %4195 = vmatprep.subr.bf16.mxu1 %v5529_v1 }
 0x796   : > { %v1706_v55 = vpop.f32.mrb[18].mxu0 }
 0x797   : > { %v1709_v56 = vmax.f32 %v1704_v53, 0.0  ;;  %v4180_v0 = vpop.f32.mrb[19].mxu0 }
 0x798   : > { %4196 = vmatpush3.bf16.msra.mxu1 %v6264_v3 }
 0x799   : > { %v1710_v30 = vpack.c.bf16 %v1709_v56, %v1709_v56  ;;  %4221 = vmatprep.subr.bf16.mxu1 %v5529_v1 }
 0x79b   : > { %4198 = vmatmul.mubr.bf16.vlgmr.msra.gmra.mrb[16].mxu1 %v1710_v30 }
 0x79c   : > { %4222 = vmatpush3.bf16.msra.mxu1 %v6228_v58  ;;  %4237 = vmatprep.mubr.msk.bf16.mxu1 %vm5530_vm0, %v5529_v1 }
 0x79d   : > { %4223 = vmatprep.subr.bf16.mxu1 %v5529_v1 }
 0x7a0   : > { %4224 = vmatpush3.bf16.msra.mxu1 %v6231_v59 }
 0x7a1   : > { %4225 = vmatprep.subr.bf16.mxu1 %v5529_v1 }
 0x7a4   : > { %4226 = vmatpush3.bf16.msra.mxu1 %v6235_v60 }
 0x7a5   : > { %4227 = vmatprep.subr.bf16.mxu1 %v5529_v1 }
 0x7a8   : > { %4228 = vmatpush3.bf16.msra.mxu1 %v6239_v61 }
 0x7a9   : > { %4229 = vmatprep.subr.bf16.mxu1 %v5529_v1 }
 0x7ac   : > { %4230 = vmatpush3.bf16.msra.mxu1 %v6243_v62 }
 0x7ad   : > { %4231 = vmatprep.subr.bf16.mxu1 %v5529_v1 }
 0x7b0   : > { %4232 = vmatpush3.bf16.msra.mxu1 %v6247_v63 }
 0x7b1   : > { %4233 = vmatprep.subr.bf16.mxu1 %v5529_v1 }
 0x7b4   : > { %4234 = vmatpush3.bf16.msra.mxu1 %v6251_v29 }
 0x7b5   : > { %4235 = vmatprep.subr.bf16.mxu1 %v5529_v1 }
 0x7b8   : > { %4236 = vmatpush3.bf16.msra.mxu1 %v6264_v3 }
 0x7b9   : > { %4261 = vmatprep.subr.bf16.mxu1 %v5529_v1 }
 0x7bb   : > { %4238 = vmatmul.mubr.bf16.vlgmr.msra.gmra.mrb[20].mxu1 %v6132_v48 }
 0x7bc   : > { %4262 = vmatpush3.bf16.msra.mxu1 %v6268_v2  ;;  %4277 = vmatprep.mubr.msk.bf16.mxu1 %vm5530_vm0, %v5529_v1 }
 0x7bd   : > { %4263 = vmatprep.subr.bf16.mxu1 %v5529_v1 }
 0x7c0   : > { %4264 = vmatpush3.bf16.msra.mxu1 %v6271_v31 }
 0x7c1   : > { %4265 = vmatprep.subr.bf16.mxu1 %v5529_v1 }
 0x7c4   : > { %4266 = vmatpush3.bf16.msra.mxu1 %v6275_v57 }
 0x7c5   : > { %4267 = vmatprep.subr.bf16.mxu1 %v5529_v1 }
 0x7c8   : > { %4268 = vmatpush3.bf16.msra.mxu1 %v6279_v28 }
 0x7c9   : > { %4269 = vmatprep.subr.bf16.mxu1 %v5529_v1 }
 0x7cc   : > { %4270 = vmatpush3.bf16.msra.mxu1 %v6283_v42 }
 0x7cd   : > { %4271 = vmatprep.subr.bf16.mxu1 %v5529_v1 }
 0x7d0   : > { %4272 = vmatpush3.bf16.msra.mxu1 %v6287_v43 }
 0x7d1   : > { %4273 = vmatprep.subr.bf16.mxu1 %v5529_v1 }
 0x7d4   : > { %4274 = vmatpush3.bf16.msra.mxu1 %v6291_v44 }
 0x7d5   : > { %4275 = vmatprep.subr.bf16.mxu1 %v5529_v1 }
 0x7d8   : > { %4276 = vmatpush3.bf16.msra.mxu1 %v6337_v51 }
 0x7d9   : > { %4301 = vmatprep.subr.bf16.mxu1 %v5529_v1 }
 0x7db   : > { %4278 = vmatmul.mubr.bf16.vlgmr.msra.gmra.mrb[24].mxu1 %v6089_v32 }
 0x7dc   : > { %4302 = vmatpush3.bf16.msra.mxu1 %v6009_v4  ;;  %4317 = vmatprep.mubr.msk.bf16.mxu1 %vm5530_vm0, %v5529_v1 }
 0x7dd   : > { %4303 = vmatprep.subr.bf16.mxu1 %v5529_v1 }
 0x7e0   : > { %4304 = vmatpush3.bf16.msra.mxu1 %v6011_v6 }
 0x7e1   : > { %4305 = vmatprep.subr.bf16.mxu1 %v5529_v1 }
 0x7e4   : > { %4306 = vmatpush3.bf16.msra.mxu1 %v6017_v8 }
 0x7e5   : > { %4307 = vmatprep.subr.bf16.mxu1 %v5529_v1 }
 0x7e8   : > { %4308 = vmatpush3.bf16.msra.mxu1 %v6023_v10 }
 0x7e9   : > { %4309 = vmatprep.subr.bf16.mxu1 %v5529_v1 }
 0x7ec   : > { %4310 = vmatpush3.bf16.msra.mxu1 %v6030_v12 }
 0x7ed   : > { %4311 = vmatprep.subr.bf16.mxu1 %v5529_v1 }
 0x7f0   : > { %4312 = vmatpush3.bf16.msra.mxu1 %v6039_v15 }
 0x7f1   : > { %4313 = vmatprep.subr.bf16.mxu1 %v5529_v1 }
 0x7f4   : > { %4314 = vmatpush3.bf16.msra.mxu1 %v6051_v17 }
 0x7f5   : > { %4315 = vmatprep.subr.bf16.mxu1 %v5529_v1 }
 0x7f8   : > { %4316 = vmatpush3.bf16.msra.mxu1 %v6055_v18 }
 0x7f9   : > { %4341 = vmatprep.subr.bf16.mxu1 %v5529_v1 }
 0x84e   : > { %v6424_v4 = vpop.f32.mrb[12].mxu1 }
 0x84f   : > { %v4159_v6 = vpop.f32.mrb[13].mxu1 }
 0x850   : > { %v1665_v8 = vpop.f32.mrb[14].mxu1 }
 0x851   : > { %v4160_v10 = vpop.f32.mrb[15].mxu1  ;;  %v6446_v8 = vld [vmem:[#allocation6] sm:$0xff]  }
 0x852   : > { %v6452_v10 = vld [vmem:[#allocation6 + $0x8] sm:$0xff]  }
 0x86e   : > { %v1745_v12 = vpop.f32.mrb[16].mxu1 }
 0x86f   : > { %v1746_v32 = vadd.f32 %v6346_v52, %v1745_v12  ;;  %v4199_v48 = vpop.f32.mrb[17].mxu1  ;;  %v6456_v12 = vld [vmem:[#allocation6 + $0x10] sm:$0xff]  }
 0x870   : > { %v1748_v15 = vpop.f32.mrb[18].mxu1  ;;  %v6464_v48 = vld [vmem:[#allocation6 + $0x20] sm:$0xff]  }
 0x871   : > { %v1751_v47 = vmax.f32 %v1746_v32, 0.0  ;;  %v4200_v53 = vpop.f32.mrb[19].mxu1  ;;  %v6460_v32 = vld [vmem:[#allocation6 + $0x18] sm:$0xff]  }
 0x873   : > { %v1752_v54 = vpack.c.bf16 %v1751_v47, %v1751_v47  ;;  %v3570_v47 = vld [vmem:[%s5971_s4 + $0x8] sm:$0xff] }
 0x875   : > { %4218 = vmatmul.mubr.bf16.vlgmr.msra.gmra.mrb[20].mxu0 %v1752_v54 }
 0x876   : > { %4242 = vmatpush3.bf16.msra.mxu0 %v6268_v2  ;;  %4257 = vmatprep.mubr.msk.bf16.mxu0 %vm5530_vm0, %v5529_v1 }
 0x877   : > { %4243 = vmatprep.subr.bf16.mxu0 %v5529_v1 }
 0x87a   : > { %4244 = vmatpush3.bf16.msra.mxu0 %v6271_v31 }
 0x87b   : > { %4245 = vmatprep.subr.bf16.mxu0 %v5529_v1 }
 0x87e   : > { %4246 = vmatpush3.bf16.msra.mxu0 %v6275_v57 }
 0x87f   : > { %4247 = vmatprep.subr.bf16.mxu0 %v5529_v1 }
 0x882   : > { %4248 = vmatpush3.bf16.msra.mxu0 %v6279_v28 }
 0x883   : > { %4249 = vmatprep.subr.bf16.mxu0 %v5529_v1 }
 0x886   : > { %4250 = vmatpush3.bf16.msra.mxu0 %v6283_v42 }
 0x887   : > { %4251 = vmatprep.subr.bf16.mxu0 %v5529_v1 }
 0x88a   : > { %4252 = vmatpush3.bf16.msra.mxu0 %v6287_v43 }
 0x88b   : > { %4253 = vmatprep.subr.bf16.mxu0 %v5529_v1 }
 0x88e   : > { %4254 = vmatpush3.bf16.msra.mxu0 %v6291_v44  ;;  %v1828_v17 = vpop.f32.mrb[20].mxu1 }
 0x88f   : > { %v1829_v18 = vadd.f32 %v6346_v52, %v1828_v17  ;;  %v4239_v55 = vpop.f32.mrb[21].mxu1  ;;  %4255 = vmatprep.subr.bf16.mxu0 %v5529_v1 }
 0x890   : > { %v1831_v56 = vpop.f32.mrb[22].mxu1 }
 0x891   : > { %v1834_v0 = vmax.f32 %v1829_v18, 0.0  ;;  %v4240_v30 = vpop.f32.mrb[23].mxu1  ;;  %v1921_v18 = vpack.c.bf16 %v3570_v47, %v3570_v47  ;;  %v7356_v47 = vld [vmem:[#allocation34_spill] sm:$0xff] }
 0x892   : > { %4256 = vmatpush3.bf16.msra.mxu0 %v6337_v51 }
 0x893   : > { %v1835_v6 = vpack.c.bf16 %v1834_v0, %v1834_v0  ;;  %4281 = vmatprep.subr.bf16.mxu0 %v5529_v1 }
 0x895   : > { %4258 = vmatmul.mubr.bf16.vlgmr.msra.gmra.mrb[24].mxu0 %v1835_v6 }
 0x896   : > { %4282 = vmatpush3.bf16.msra.mxu0 %v6446_v8  ;;  %4297 = vmatprep.mubr.msk.bf16.mxu0 %vm5530_vm0, %v5529_v1 }
 0x897   : > { %4283 = vmatprep.subr.bf16.mxu0 %v5529_v1 }
 0x89a   : > { %4284 = vmatpush3.bf16.msra.mxu0 %v6452_v10 }
 0x89b   : > { %4285 = vmatprep.subr.bf16.mxu0 %v5529_v1 }
 0x89e   : > { %4286 = vmatpush3.bf16.msra.mxu0 %v6456_v12 }
 0x89f   : > { %4287 = vmatprep.subr.bf16.mxu0 %v5529_v1 }
 0x8a2   : > { %4288 = vmatpush3.bf16.msra.mxu0 %v6460_v32 }
 0x8a3   : > { %4289 = vmatprep.subr.bf16.mxu0 %v5529_v1 }
 0x8a6   : > { %4290 = vmatpush3.bf16.msra.mxu0 %v6464_v48 }
 0x8a7   : > { %4291 = vmatprep.subr.bf16.mxu0 %v5529_v1 }
 0x8aa   : > { %4292 = vmatpush3.bf16.msra.mxu0 %v6021_v9 }
 0x8ab   : > { %4293 = vmatprep.subr.bf16.mxu0 %v5529_v1 }
 0x8ae   : > { %4294 = vmatpush3.bf16.msra.mxu0 %v6028_v11  ;;  %v6471_v15 = vpop.f32.mrb[24].mxu1 }
 0x8af   : > { %v4279_v53 = vpop.f32.mrb[25].mxu1  ;;  %4295 = vmatprep.subr.bf16.mxu0 %v5529_v1 }
 0x8b0   : > { %v1914_v54 = vpop.f32.mrb[26].mxu1  ;;  %v7357_v53 = vld [vmem:[#allocation35_spill] sm:$0xff] }
 0x8b1   : > { %v4280_v17 = vpop.f32.mrb[27].mxu1  ;;  %v7358_v54 = vld [vmem:[#allocation37_spill] sm:$0xff] }
 0x8b2   : > { %4296 = vmatpush3.bf16.msra.mxu0 %v6036_v13  ;;  %v7359_v17 = vld [vmem:[#allocation38_spill] sm:$0xff] }
 0x8b3   : > { %4321 = vmatprep.subr.bf16.mxu0 %v5529_v1 }
 0x8b5   : > { %4298 = vmatmul.mubr.bf16.vlgmr.msra.gmra.mrb[28].mxu0 %v1921_v18 }
 0x8b6   : > { %4322 = vmatpush3.bf16.msra.mxu0 %v6059_v19  ;;  %4337 = vmatprep.mubr.msk.bf16.mxu0 %vm5530_vm0, %v5529_v1 }
 0x8b7   : > { %4323 = vmatprep.subr.bf16.mxu0 %v5529_v1 }
 0x8ba   : > { %4324 = vmatpush3.bf16.msra.mxu0 %v6062_v20 }
 0x8bb   : > { %4325 = vmatprep.subr.bf16.mxu0 %v5529_v1 }
 0x8be   : > { %4326 = vmatpush3.bf16.msra.mxu0 %v6066_v21 }
 0x8bf   : > { %4327 = vmatprep.subr.bf16.mxu0 %v5529_v1 }
 0x8c2   : > { %4328 = vmatpush3.bf16.msra.mxu0 %v6070_v22 }
 0x8c3   : > { %4329 = vmatprep.subr.bf16.mxu0 %v5529_v1 }
 0x8c6   : > { %4330 = vmatpush3.bf16.msra.mxu0 %v6074_v23 }
 0x8c7   : > { %4331 = vmatprep.subr.bf16.mxu0 %v5529_v1 }
 0x8ca   : > { %4332 = vmatpush3.bf16.msra.mxu0 %v6078_v24 }
 0x8cb   : > { %4333 = vmatprep.subr.bf16.mxu0 %v5529_v1 }
 0x8ce   : > { %4334 = vmatpush3.bf16.msra.mxu0 %v6094_v33 }
 0x8cf   : > { %4335 = vmatprep.subr.bf16.mxu0 %v5529_v1 }
 0x8d2   : > { %4336 = vmatpush3.bf16.msra.mxu0 %v6098_v34 }
 0x8d3   : > { %4361 = vmatprep.subr.bf16.mxu0 %v5529_v1 }
 0x948   : > { %v6495_v9 = vpop.f32.mrb[20].mxu0 }
 0x949   : > { %v4219_v11 = vpop.f32.mrb[21].mxu0 }
 0x94a   : > { %v1790_v13 = vpop.f32.mrb[22].mxu0  ;;  %v7360_v11 = vld [vmem:[#allocation36_spill] sm:$0xff] }
 0x94b   : > { %v4220_v19 = vpop.f32.mrb[23].mxu0 }
 0x968   : > { %v6497_v20 = vpop.f32.mrb[24].mxu0 }
 0x969   : > { %v4259_v21 = vpop.f32.mrb[25].mxu0 }
 0x96a   : > { %v1873_v22 = vpop.f32.mrb[26].mxu0 }
 0x96b   : > { %v4260_v23 = vpop.f32.mrb[27].mxu0 }
 0x988   : > { %v1956_v24 = vpop.f32.mrb[28].mxu0 }
 0x989   : > { %v1957_v55 = vadd.f32 %v6086_v25, %v1956_v24  ;;  %v4299_v33 = vpop.f32.mrb[29].mxu0 }
 0x98a   : > { %v1959_v56 = vpop.f32.mrb[30].mxu0 }
 0x98b   : > { %v1962_v0 = vmax.f32 %v1957_v55, 0.0  ;;  %v4300_v30 = vpop.f32.mrb[31].mxu0  ;;  %v7361_v55 = vld [vmem:[#allocation40_spill] sm:$0xff]  ;;  %v7362_v56 = vld [vmem:[#allocation39_spill] sm:$0xff] }
 0x98d   : > { %v6500_v34 = vpack.c.bf16 %v1962_v0, %v1962_v0 }
 0x98f   : > { %4318 = vmatmul.mubr.bf16.vlgmr.msra.gmra.mrb[28].mxu1 %v6500_v34 }
 0x990   : > { %4342 = vmatpush3.bf16.msra.mxu1 %v6102_v35  ;;  %4357 = vmatprep.mubr.msk.bf16.mxu1 %vm5530_vm0, %v5529_v1 }
 0x991   : > { %4343 = vmatprep.subr.bf16.mxu1 %v5529_v1 }
 0x994   : > { %4344 = vmatpush3.bf16.msra.mxu1 %v6105_v36 }
 0x995   : > { %4345 = vmatprep.subr.bf16.mxu1 %v5529_v1 }
 0x998   : > { %4346 = vmatpush3.bf16.msra.mxu1 %v6109_v37 }
 0x999   : > { %4347 = vmatprep.subr.bf16.mxu1 %v5529_v1 }
 0x99c   : > { %4348 = vmatpush3.bf16.msra.mxu1 %v6113_v38 }
 0x99d   : > { %4349 = vmatprep.subr.bf16.mxu1 %v5529_v1 }
 0x9a0   : > { %4350 = vmatpush3.bf16.msra.mxu1 %v6117_v39 }
 0x9a1   : > { %4351 = vmatprep.subr.bf16.mxu1 %v5529_v1 }
 0x9a4   : > { %4352 = vmatpush3.bf16.msra.mxu1 %v6121_v40  ;;  %v7352_v40 = vld [vmem:[#allocation30_spill] sm:$0xff] }
 0x9a5   : > { %4353 = vmatprep.subr.bf16.mxu1 %v5529_v1 }
 0x9a8   : > { %4354 = vmatpush3.bf16.msra.mxu1 %v6137_v49  ;;  %v7353_v49 = vld [vmem:[#allocation31_spill] sm:$0xff] }
 0x9a9   : > { %4355 = vmatprep.subr.bf16.mxu1 %v5529_v1 }
 0x9ac   : > { %4356 = vmatpush3.bf16.msra.mxu1 %v6141_v50  ;;  %v7355_v50 = vld [vmem:[#allocation33_spill] sm:$0xff] }
 0x9ad   : > { %4381 = vmatprep.subr.bf16.mxu1 %v5529_v1 }
 0xa62   : > { %v1998_v25 = vpop.f32.mrb[28].mxu1 }
 0xa63   : > { %v1999_v35 = vadd.f32 %v6129_v41, %v1998_v25  ;;  %v4319_v36 = vpop.f32.mrb[29].mxu1  ;;  %v7354_v41 = vld [vmem:[#allocation32_spill] sm:$0xff] }
 0xa64   : > { %v2001_v37 = vpop.f32.mrb[30].mxu1 }
 0xa65   : > { %v2004_v38 = vmax.f32 %v1999_v35, 0.0  ;;  %v4320_v39 = vpop.f32.mrb[31].mxu1 }
 0xa66   : > { %v7363_v39 = vld [vmem:[#allocation41_spill] sm:$0xff] }
 0xa67   : > { %v6522_v6 = vpack.c.bf16 %v2004_v38, %v2004_v38 }
 0xa69   : > { %4338 = vmatmul.mubr.bf16.vlgmr.msra.gmra.mrb[32].mxu0 %v6522_v6 }
 0xa6a   : > { %4362 = vmatpush3.bf16.msra.mxu0 %v7352_v40  ;;  %4377 = vmatprep.mubr.msk.bf16.mxu0 %vm5530_vm0, %v5529_v1 }
 0xa6b   : > { %4363 = vmatprep.subr.bf16.mxu0 %v5529_v1 }
 0xa6e   : > { %4364 = vmatpush3.bf16.msra.mxu0 %v7353_v49 }
 0xa6f   : > { %4365 = vmatprep.subr.bf16.mxu0 %v5529_v1 }
 0xa72   : > { %4366 = vmatpush3.bf16.msra.mxu0 %v7354_v41 }
 0xa73   : > { %4367 = vmatprep.subr.bf16.mxu0 %v5529_v1 }
 0xa76   : > { %4368 = vmatpush3.bf16.msra.mxu0 %v7355_v50 }
 0xa77   : > { %4369 = vmatprep.subr.bf16.mxu0 %v5529_v1 }
 0xa7a   : > { %4370 = vmatpush3.bf16.msra.mxu0 %v7356_v47 }
 0xa7b   : > { %4371 = vmatprep.subr.bf16.mxu0 %v5529_v1 }
 0xa7e   : > { %4372 = vmatpush3.bf16.msra.mxu0 %v7357_v53 }
 0xa7f   : > { %4373 = vmatprep.subr.bf16.mxu0 %v5529_v1 }
 0xa82   : > { %4374 = vmatpush3.bf16.msra.mxu0 %v7358_v54 }
 0xa83   : > { %4375 = vmatprep.subr.bf16.mxu0 %v5529_v1 }
 0xa86   : > { %4376 = vmatpush3.bf16.msra.mxu0 %v7359_v17 }
 0xa87   : > { %4401 = vmatprep.subr.bf16.mxu0 %v5529_v1 }
 0xb3c   : > { %v2040_v18 = vpop.f32.mrb[32].mxu0 }
 0xb3d   : > { %v2041_v13 = vadd.f32 %v7360_v11, %v2040_v18  ;;  %v4339_v19 = vpop.f32.mrb[33].mxu0 }
 0xb3e   : > { %v2043_v21 = vpop.f32.mrb[34].mxu0 }
 0xb3f   : > { %v2046_v22 = vmax.f32 %v2041_v13, 0.0  ;;  %v4340_v23 = vpop.f32.mrb[35].mxu0 }
 0xb41   : > { %v6544_v24 = vpack.c.bf16 %v2046_v22, %v2046_v22 }
 0xb43   : > { %4358 = vmatmul.mubr.bf16.vlgmr.msra.gmra.mrb[32].mxu1 %v6544_v24 }
 0xb44   : > { %4382 = vmatpush3.bf16.msra.mxu1 %v6188_v5  ;;  %4397 = vmatprep.mubr.msk.bf16.mxu1 %vm5530_vm0, %v5529_v1 }
 0xb45   : > { %4383 = vmatprep.subr.bf16.mxu1 %v5529_v1 }
 0xb48   : > { %4384 = vmatpush3.bf16.msra.mxu1 %v6191_v7 }
 0xb49   : > { %4385 = vmatprep.subr.bf16.mxu1 %v5529_v1 }
 0xb4c   : > { %4386 = vmatpush3.bf16.msra.mxu1 %v6195_v14 }
 0xb4d   : > { %4387 = vmatprep.subr.bf16.mxu1 %v5529_v1 }
 0xb50   : > { %4388 = vmatpush3.bf16.msra.mxu1 %v6199_v16 }
 0xb51   : > { %4389 = vmatprep.subr.bf16.mxu1 %v5529_v1 }
 0xb54   : > { %4390 = vmatpush3.bf16.msra.mxu1 %v6203_v26 }
 0xb55   : > { %4391 = vmatprep.subr.bf16.mxu1 %v5529_v1 }
 0xb58   : > { %4392 = vmatpush3.bf16.msra.mxu1 %v6207_v27 }
 0xb59   : > { %4393 = vmatprep.subr.bf16.mxu1 %v5529_v1 }
 0xb5c   : > { %4394 = vmatpush3.bf16.msra.mxu1 %v6220_v46 }
 0xb5d   : > { %4395 = vmatprep.subr.bf16.mxu1 %v5529_v1 }
 0xb60   : > { %4396 = vmatpush3.bf16.msra.mxu1 %v7361_v55 }
 0xb61   : > { %4421 = vmatprep.subr.bf16.mxu1 %v5529_v1 }
 0xc16   : > { %v2082_v33 = vpop.f32.mrb[32].mxu1 }
 0xc17   : > { %v2083_v0 = vadd.f32 %v7362_v56, %v2082_v33  ;;  %v4359_v30 = vpop.f32.mrb[33].mxu1 }
 0xc18   : > { %v2085_v25 = vpop.f32.mrb[34].mxu1  ;;  %v3164_v30 = vstv %s3587_s13  ;;  %s3606_s13 = sld [smem:[#allocation18 + $0x103]] }
 0xc19   : > { %v2088_v35 = vmax.f32 %v2083_v0, 0.0  ;;  %v4360_v36 = vpop.f32.mrb[35].mxu1  ;;  %v3229_v25 = vstv %s3604_s15  ;;  %s7030_s15 = sld [smem:[#allocation18 + $0x4]] }
 0xc1b   : > { %v2089_v37 = vpack.c.bf16 %v2088_v35, %v2088_v35 }
 0xc1d   : > { %4378 = vmatmul.mubr.bf16.vlgmr.msra.gmra.mrb[36].mxu0 %v2089_v37 }
 0xc1e   : > { %4402 = vmatpush3.bf16.msra.mxu0 %v6228_v58  ;;  %4417 = vmatprep.mubr.msk.bf16.mxu0 %vm5530_vm0, %v5529_v1 }
 0xc1f   : > { %4403 = vmatprep.subr.bf16.mxu0 %v5529_v1 }
 0xc22   : > { %4404 = vmatpush3.bf16.msra.mxu0 %v6231_v59 }
 0xc23   : > { %4405 = vmatprep.subr.bf16.mxu0 %v5529_v1 }
 0xc26   : > { %4406 = vmatpush3.bf16.msra.mxu0 %v6235_v60 }
 0xc27   : > { %4407 = vmatprep.subr.bf16.mxu0 %v5529_v1 }
 0xc2a   : > { %4408 = vmatpush3.bf16.msra.mxu0 %v6239_v61 }
 0xc2b   : > { %4409 = vmatprep.subr.bf16.mxu0 %v5529_v1 }
 0xc2e   : > { %4410 = vmatpush3.bf16.msra.mxu0 %v6243_v62 }
 0xc2f   : > { %4411 = vmatprep.subr.bf16.mxu0 %v5529_v1 }
 0xc32   : > { %4412 = vmatpush3.bf16.msra.mxu0 %v6247_v63 }
 0xc33   : > { %4413 = vmatprep.subr.bf16.mxu0 %v5529_v1 }
 0xc36   : > { %4414 = vmatpush3.bf16.msra.mxu0 %v6251_v29 }
 0xc37   : > { %4415 = vmatprep.subr.bf16.mxu0 %v5529_v1 }
 0xc3a   : > { %4416 = vmatpush3.bf16.msra.mxu0 %v6264_v3 }
 0xc3b   : > { %4441 = vmatprep.subr.bf16.mxu0 %v5529_v1 }
 0xcf0   : > { %v2124_v38 = vpop.f32.mrb[36].mxu0 }
 0xcf1   : > { %v2125_v40 = vadd.f32 %v7363_v39, %v2124_v38  ;;  %v4379_v49 = vpop.f32.mrb[37].mxu0 }
 0xcf2   : > { %v2127_v41 = vpop.f32.mrb[38].mxu0 }
 0xcf3   : > { %v2130_v50 = vmax.f32 %v2125_v40, 0.0  ;;  %v4380_v47 = vpop.f32.mrb[39].mxu0 }
 0xcf5   : > { %v2131_v53 = vpack.c.bf16 %v2130_v50, %v2130_v50 }
 0xcf7   : > { %4398 = vmatmul.mubr.bf16.vlgmr.msra.gmra.mrb[36].mxu1 %v2131_v53 }
 0xcf8   : > { %4422 = vmatpush3.bf16.msra.mxu1 %v6268_v2  ;;  %4437 = vmatprep.mubr.msk.bf16.mxu1 %vm5530_vm0, %v5529_v1 }
 0xcf9   : > { %4423 = vmatprep.subr.bf16.mxu1 %v5529_v1 }
 0xcfc   : > { %4424 = vmatpush3.bf16.msra.mxu1 %v6271_v31 }
 0xcfd   : > { %4425 = vmatprep.subr.bf16.mxu1 %v5529_v1 }
 0xd00   : > { %4426 = vmatpush3.bf16.msra.mxu1 %v6275_v57 }
 0xd01   : > { %4427 = vmatprep.subr.bf16.mxu1 %v5529_v1 }
 0xd04   : > { %4428 = vmatpush3.bf16.msra.mxu1 %v6279_v28 }
 0xd05   : > { %4429 = vmatprep.subr.bf16.mxu1 %v5529_v1 }
 0xd08   : > { %4430 = vmatpush3.bf16.msra.mxu1 %v6283_v42 }
 0xd09   : > { %4431 = vmatprep.subr.bf16.mxu1 %v5529_v1 }
 0xd0c   : > { %4432 = vmatpush3.bf16.msra.mxu1 %v6287_v43 }
 0xd0d   : > { %4433 = vmatprep.subr.bf16.mxu1 %v5529_v1 }
 0xd10   : > { %4434 = vmatpush3.bf16.msra.mxu1 %v6291_v44 }
 0xd11   : > { %4435 = vmatprep.subr.bf16.mxu1 %v5529_v1 }
 0xd14   : > { %4436 = vmatpush3.bf16.msra.mxu1 %v6337_v51 }
 0xd15   : > { %4461 = vmatprep.subr.bf16.mxu1 %v5529_v1 }
 0xdca   : > { %v2166_v54 = vpop.f32.mrb[36].mxu1 }
 0xdcb   : > { %v2167_v17 = vadd.f32 %v6299_v45, %v2166_v54  ;;  %v4399_v18 = vpop.f32.mrb[37].mxu1 }
 0xdcc   : > { %v2169_v11 = vpop.f32.mrb[38].mxu1 }
 0xdcd   : > { %v2172_v13 = vmax.f32 %v2167_v17, 0.0  ;;  %v4400_v19 = vpop.f32.mrb[39].mxu1 }
 0xdcf   : > { %v2173_v21 = vpack.c.bf16 %v2172_v13, %v2172_v13 }
 0xdd1   : > { %4418 = vmatmul.mubr.bf16.vlgmr.msra.gmra.mrb[40].mxu0 %v2173_v21 }
 0xdd2   : > { %4442 = vmatpush3.bf16.msra.mxu0 %v6188_v5  ;;  %4457 = vmatprep.mubr.msk.bf16.mxu0 %vm5530_vm0, %v5529_v1 }
 0xdd3   : > { %4443 = vmatprep.subr.bf16.mxu0 %v5529_v1 }
 0xdd6   : > { %4444 = vmatpush3.bf16.msra.mxu0 %v6191_v7 }
 0xdd7   : > { %4445 = vmatprep.subr.bf16.mxu0 %v5529_v1 }
 0xdda   : > { %4446 = vmatpush3.bf16.msra.mxu0 %v6195_v14 }
 0xddb   : > { %4447 = vmatprep.subr.bf16.mxu0 %v5529_v1 }
 0xdde   : > { %4448 = vmatpush3.bf16.msra.mxu0 %v6199_v16 }
 0xddf   : > { %4449 = vmatprep.subr.bf16.mxu0 %v5529_v1 }
 0xde2   : > { %4450 = vmatpush3.bf16.msra.mxu0 %v6203_v26 }
 0xde3   : > { %4451 = vmatprep.subr.bf16.mxu0 %v5529_v1 }
 0xde6   : > { %4452 = vmatpush3.bf16.msra.mxu0 %v6207_v27 }
 0xde7   : > { %4453 = vmatprep.subr.bf16.mxu0 %v5529_v1 }
 0xdea   : > { %4454 = vmatpush3.bf16.msra.mxu0 %v6220_v46 }
 0xdeb   : > { %4455 = vmatprep.subr.bf16.mxu0 %v5529_v1 }
 0xdee   : > { %4456 = vmatpush3.bf16.msra.mxu0 %v7361_v55 }
 0xdef   : > { %4481 = vmatprep.subr.bf16.mxu0 %v5529_v1 }
 0xdf1   : > { %4458 = vmatmul.mubr.bf16.vlgmr.msra.gmra.mrb[44].mxu0 %v6544_v24 }
 0xdf2   : > { %4482 = vmatpush3.bf16.msra.mxu0 %v6268_v2  ;;  %4497 = vmatprep.mubr.msk.bf16.mxu0 %vm5530_vm0, %v5529_v1 }
 0xdf3   : > { %4483 = vmatprep.subr.bf16.mxu0 %v5529_v1 }
 0xdf6   : > { %4484 = vmatpush3.bf16.msra.mxu0 %v6271_v31 }
 0xdf7   : > { %4485 = vmatprep.subr.bf16.mxu0 %v5529_v1 }
 0xdfa   : > { %4486 = vmatpush3.bf16.msra.mxu0 %v6275_v57 }
 0xdfb   : > { %4487 = vmatprep.subr.bf16.mxu0 %v5529_v1 }
 0xdfe   : > { %4488 = vmatpush3.bf16.msra.mxu0 %v6279_v28 }
 0xdff   : > { %4489 = vmatprep.subr.bf16.mxu0 %v5529_v1 }
 0xe02   : > { %4490 = vmatpush3.bf16.msra.mxu0 %v6283_v42 }
 0xe03   : > { %4491 = vmatprep.subr.bf16.mxu0 %v5529_v1 }
 0xe06   : > { %4492 = vmatpush3.bf16.msra.mxu0 %v6287_v43 }
 0xe07   : > { %4493 = vmatprep.subr.bf16.mxu0 %v5529_v1 }
 0xe0a   : > { %4494 = vmatpush3.bf16.msra.mxu0 %v6291_v44 }
 0xe0b   : > { %4495 = vmatprep.subr.bf16.mxu0 %v5529_v1 }
 0xe0e   : > { %4496 = vmatpush3.bf16.msra.mxu0 %v6337_v51 }
 0xe0f   : > { %4521 = vmatprep.subr.bf16.mxu0 %v5529_v1 }
 0xea4   : > { %v2208_v5 = vpop.f32.mrb[40].mxu0 }
 0xea5   : > { %v2209_v7 = vadd.f32 %v6346_v52, %v2208_v5  ;;  %v4419_v14 = vpop.f32.mrb[41].mxu0  ;;  %v6724_v5 = vld [vmem:[#allocation17] sm:$0xff]  }
 0xea6   : > { %v2211_v16 = vpop.f32.mrb[42].mxu0  ;;  %v6734_v14 = vld [vmem:[#allocation17 + $0x10] sm:$0xff]  }
 0xea7   : > { %v2214_v26 = vmax.f32 %v2209_v7, 0.0  ;;  %v4420_v27 = vpop.f32.mrb[43].mxu0  ;;  %v6730_v7 = vld [vmem:[#allocation17 + $0x8] sm:$0xff]   ;;  %v6738_v16 = vld [vmem:[#allocation17 + $0x18] sm:$0xff]  }
 0xea8   : > { %v6746_v27 = vld [vmem:[#allocation17 + $0x28] sm:$0xff]  }
 0xea9   : > { %v2215_v46 = vpack.c.bf16 %v2214_v26, %v2214_v26  ;;  %v6742_v26 = vld [vmem:[#allocation17 + $0x20] sm:$0xff]  }
 0xeab   : > { %4438 = vmatmul.mubr.bf16.vlgmr.msra.gmra.mrb[40].mxu1 %v2215_v46  ;;  %v6750_v46 = vld [vmem:[#allocation17 + $0x30] sm:$0xff]  }
 0xeac   : > { %4462 = vmatpush3.bf16.msra.mxu1 %v6228_v58  ;;  %4477 = vmatprep.mubr.msk.bf16.mxu1 %vm5530_vm0, %v5529_v1 }
 0xead   : > { %4463 = vmatprep.subr.bf16.mxu1 %v5529_v1 }
 0xeb0   : > { %4464 = vmatpush3.bf16.msra.mxu1 %v6231_v59 }
 0xeb1   : > { %4465 = vmatprep.subr.bf16.mxu1 %v5529_v1 }
 0xeb4   : > { %4466 = vmatpush3.bf16.msra.mxu1 %v6235_v60 }
 0xeb5   : > { %4467 = vmatprep.subr.bf16.mxu1 %v5529_v1 }
 0xeb8   : > { %4468 = vmatpush3.bf16.msra.mxu1 %v6239_v61 }
 0xeb9   : > { %4469 = vmatprep.subr.bf16.mxu1 %v5529_v1 }
 0xebc   : > { %4470 = vmatpush3.bf16.msra.mxu1 %v6243_v62 }
 0xebd   : > { %4471 = vmatprep.subr.bf16.mxu1 %v5529_v1 }
 0xec0   : > { %4472 = vmatpush3.bf16.msra.mxu1 %v6247_v63 }
 0xec1   : > { %4473 = vmatprep.subr.bf16.mxu1 %v5529_v1 }
 0xec4   : > { %v2291_v22 = vpop.f32.mrb[44].mxu0  ;;  %4474 = vmatpush3.bf16.msra.mxu1 %v6251_v29 }
 0xec5   : > { %v2292_v23 = vadd.f32 %v6299_v45, %v2291_v22  ;;  %v4459_v24 = vpop.f32.mrb[45].mxu0  ;;  %4475 = vmatprep.subr.bf16.mxu1 %v5529_v1 }
 0xec6   : > { %v2294_v55 = vpop.f32.mrb[46].mxu0 }
 0xec7   : > { %v2297_v33 = vmax.f32 %v2292_v23, 0.0  ;;  %v4460_v56 = vpop.f32.mrb[47].mxu0 }
 0xec8   : > { %4476 = vmatpush3.bf16.msra.mxu1 %v6264_v3 }
 0xec9   : > { %v2298_v0 = vpack.c.bf16 %v2297_v33, %v2297_v33  ;;  %4501 = vmatprep.subr.bf16.mxu1 %v5529_v1 }
 0xecb   : > { %4478 = vmatmul.mubr.bf16.vlgmr.msra.gmra.mrb[44].mxu1 %v2298_v0 }
 0xecc   : > { %4502 = vmatpush3.bf16.msra.mxu1 %v6228_v58  ;;  %4517 = vmatprep.mubr.msk.bf16.mxu1 %vm5530_vm0, %v5529_v1  ;;  %v5071_v58 = vld [vmem:[#allocation8 + $0x10] sm:$0xff]  }
 0xecd   : > { %4503 = vmatprep.subr.bf16.mxu1 %v5529_v1 }
 0xed0   : > { %4504 = vmatpush3.bf16.msra.mxu1 %v6231_v59  ;;  %v5072_v59 = vld [vmem:[#allocation8 + $0x18] sm:$0xff]  }
 0xed1   : > { %4505 = vmatprep.subr.bf16.mxu1 %v5529_v1 }
 0xed4   : > { %4506 = vmatpush3.bf16.msra.mxu1 %v6235_v60  ;;  %v5073_v60 = vld [vmem:[#allocation8 + $0x20] sm:$0xff]  }
 0xed5   : > { %4507 = vmatprep.subr.bf16.mxu1 %v5529_v1 }
 0xed8   : > { %4508 = vmatpush3.bf16.msra.mxu1 %v6239_v61  ;;  %v5074_v61 = vld [vmem:[#allocation8 + $0x28] sm:$0xff]  }
 0xed9   : > { %4509 = vmatprep.subr.bf16.mxu1 %v5529_v1 }
 0xedc   : > { %4510 = vmatpush3.bf16.msra.mxu1 %v6243_v62  ;;  %v5075_v62 = vld [vmem:[#allocation8 + $0x30] sm:$0xff]  }
 0xedd   : > { %4511 = vmatprep.subr.bf16.mxu1 %v5529_v1 }
 0xee0   : > { %4512 = vmatpush3.bf16.msra.mxu1 %v6247_v63  ;;  %v5076_v63 = vld [vmem:[#allocation8 + $0x38] sm:$0xff]  }
 0xee1   : > { %4513 = vmatprep.subr.bf16.mxu1 %v5529_v1 }
 0xee4   : > { %4514 = vmatpush3.bf16.msra.mxu1 %v6251_v29  ;;  %v6712_v29 = vld [vmem:[%s7364_s10] ss:$0 sm:$0xff]  ;;  %s3574_s10 = sld [smem:[#allocation18 + $0x3]] }
 0xee5   : > { %4515 = vmatprep.subr.bf16.mxu1 %v5529_v1 }
 0xee8   : > { %4516 = vmatpush3.bf16.msra.mxu1 %v6264_v3  ;;  %v5070_v3 = vld [vmem:[#allocation8 + $0x8] sm:$0xff]  }
 0xee9   : > { %4541 = vmatprep.subr.bf16.mxu1 %v5529_v1 }
 0xeeb   : > { %4518 = vmatmul.mubr.bf16.vlgmr.msra.gmra.mrb[48].mxu1 %v6522_v6  ;;  %v3100_v6 = vstv %s3572_s11  ;;  %s3589_s11 = sld [smem:[#allocation18 + $0x83]] }
 0xeec   : > { %4542 = vmatpush3.bf16.msra.mxu1 %v6268_v2  ;;  %4557 = vmatprep.mubr.msk.bf16.mxu1 %vm5530_vm0, %v5529_v1  ;;  %v5069_v2 = vld [vmem:[#allocation8] sm:$0xff]  }
 0xeed   : > { %4543 = vmatprep.subr.bf16.mxu1 %v5529_v1 }
 0xef0   : > { %4544 = vmatpush3.bf16.msra.mxu1 %v6271_v31  ;;  %v1663_v31 = vadd.f32 %v6712_v29, %v6424_v4 }
 0xef1   : > { %4545 = vmatprep.subr.bf16.mxu1 %v5529_v1 }
 0xef4   : > { %4546 = vmatpush3.bf16.msra.mxu1 %v6275_v57  ;;  %v1668_v57 = vmax.f32 %v1663_v31, 0.0  ;;  %v5093_v31 = vld [vmem:[#allocation9 + $0x30] sm:$0xff]  }
 0xef5   : > { %4547 = vmatprep.subr.bf16.mxu1 %v5529_v1 }
 0xef8   : > { %4548 = vmatpush3.bf16.msra.mxu1 %v6279_v28 }
 0xef9   : > { %4549 = vmatprep.subr.bf16.mxu1 %v5529_v1 }
 0xefc   : > { %4550 = vmatpush3.bf16.msra.mxu1 %v6283_v42  ;;  %v3096_v42 = vstv %s3095_s29  ;;  %s3607_s29 = sld [smem:[#allocation18 + $0x104]] }
 0xefd   : > { %4551 = vmatprep.subr.bf16.mxu1 %v5529_v1  ;;  %v3097_v38 = vmul.f32 %v3096_v42, %v1668_v57 }
 0xf00   : > { %4552 = vmatpush3.bf16.msra.mxu1 %v6287_v43  ;;  %v3160_v43 = vstv %s3586_s24  ;;  %s3573_s24 = sld [smem:[#allocation18 + $0x2]] }
 0xf01   : > { %4553 = vmatprep.subr.bf16.mxu1 %v5529_v1  ;;  %v3161_v39 = vmul.f32 %v3160_v43, %v1668_v57 }
 0xf04   : > { %4554 = vmatpush3.bf16.msra.mxu1 %v6291_v44 }
 0xf05   : > { %4555 = vmatprep.subr.bf16.mxu1 %v5529_v1 }
 0xf08   : > { %4556 = vmatpush3.bf16.msra.mxu1 %v6337_v51 }
 0xf09   : > { %4581 = vmatprep.subr.bf16.mxu1 %v5529_v1 }
 0xf0b   : > { %4558 = vmatmul.mubr.bf16.vlgmr.msra.gmra.mrb[52].mxu1 %v6500_v34  ;;  %v3225_v34 = vstv %s3603_s22  ;;  %s7032_s22 = sld [smem:[#allocation18 + $0x84]] }
 0xf0c   : > { %4582 = vmatpush3.bf16.msra.mxu1 %v5069_v2  ;;  %4597 = vmatprep.mubr.msk.bf16.mxu1 %vm5530_vm0, %v5529_v1  ;;  %v3226_v40 = vmul.f32 %v3225_v34, %v1668_v57  ;;  %v5094_v57 = vld [vmem:[#allocation9 + $0x38] sm:$0xff]  }
 0xf0d   : > { %4583 = vmatprep.subr.bf16.mxu1 %v5529_v1 }
 0xf10   : > { %4584 = vmatpush3.bf16.msra.mxu1 %v5070_v3  ;;  %v5086_v3 = vld [vmem:[#allocation6 + $0x38] sm:$0xff]  }
 0xf11   : > { %4585 = vmatprep.subr.bf16.mxu1 %v5529_v1 }
 0xf14   : > { %4586 = vmatpush3.bf16.msra.mxu1 %v5071_v58  ;;  %v5087_v58 = vld [vmem:[#allocation9] sm:$0xff]  }
 0xf15   : > { %4587 = vmatprep.subr.bf16.mxu1 %v5529_v1 }
 0xf18   : > { %4588 = vmatpush3.bf16.msra.mxu1 %v5072_v59  ;;  %v5088_v59 = vld [vmem:[#allocation9 + $0x8] sm:$0xff]  }
 0xf19   : > { %4589 = vmatprep.subr.bf16.mxu1 %v5529_v1 }
 0xf1c   : > { %4590 = vmatpush3.bf16.msra.mxu1 %v5073_v60  ;;  %v5089_v60 = vld [vmem:[#allocation9 + $0x10] sm:$0xff]  }
 0xf1d   : > { %4591 = vmatprep.subr.bf16.mxu1 %v5529_v1 }
 0xf20   : > { %4592 = vmatpush3.bf16.msra.mxu1 %v5074_v61  ;;  %v5090_v61 = vld [vmem:[#allocation9 + $0x18] sm:$0xff]  }
 0xf21   : > { %4593 = vmatprep.subr.bf16.mxu1 %v5529_v1 }
 0xf24   : > { %4594 = vmatpush3.bf16.msra.mxu1 %v5075_v62  ;;  %v5091_v62 = vld [vmem:[#allocation9 + $0x20] sm:$0xff]  }
 0xf25   : > { %4595 = vmatprep.subr.bf16.mxu1 %v5529_v1 }
 0xf28   : > { %4596 = vmatpush3.bf16.msra.mxu1 %v5076_v63  ;;  %v5092_v63 = vld [vmem:[#allocation9 + $0x28] sm:$0xff]  }
 0xf29   : > { %4621 = vmatprep.subr.bf16.mxu1 %v5529_v1 }
 0xf7e   : > { %v2250_v28 = vpop.f32.mrb[40].mxu1 }
 0xf7f   : > { %v2251_v44 = vadd.f32 %v6712_v29, %v2250_v28  ;;  %v4439_v45 = vpop.f32.mrb[41].mxu1 }
 0xf80   : > { %v2253_v35 = vpop.f32.mrb[42].mxu1 }
 0xf81   : > { %v2256_v36 = vmax.f32 %v2251_v44, 0.0  ;;  %v4440_v37 = vpop.f32.mrb[43].mxu1  ;;  %v5095_v35 = vld [vmem:[%s7333_s14] ss:$0 sm:$0xff]  ;;  %s7114_s14 = sld [smem:[#allocation18 + $0x8a]] }
 0xf83   : > { %v3101_v49 = vmul.f32 %v3100_v6, %v2256_v36  ;;  %v3165_v41 = vmul.f32 %v3164_v30, %v2256_v36  ;;  %v3230_v4 = vmul.f32 %v3229_v25, %v2256_v36 }
 0xf85   : > { %v6717_v50 = vadd.f32 %v3101_v49, %v3097_v38  ;;  %v6719_v47 = vadd.f32 %v3165_v41, %v3161_v39  ;;  %v6721_v53 = vadd.f32 %v3230_v4, %v3226_v40  ;;  %v5096_v41 = vld [vmem:[#allocation11] sm:$0xff]   ;;  %v5097_v4 = vld [vmem:[#allocation11 + $0x8] sm:$0xff]  }
 0xf9e   : > { %v2333_v54 = vpop.f32.mrb[44].mxu1 }
 0xf9f   : > { %v2334_v17 = vadd.f32 %v6346_v52, %v2333_v54  ;;  %v4479_v18 = vpop.f32.mrb[45].mxu1  ;;  %v5098_v54 = vld [vmem:[#allocation11 + $0x10] sm:$0xff]  }
 0xfa0   : > { %v2336_v11 = vpop.f32.mrb[46].mxu1  ;;  %v5100_v18 = vld [vmem:[#allocation11 + $0x20] sm:$0xff]  }
 0xfa1   : > { %v2339_v13 = vmax.f32 %v2334_v17, 0.0  ;;  %v4480_v19 = vpop.f32.mrb[47].mxu1  ;;  %v5099_v17 = vld [vmem:[#allocation11 + $0x18] sm:$0xff]   ;;  %v5101_v11 = vld [vmem:[#allocation11 + $0x28] sm:$0xff]  }
 0xfa2   : > { %v5103_v19 = vld [vmem:[#allocation11 + $0x38] sm:$0xff]  }
 0xfa3   : > { %v2340_v21 = vpack.c.bf16 %v2339_v13, %v2339_v13  ;;  %v5102_v13 = vld [vmem:[#allocation11 + $0x30] sm:$0xff]  }
 0xfa5   : > { %4498 = vmatmul.mubr.bf16.vlgmr.msra.gmra.mrb[48].mxu0 %v2340_v21 }
 0xfa6   : > { %4522 = vmatpush3.bf16.msra.mxu0 %v6724_v5  ;;  %4537 = vmatprep.mubr.msk.bf16.mxu0 %vm5530_vm0, %v5529_v1 }
 0xfa7   : > { %4523 = vmatprep.subr.bf16.mxu0 %v5529_v1 }
 0xfaa   : > { %4524 = vmatpush3.bf16.msra.mxu0 %v6730_v7 }
 0xfab   : > { %4525 = vmatprep.subr.bf16.mxu0 %v5529_v1 }
 0xfae   : > { %4526 = vmatpush3.bf16.msra.mxu0 %v6734_v14 }
 0xfaf   : > { %4527 = vmatprep.subr.bf16.mxu0 %v5529_v1 }
 0xfb2   : > { %4528 = vmatpush3.bf16.msra.mxu0 %v6738_v16 }
 0xfb3   : > { %4529 = vmatprep.subr.bf16.mxu0 %v5529_v1 }
 0xfb6   : > { %4530 = vmatpush3.bf16.msra.mxu0 %v6742_v26 }
 0xfb7   : > { %4531 = vmatprep.subr.bf16.mxu0 %v5529_v1 }
 0xfba   : > { %4532 = vmatpush3.bf16.msra.mxu0 %v6746_v27 }
 0xfbb   : > { %4533 = vmatprep.subr.bf16.mxu0 %v5529_v1 }
 0xfbe   : > { %4534 = vmatpush3.bf16.msra.mxu0 %v6750_v46  ;;  %v2416_v22 = vpop.f32.mrb[48].mxu1 }
 0xfbf   : > { %v2417_v23 = vadd.f32 %v6346_v52, %v2416_v22  ;;  %v4519_v24 = vpop.f32.mrb[49].mxu1  ;;  %4535 = vmatprep.subr.bf16.mxu0 %v5529_v1  ;;  %v5085_v52 = vld [vmem:[#allocation6 + $0x30] sm:$0xff]  }
 0xfc0   : > { %v2419_v55 = vpop.f32.mrb[50].mxu1  ;;  %v5104_v22 = vld [vmem:[%s7334_s3] ss:$0 sm:$0xff]  ;;  %s7103_s3 = sld [smem:[#allocation18 + $0x108]] }
 0xfc1   : > { %v2422_v33 = vmax.f32 %v2417_v23, 0.0  ;;  %v4520_v56 = vpop.f32.mrb[51].mxu1 }
 0xfc2   : > { %4536 = vmatpush3.bf16.msra.mxu0 %v6337_v51  ;;  %v5084_v51 = vld [vmem:[#allocation6 + $0x28] sm:$0xff]  }
 0xfc3   : > { %v2423_v0 = vpack.c.bf16 %v2422_v33, %v2422_v33  ;;  %4561 = vmatprep.subr.bf16.mxu0 %v5529_v1 }
 0xfc5   : > { %4538 = vmatmul.mubr.bf16.vlgmr.msra.gmra.mrb[52].mxu0 %v2423_v0 }
 0xfc6   : > { %4562 = vmatpush3.bf16.msra.mxu0 %v6446_v8  ;;  %4577 = vmatprep.mubr.msk.bf16.mxu0 %vm5530_vm0, %v5529_v1 }
 0xfc7   : > { %4563 = vmatprep.subr.bf16.mxu0 %v5529_v1 }
 0xfca   : > { %4564 = vmatpush3.bf16.msra.mxu0 %v6452_v10  ;;  %v6773_v10 = vld [vmem:[%s5971_s4 + $0x10] sm:$0xff] }
 0xfcb   : > { %4565 = vmatprep.subr.bf16.mxu0 %v5529_v1 }
 0xfce   : > { %4566 = vmatpush3.bf16.msra.mxu0 %v6456_v12 }
 0xfcf   : > { %4567 = vmatprep.subr.bf16.mxu0 %v5529_v1 }
 0xfd2   : > { %4568 = vmatpush3.bf16.msra.mxu0 %v6460_v32 }
 0xfd3   : > { %4569 = vmatprep.subr.bf16.mxu0 %v5529_v1 }
 0xfd6   : > { %4570 = vmatpush3.bf16.msra.mxu0 %v6464_v48  ;;  %v2509_v48 = vpack.c.bf16 %v6773_v10, %v6773_v10 }
 0xfd7   : > { %4571 = vmatprep.subr.bf16.mxu0 %v5529_v1 }
 0xfda   : > { %4572 = vmatpush3.bf16.msra.mxu0 %v5084_v51  ;;  %v5105_v51 = vld [vmem:[#allocation12] sm:$0xff]  }
 0xfdb   : > { %4573 = vmatprep.subr.bf16.mxu0 %v5529_v1 }
 0xfde   : > { %4574 = vmatpush3.bf16.msra.mxu0 %v5085_v52  ;;  %v6770_v8 = vpop.f32.mrb[52].mxu1  ;;  %v5106_v52 = vld [vmem:[#allocation12 + $0x8] sm:$0xff]  }
 0xfdf   : > { %v4559_v12 = vpop.f32.mrb[53].mxu1  ;;  %4575 = vmatprep.subr.bf16.mxu0 %v5529_v1 }
 0xfe0   : > { %v2502_v32 = vpop.f32.mrb[54].mxu1  ;;  %v5107_v12 = vld [vmem:[#allocation12 + $0x10] sm:$0xff]  }
 0xfe1   : > { %v4560_v2 = vpop.f32.mrb[55].mxu1  ;;  %v5108_v32 = vld [vmem:[#allocation12 + $0x18] sm:$0xff]  }
 0xfe2   : > { %4576 = vmatpush3.bf16.msra.mxu0 %v5086_v3  ;;  %v5109_v2 = vld [vmem:[#allocation12 + $0x20] sm:$0xff]   ;;  %v5111_v3 = vld [vmem:[#allocation12 + $0x30] sm:$0xff]  }
 0xfe3   : > { %4601 = vmatprep.subr.bf16.mxu0 %v5529_v1 }
 0xfe5   : > { %4578 = vmatmul.mubr.bf16.vlgmr.msra.gmra.mrb[56].mxu0 %v2509_v48  ;;  %v5110_v48 = vld [vmem:[#allocation12 + $0x28] sm:$0xff]  }
 0xfe6   : > { %4602 = vmatpush3.bf16.msra.mxu0 %v5087_v58  ;;  %4617 = vmatprep.mubr.msk.bf16.mxu0 %vm5530_vm0, %v5529_v1  ;;  %v5112_v58 = vld [vmem:[#allocation12 + $0x38] sm:$0xff]  }
 0xfe7   : > { %4603 = vmatprep.subr.bf16.mxu0 %v5529_v1 }
 0xfea   : > { %4604 = vmatpush3.bf16.msra.mxu0 %v5088_v59 }
 0xfeb   : > { %4605 = vmatprep.subr.bf16.mxu0 %v5529_v1 }
 0xfee   : > { %4606 = vmatpush3.bf16.msra.mxu0 %v5089_v60  ;;  %v5113_v60 = vld [vmem:[%s7341_s9] ss:$0 sm:$0xff]  ;;  %s7112_s9 = sld [smem:[#allocation18 + $0xa]] }
 0xfef   : > { %4607 = vmatprep.subr.bf16.mxu0 %v5529_v1 }
 0xff2   : > { %4608 = vmatpush3.bf16.msra.mxu0 %v5090_v61 }
 0xff3   : > { %4609 = vmatprep.subr.bf16.mxu0 %v5529_v1 }
 0xff6   : > { %4610 = vmatpush3.bf16.msra.mxu0 %v5091_v62 }
 0xff7   : > { %4611 = vmatprep.subr.bf16.mxu0 %v5529_v1 }
 0xffa   : > { %4612 = vmatpush3.bf16.msra.mxu0 %v5092_v63 }
 0xffb   : > { %4613 = vmatprep.subr.bf16.mxu0 %v5529_v1 }
 0xffe   : > { %4614 = vmatpush3.bf16.msra.mxu0 %v5093_v31 }
 0xfff   : > { %4615 = vmatprep.subr.bf16.mxu0 %v5529_v1 }
0x1002   : > { %4616 = vmatpush3.bf16.msra.mxu0 %v5094_v57 }
0x1003   : > { %4641 = vmatprep.subr.bf16.mxu0 %v5529_v1 }
0x1078   : > { %v6789_v28 = vpop.f32.mrb[48].mxu0 }
0x1079   : > { %v4499_v42 = vpop.f32.mrb[49].mxu0 }
0x107a   : > { %v2378_v43 = vpop.f32.mrb[50].mxu0 }
0x107b   : > { %v4500_v44 = vpop.f32.mrb[51].mxu0  ;;  %v6831_v43 = vld [vmem:[#allocation14] sm:$0xff]  }
0x107c   : > { %v6837_v44 = vld [vmem:[#allocation14 + $0x8] sm:$0xff]  }
0x1098   : > { %v6791_v45 = vpop.f32.mrb[52].mxu0 }
0x1099   : > { %v4539_v34 = vpop.f32.mrb[53].mxu0 }
0x109a   : > { %v2461_v6 = vpop.f32.mrb[54].mxu0  ;;  %v6841_v34 = vld [vmem:[#allocation14 + $0x10] sm:$0xff]  }
0x109b   : > { %v4540_v30 = vpop.f32.mrb[55].mxu0  ;;  %v6845_v6 = vld [vmem:[#allocation14 + $0x18] sm:$0xff]  }
0x109c   : > { %v6849_v30 = vld [vmem:[#allocation14 + $0x20] sm:$0xff]  }
0x10b8   : > { %v2544_v25 = vpop.f32.mrb[56].mxu0 }
0x10b9   : > { %v2545_v36 = vadd.f32 %v5095_v35, %v2544_v25  ;;  %v4579_v37 = vpop.f32.mrb[57].mxu0  ;;  %v6853_v25 = vld [vmem:[#allocation14 + $0x28] sm:$0xff]   ;;  %v6857_v35 = vld [vmem:[#allocation14 + $0x30] sm:$0xff]  }
0x10ba   : > { %v2547_v38 = vpop.f32.mrb[58].mxu0 }
0x10bb   : > { %v2550_v39 = vmax.f32 %v2545_v36, 0.0  ;;  %v4580_v40 = vpop.f32.mrb[59].mxu0  ;;  %v6861_v36 = vld [vmem:[#allocation14 + $0x38] sm:$0xff]   ;;  %v5122_v38 = vld [vmem:[%s7345_s6] ss:$0 sm:$0xff]  ;;  %s7106_s6 = sld [smem:[#allocation18 + $0x8d]] }
0x10bd   : > { %v6796_v49 = vpack.c.bf16 %v2550_v39, %v2550_v39 }
0x10bf   : > { %4598 = vmatmul.mubr.bf16.vlgmr.msra.gmra.mrb[56].mxu1 %v6796_v49 }
0x10c0   : > { %4622 = vmatpush3.bf16.msra.mxu1 %v5096_v41  ;;  %4637 = vmatprep.mubr.msk.bf16.mxu1 %vm5530_vm0, %v5529_v1 }
0x10c1   : > { %4623 = vmatprep.subr.bf16.mxu1 %v5529_v1 }
0x10c4   : > { %4624 = vmatpush3.bf16.msra.mxu1 %v5097_v4 }
0x10c5   : > { %4625 = vmatprep.subr.bf16.mxu1 %v5529_v1 }
0x10c8   : > { %4626 = vmatpush3.bf16.msra.mxu1 %v5098_v54 }
0x10c9   : > { %4627 = vmatprep.subr.bf16.mxu1 %v5529_v1 }
0x10cc   : > { %4628 = vmatpush3.bf16.msra.mxu1 %v5099_v17 }
0x10cd   : > { %4629 = vmatprep.subr.bf16.mxu1 %v5529_v1 }
0x10d0   : > { %4630 = vmatpush3.bf16.msra.mxu1 %v5100_v18  ;;  %v6868_v18 = vld [vmem:[#allocation15] sm:$0xff]  }
0x10d1   : > { %4631 = vmatprep.subr.bf16.mxu1 %v5529_v1 }
0x10d4   : > { %4632 = vmatpush3.bf16.msra.mxu1 %v5101_v11  ;;  %v6874_v11 = vld [vmem:[#allocation15 + $0x8] sm:$0xff]  }
0x10d5   : > { %4633 = vmatprep.subr.bf16.mxu1 %v5529_v1 }
0x10d8   : > { %4634 = vmatpush3.bf16.msra.mxu1 %v5102_v13  ;;  %v6878_v13 = vld [vmem:[#allocation15 + $0x10] sm:$0xff]  }
0x10d9   : > { %4635 = vmatprep.subr.bf16.mxu1 %v5529_v1 }
0x10dc   : > { %4636 = vmatpush3.bf16.msra.mxu1 %v5103_v19  ;;  %v6882_v19 = vld [vmem:[#allocation15 + $0x18] sm:$0xff]  }
0x10dd   : > { %4661 = vmatprep.subr.bf16.mxu1 %v5529_v1 }
0x1192   : > { %v2586_v21 = vpop.f32.mrb[56].mxu1 }
0x1193   : > { %v2587_v23 = vadd.f32 %v5104_v22, %v2586_v21  ;;  %v4599_v24 = vpop.f32.mrb[57].mxu1  ;;  %v6886_v21 = vld [vmem:[#allocation15 + $0x20] sm:$0xff]   ;;  %v6890_v22 = vld [vmem:[#allocation15 + $0x28] sm:$0xff]  }
0x1194   : > { %v2589_v55 = vpop.f32.mrb[58].mxu1  ;;  %v6898_v24 = vld [vmem:[#allocation15 + $0x38] sm:$0xff]  }
0x1195   : > { %v2592_v33 = vmax.f32 %v2587_v23, 0.0  ;;  %v4600_v56 = vpop.f32.mrb[59].mxu1  ;;  %v6894_v23 = vld [vmem:[#allocation15 + $0x30] sm:$0xff]  }
0x1197   : > { %v6812_v0 = vpack.c.bf16 %v2592_v33, %v2592_v33  ;;  %v5131_v33 = vld [vmem:[%s7348_s16] ss:$0 sm:$0xff]  ;;  %s7116_s16 = sld [smem:[#allocation18 + $0x10a]] }
0x1199   : > { %4618 = vmatmul.mubr.bf16.vlgmr.msra.gmra.mrb[60].mxu0 %v6812_v0 }
0x119a   : > { %4642 = vmatpush3.bf16.msra.mxu0 %v5105_v51  ;;  %4657 = vmatprep.mubr.msk.bf16.mxu0 %vm5530_vm0, %v5529_v1 }
0x119b   : > { %4643 = vmatprep.subr.bf16.mxu0 %v5529_v1 }
0x119e   : > { %4644 = vmatpush3.bf16.msra.mxu0 %v5106_v52 }
0x119f   : > { %4645 = vmatprep.subr.bf16.mxu0 %v5529_v1 }
0x11a2   : > { %4646 = vmatpush3.bf16.msra.mxu0 %v5107_v12 }
0x11a3   : > { %4647 = vmatprep.subr.bf16.mxu0 %v5529_v1 }
0x11a6   : > { %4648 = vmatpush3.bf16.msra.mxu0 %v5108_v32 }
0x11a7   : > { %4649 = vmatprep.subr.bf16.mxu0 %v5529_v1 }
0x11aa   : > { %4650 = vmatpush3.bf16.msra.mxu0 %v5109_v2 }
0x11ab   : > { %4651 = vmatprep.subr.bf16.mxu0 %v5529_v1 }
0x11ae   : > { %4652 = vmatpush3.bf16.msra.mxu0 %v5110_v48  ;;  %v6921_v48 = vld [vmem:[#allocation17 + $0x38] sm:$0xff]  }
0x11af   : > { %4653 = vmatprep.subr.bf16.mxu0 %v5529_v1 }
0x11b2   : > { %4654 = vmatpush3.bf16.msra.mxu0 %v5111_v3 }
0x11b3   : > { %4655 = vmatprep.subr.bf16.mxu0 %v5529_v1 }
0x11b6   : > { %4656 = vmatpush3.bf16.msra.mxu0 %v5112_v58  ;;  %v6928_v58 = vld [vmem:[%s7350_s7] ss:$0 sm:$0xff]  ;;  %s7108_s7 = sld [smem:[#allocation18 + $0x10d]] }
0x11b7   : > { %4681 = vmatprep.subr.bf16.mxu0 %v5529_v1 }
0x126c   : > { %v2628_v59 = vpop.f32.mrb[60].mxu0 }
0x126d   : > { %v2629_v61 = vadd.f32 %v5113_v60, %v2628_v59  ;;  %v4619_v62 = vpop.f32.mrb[61].mxu0 }
0x126e   : > { %v2631_v63 = vpop.f32.mrb[62].mxu0 }
0x126f   : > { %v2634_v31 = vmax.f32 %v2629_v61, 0.0  ;;  %v4620_v57 = vpop.f32.mrb[63].mxu0 }
0x1271   : > { %v6828_v42 = vpack.c.bf16 %v2634_v31, %v2634_v31 }
0x1273   : > { %4638 = vmatmul.mubr.bf16.vlgmr.msra.gmra.mrb[60].mxu1 %v6828_v42 }
0x1274   : > { %4662 = vmatpush3.bf16.msra.mxu1 %v6831_v43  ;;  %4677 = vmatprep.mubr.msk.bf16.mxu1 %vm5530_vm0, %v5529_v1 }
0x1275   : > { %4663 = vmatprep.subr.bf16.mxu1 %v5529_v1 }
0x1278   : > { %4664 = vmatpush3.bf16.msra.mxu1 %v6837_v44 }
0x1279   : > { %4665 = vmatprep.subr.bf16.mxu1 %v5529_v1 }
0x127c   : > { %4666 = vmatpush3.bf16.msra.mxu1 %v6841_v34 }
0x127d   : > { %4667 = vmatprep.subr.bf16.mxu1 %v5529_v1 }
0x1280   : > { %4668 = vmatpush3.bf16.msra.mxu1 %v6845_v6 }
0x1281   : > { %4669 = vmatprep.subr.bf16.mxu1 %v5529_v1 }
0x1284   : > { %4670 = vmatpush3.bf16.msra.mxu1 %v6849_v30 }
0x1285   : > { %4671 = vmatprep.subr.bf16.mxu1 %v5529_v1 }
0x1288   : > { %4672 = vmatpush3.bf16.msra.mxu1 %v6853_v25 }
0x1289   : > { %4673 = vmatprep.subr.bf16.mxu1 %v5529_v1 }
0x128c   : > { %4674 = vmatpush3.bf16.msra.mxu1 %v6857_v35 }
0x128d   : > { %4675 = vmatprep.subr.bf16.mxu1 %v5529_v1 }
0x1290   : > { %4676 = vmatpush3.bf16.msra.mxu1 %v6861_v36 }
0x1291   : > { %4701 = vmatprep.subr.bf16.mxu1 %v5529_v1 }
0x1346   : > { %v2670_v37 = vpop.f32.mrb[60].mxu1 }
0x1347   : > { %v2671_v39 = vadd.f32 %v5122_v38, %v2670_v37  ;;  %v4639_v40 = vpop.f32.mrb[61].mxu1 }
0x1348   : > { %v2673_v41 = vpop.f32.mrb[62].mxu1 }
0x1349   : > { %v2676_v4 = vmax.f32 %v2671_v39, 0.0  ;;  %v4640_v54 = vpop.f32.mrb[63].mxu1 }
0x134b   : > { %v2677_v17 = vpack.c.bf16 %v2676_v4, %v2676_v4  ;;  %v2376_v4 = vadd.f32 %v6712_v29, %v6789_v28 }
0x134d   : > { %4658 = vmatmul.mubr.bf16.vlgmr.msra.gmra.mrb[64].mxu0 %v2677_v17 }
0x134e   : > { %4682 = vmatpush3.bf16.msra.mxu0 %v6868_v18  ;;  %4697 = vmatprep.mubr.msk.bf16.mxu0 %vm5530_vm0, %v5529_v1 }
0x134f   : > { %4683 = vmatprep.subr.bf16.mxu0 %v5529_v1 }
0x1352   : > { %4684 = vmatpush3.bf16.msra.mxu0 %v6874_v11 }
0x1353   : > { %4685 = vmatprep.subr.bf16.mxu0 %v5529_v1 }
0x1356   : > { %4686 = vmatpush3.bf16.msra.mxu0 %v6878_v13 }
0x1357   : > { %4687 = vmatprep.subr.bf16.mxu0 %v5529_v1 }
0x135a   : > { %4688 = vmatpush3.bf16.msra.mxu0 %v6882_v19 }
0x135b   : > { %4689 = vmatprep.subr.bf16.mxu0 %v5529_v1 }
0x135e   : > { %4690 = vmatpush3.bf16.msra.mxu0 %v6886_v21 }
0x135f   : > { %4691 = vmatprep.subr.bf16.mxu0 %v5529_v1 }
0x1362   : > { %4692 = vmatpush3.bf16.msra.mxu0 %v6890_v22 }
0x1363   : > { %4693 = vmatprep.subr.bf16.mxu0 %v5529_v1 }
0x1366   : > { %4694 = vmatpush3.bf16.msra.mxu0 %v6894_v23 }
0x1367   : > { %4695 = vmatprep.subr.bf16.mxu0 %v5529_v1 }
0x136a   : > { %4696 = vmatpush3.bf16.msra.mxu0 %v6898_v24 }
0x136b   : > { %4721 = vmatprep.subr.bf16.mxu0 %v5529_v1 }
0x1420   : > { %v2712_v55 = vpop.f32.mrb[64].mxu0 }
0x1421   : > { %v2713_v56 = vadd.f32 %v5131_v33, %v2712_v55  ;;  %v4659_v51 = vpop.f32.mrb[65].mxu0  ;;  %v2381_v33 = vmax.f32 %v2376_v4, 0.0 }
0x1422   : > { %v2715_v52 = vpop.f32.mrb[66].mxu0  ;;  %v3176_v51 = vstv %s7032_s22  ;;  %s7073_s22 = sld [smem:[#allocation18 + $0x87]] }
0x1423   : > { %v2718_v12 = vmax.f32 %v2713_v56, 0.0  ;;  %v4660_v32 = vpop.f32.mrb[67].mxu0  ;;  %v3112_v56 = vstv %s7030_s15  ;;  %s7071_s15 = sld [smem:[#allocation18 + $0x7]] }
0x1425   : > { %v2719_v2 = vpack.c.bf16 %v2718_v12, %v2718_v12 }
0x1427   : > { %4678 = vmatmul.mubr.bf16.vlgmr.msra.gmra.mrb[64].mxu1 %v2719_v2 }
0x1428   : > { %4702 = vmatpush3.bf16.msra.mxu1 %v6724_v5  ;;  %4717 = vmatprep.mubr.msk.bf16.mxu1 %vm5530_vm0, %v5529_v1 }
0x1429   : > { %4703 = vmatprep.subr.bf16.mxu1 %v5529_v1 }
0x142c   : > { %4704 = vmatpush3.bf16.msra.mxu1 %v6730_v7 }
0x142d   : > { %4705 = vmatprep.subr.bf16.mxu1 %v5529_v1 }
0x1430   : > { %4706 = vmatpush3.bf16.msra.mxu1 %v6734_v14 }
0x1431   : > { %4707 = vmatprep.subr.bf16.mxu1 %v5529_v1 }
0x1434   : > { %4708 = vmatpush3.bf16.msra.mxu1 %v6738_v16 }
0x1435   : > { %4709 = vmatprep.subr.bf16.mxu1 %v5529_v1 }
0x1438   : > { %4710 = vmatpush3.bf16.msra.mxu1 %v6742_v26 }
0x1439   : > { %4711 = vmatprep.subr.bf16.mxu1 %v5529_v1 }
0x143c   : > { %4712 = vmatpush3.bf16.msra.mxu1 %v6746_v27 }
0x143d   : > { %4713 = vmatprep.subr.bf16.mxu1 %v5529_v1 }
0x1440   : > { %4714 = vmatpush3.bf16.msra.mxu1 %v6750_v46 }
0x1441   : > { %4715 = vmatprep.subr.bf16.mxu1 %v5529_v1 }
0x1444   : > { %4716 = vmatpush3.bf16.msra.mxu1 %v6921_v48 }
0x1445   : > { %4741 = vmatprep.subr.bf16.mxu1 %v5529_v1 }
0x14fa   : > { %v2754_v3 = vpop.f32.mrb[64].mxu1 }
0x14fb   : > { %v2755_v59 = vadd.f32 %v6928_v58, %v2754_v3  ;;  %v4679_v60 = vpop.f32.mrb[65].mxu1  ;;  %v3241_v3 = vstv %s3607_s29  ;;  %s3610_s29 = sld [smem:[#allocation18 + $0x107]] }
0x14fc   : > { %v2757_v61 = vpop.f32.mrb[66].mxu1 }
0x14fd   : > { %v2760_v62 = vmax.f32 %v2755_v59, 0.0  ;;  %v4680_v63 = vpop.f32.mrb[67].mxu1 }
0x14fe   : > { %v3177_v63 = vmul.f32 %v3176_v51, %v2381_v33 }
0x14ff   : > { %v2761_v31 = vpack.c.bf16 %v2760_v62, %v2760_v62  ;;  %v3113_v62 = vmul.f32 %v3112_v56, %v2381_v33 }
0x1501   : > { %4698 = vmatmul.mubr.bf16.vlgmr.msra.gmra.mrb[68].mxu0 %v2761_v31  ;;  %v3242_v31 = vmul.f32 %v3241_v3, %v2381_v33 }
0x1502   : > { %4722 = vmatpush3.bf16.msra.mxu0 %v6831_v43  ;;  %4737 = vmatprep.mubr.msk.bf16.mxu0 %vm5530_vm0, %v5529_v1 }
0x1503   : > { %4723 = vmatprep.subr.bf16.mxu0 %v5529_v1 }
0x1506   : > { %4724 = vmatpush3.bf16.msra.mxu0 %v6837_v44 }
0x1507   : > { %4725 = vmatprep.subr.bf16.mxu0 %v5529_v1 }
0x150a   : > { %4726 = vmatpush3.bf16.msra.mxu0 %v6841_v34 }
0x150b   : > { %4727 = vmatprep.subr.bf16.mxu0 %v5529_v1 }
0x150e   : > { %4728 = vmatpush3.bf16.msra.mxu0 %v6845_v6 }
0x150f   : > { %4729 = vmatprep.subr.bf16.mxu0 %v5529_v1 }
0x1512   : > { %4730 = vmatpush3.bf16.msra.mxu0 %v6849_v30 }
0x1513   : > { %4731 = vmatprep.subr.bf16.mxu0 %v5529_v1 }
0x1516   : > { %4732 = vmatpush3.bf16.msra.mxu0 %v6853_v25 }
0x1517   : > { %4733 = vmatprep.subr.bf16.mxu0 %v5529_v1 }
0x151a   : > { %4734 = vmatpush3.bf16.msra.mxu0 %v6857_v35 }
0x151b   : > { %4735 = vmatprep.subr.bf16.mxu0 %v5529_v1 }
0x151e   : > { %4736 = vmatpush3.bf16.msra.mxu0 %v6861_v36 }
0x151f   : > { %4761 = vmatprep.subr.bf16.mxu0 %v5529_v1 }
0x1521   : > { %4738 = vmatmul.mubr.bf16.vlgmr.msra.gmra.mrb[72].mxu0 %v6828_v42  ;;  %v6971_v42 = vld [vmem:[%s7351_s23] ss:$0 sm:$0xff] }
0x1522   : > { %4762 = vmatpush3.bf16.msra.mxu0 %v6724_v5  ;;  %4777 = vmatprep.mubr.msk.bf16.mxu0 %vm5530_vm0, %v5529_v1 }
0x1523   : > { %4763 = vmatprep.subr.bf16.mxu0 %v5529_v1 }
0x1526   : > { %4764 = vmatpush3.bf16.msra.mxu0 %v6730_v7 }
0x1527   : > { %4765 = vmatprep.subr.bf16.mxu0 %v5529_v1 }
0x152a   : > { %4766 = vmatpush3.bf16.msra.mxu0 %v6734_v14 }
0x152b   : > { %4767 = vmatprep.subr.bf16.mxu0 %v5529_v1 }
0x152e   : > { %4768 = vmatpush3.bf16.msra.mxu0 %v6738_v16 }
0x152f   : > { %4769 = vmatprep.subr.bf16.mxu0 %v5529_v1 }
0x1532   : > { %4770 = vmatpush3.bf16.msra.mxu0 %v6742_v26 }
0x1533   : > { %4771 = vmatprep.subr.bf16.mxu0 %v5529_v1 }
0x1536   : > { %4772 = vmatpush3.bf16.msra.mxu0 %v6746_v27 }
0x1537   : > { %4773 = vmatprep.subr.bf16.mxu0 %v5529_v1 }
0x153a   : > { %4774 = vmatpush3.bf16.msra.mxu0 %v6750_v46 }
0x153b   : > { %4775 = vmatprep.subr.bf16.mxu0 %v5529_v1 }
0x153e   : > { %4776 = vmatpush3.bf16.msra.mxu0 %v6921_v48 }
0x153f   : > { %4801 = vmatprep.subr.bf16.mxu0 %v5529_v1 }
0x15d4   : > { %v2796_v57 = vpop.f32.mrb[68].mxu0 }
0x15d5   : > { %v2797_v43 = vadd.f32 %v6971_v42, %v2796_v57  ;;  %v4699_v44 = vpop.f32.mrb[69].mxu0 }
0x15d6   : > { %v2799_v34 = vpop.f32.mrb[70].mxu0 }
0x15d7   : > { %v2802_v6 = vmax.f32 %v2797_v43, 0.0  ;;  %v4700_v30 = vpop.f32.mrb[71].mxu0 }
0x15d9   : > { %v2803_v25 = vpack.c.bf16 %v2802_v6, %v2802_v6 }
0x15db   : > { %4718 = vmatmul.mubr.bf16.vlgmr.msra.gmra.mrb[68].mxu1 %v2803_v25 }
0x15dc   : > { %4742 = vmatpush3.bf16.msra.mxu1 %v6868_v18  ;;  %4757 = vmatprep.mubr.msk.bf16.mxu1 %vm5530_vm0, %v5529_v1 }
0x15dd   : > { %4743 = vmatprep.subr.bf16.mxu1 %v5529_v1 }
0x15e0   : > { %4744 = vmatpush3.bf16.msra.mxu1 %v6874_v11 }
0x15e1   : > { %4745 = vmatprep.subr.bf16.mxu1 %v5529_v1 }
0x15e4   : > { %4746 = vmatpush3.bf16.msra.mxu1 %v6878_v13 }
0x15e5   : > { %4747 = vmatprep.subr.bf16.mxu1 %v5529_v1 }
0x15e8   : > { %4748 = vmatpush3.bf16.msra.mxu1 %v6882_v19 }
0x15e9   : > { %4749 = vmatprep.subr.bf16.mxu1 %v5529_v1 }
0x15ec   : > { %4750 = vmatpush3.bf16.msra.mxu1 %v6886_v21 }
0x15ed   : > { %4751 = vmatprep.subr.bf16.mxu1 %v5529_v1 }
0x15f0   : > { %4752 = vmatpush3.bf16.msra.mxu1 %v6890_v22 }
0x15f1   : > { %4753 = vmatprep.subr.bf16.mxu1 %v5529_v1 }
0x15f4   : > { %v2879_v35 = vpop.f32.mrb[72].mxu0  ;;  %4754 = vmatpush3.bf16.msra.mxu1 %v6894_v23 }
0x15f5   : > { %v2880_v36 = vadd.f32 %v6928_v58, %v2879_v35  ;;  %v4739_v37 = vpop.f32.mrb[73].mxu0  ;;  %4755 = vmatprep.subr.bf16.mxu1 %v5529_v1 }
0x15f6   : > { %v2882_v38 = vpop.f32.mrb[74].mxu0 }
0x15f7   : > { %v2885_v39 = vmax.f32 %v2880_v36, 0.0  ;;  %v4740_v40 = vpop.f32.mrb[75].mxu0 }
0x15f8   : > { %4756 = vmatpush3.bf16.msra.mxu1 %v6898_v24 }
0x15f9   : > { %v2886_v41 = vpack.c.bf16 %v2885_v39, %v2885_v39  ;;  %4781 = vmatprep.subr.bf16.mxu1 %v5529_v1 }
0x15fb   : > { %4758 = vmatmul.mubr.bf16.vlgmr.msra.gmra.mrb[72].mxu1 %v2886_v41 }
0x15fc   : > { %4782 = vmatpush3.bf16.msra.mxu1 %v6868_v18  ;;  %4797 = vmatprep.mubr.msk.bf16.mxu1 %vm5530_vm0, %v5529_v1 }
0x15fd   : > { %4783 = vmatprep.subr.bf16.mxu1 %v5529_v1 }
0x1600   : > { %4784 = vmatpush3.bf16.msra.mxu1 %v6874_v11  ;;  %v3104_v11 = vstv %s3573_s24  ;;  %s3576_s24 = sld [smem:[#allocation18 + $0x5]] }
0x1601   : > { %4785 = vmatprep.subr.bf16.mxu1 %v5529_v1 }
0x1604   : > { %4786 = vmatpush3.bf16.msra.mxu1 %v6878_v13  ;;  %v3168_v13 = vstv %s3588_s12  ;;  %s3591_s12 = sld [smem:[#allocation18 + $0x85]] }
0x1605   : > { %4787 = vmatprep.subr.bf16.mxu1 %v5529_v1 }
0x1608   : > { %4788 = vmatpush3.bf16.msra.mxu1 %v6882_v19  ;;  %v3233_v19 = vstv %s3605_s26  ;;  %s3608_s26 = sld [smem:[#allocation18 + $0x105]] }
0x1609   : > { %4789 = vmatprep.subr.bf16.mxu1 %v5529_v1 }
0x160c   : > { %4790 = vmatpush3.bf16.msra.mxu1 %v6886_v21 }
0x160d   : > { %4791 = vmatprep.subr.bf16.mxu1 %v5529_v1 }
0x1610   : > { %4792 = vmatpush3.bf16.msra.mxu1 %v6890_v22  ;;  %v3108_v22 = vstv %s3574_s10  ;;  %s3577_s10 = sld [smem:[#allocation18 + $0x6]] }
0x1611   : > { %4793 = vmatprep.subr.bf16.mxu1 %v5529_v1 }
0x1614   : > { %4794 = vmatpush3.bf16.msra.mxu1 %v6894_v23  ;;  %v3172_v23 = vstv %s3589_s11  ;;  %s3592_s11 = sld [smem:[#allocation18 + $0x86]] }
0x1615   : > { %4795 = vmatprep.subr.bf16.mxu1 %v5529_v1 }
0x1618   : > { %4796 = vmatpush3.bf16.msra.mxu1 %v6898_v24 }
0x1619   : > { %4821 = vmatprep.subr.bf16.mxu1 %v5529_v1 }
0x161b   : > { %4798 = vmatmul.mubr.bf16.vlgmr.msra.gmra.mrb[76].mxu1 %v6812_v0  ;;  %v1788_v0 = vadd.f32 %v6712_v29, %v6495_v9  ;;  %v3237_v9 = vstv %s3606_s13  ;;  %s3609_s13 = sld [smem:[#allocation18 + $0x106]] }
0x161c   : > { %4822 = vmatpush3.bf16.msra.mxu1 %v6724_v5  ;;  %4837 = vmatprep.mubr.msk.bf16.mxu1 %vm5530_vm0, %v5529_v1 }
0x161d   : > { %4823 = vmatprep.subr.bf16.mxu1 %v5529_v1  ;;  %v1793_v18 = vmax.f32 %v1788_v0, 0.0 }
0x161f   : > { %v3109_v32 = vmul.f32 %v3108_v22, %v1793_v18  ;;  %v3173_v2 = vmul.f32 %v3172_v23, %v1793_v18  ;;  %v3238_v58 = vmul.f32 %v3237_v9, %v1793_v18  ;;  %v3245_v18 = vstv %s3608_s26  ;;  %s3615_s26 = sld [smem:[#allocation18 + $0x10c]] }
0x1620   : > { %4824 = vmatpush3.bf16.msra.mxu1 %v6730_v7 }
0x1621   : > { %4825 = vmatprep.subr.bf16.mxu1 %v5529_v1 }
0x1624   : > { %4826 = vmatpush3.bf16.msra.mxu1 %v6734_v14 }
0x1625   : > { %4827 = vmatprep.subr.bf16.mxu1 %v5529_v1 }
0x1628   : > { %4828 = vmatpush3.bf16.msra.mxu1 %v6738_v16 }
0x1629   : > { %4829 = vmatprep.subr.bf16.mxu1 %v5529_v1 }
0x162c   : > { %4830 = vmatpush3.bf16.msra.mxu1 %v6742_v26 }
0x162d   : > { %4831 = vmatprep.subr.bf16.mxu1 %v5529_v1 }
0x1630   : > { %4832 = vmatpush3.bf16.msra.mxu1 %v6746_v27 }
0x1631   : > { %4833 = vmatprep.subr.bf16.mxu1 %v5529_v1 }
0x1634   : > { %4834 = vmatpush3.bf16.msra.mxu1 %v6750_v46 }
0x1635   : > { %4835 = vmatprep.subr.bf16.mxu1 %v5529_v1 }
0x1638   : > { %4836 = vmatpush3.bf16.msra.mxu1 %v6921_v48 }
0x163b   : > { %4838 = vmatmul.mubr.bf16.vlgmr.msra.gmra.mrb[80].mxu1 %v6796_v49 }
0x16ae   : > { %v2838_v49 = vpop.f32.mrb[68].mxu1 }
0x16af   : > { %v2839_v54 = vadd.f32 %v6712_v29, %v2838_v49  ;;  %v4719_v17 = vpop.f32.mrb[69].mxu1 }
0x16b0   : > { %v2841_v21 = vpop.f32.mrb[70].mxu1  ;;  %v3180_v17 = vstv %s3591_s12  ;;  %s3598_s12 = sld [smem:[#allocation18 + $0x8c]] }
0x16b1   : > { %v2844_v24 = vmax.f32 %v2839_v54, 0.0  ;;  %v4720_v55 = vpop.f32.mrb[71].mxu1  ;;  %v3116_v54 = vstv %s3576_s24  ;;  %s3583_s24 = sld [smem:[#allocation18 + $0xc]] }
0x16b2   : > { %v3188_v55 = vstv %s7073_s22  ;;  %s7099_s22 = sld [smem:[#allocation18 + $0x8]] }
0x16b3   : > { %v3105_v52 = vmul.f32 %v3104_v11, %v2844_v24  ;;  %v3169_v28 = vmul.f32 %v3168_v13, %v2844_v24  ;;  %v3234_v12 = vmul.f32 %v3233_v19, %v2844_v24  ;;  %v3120_v13 = vstv %s3577_s10  ;;  %s7091_s10 = sld [smem:[#allocation18 + $0x9]] }
0x16b4   : > { %v3184_v19 = vstv %s3592_s11  ;;  %v3124_v24 = vstv %s7071_s15  ;;  %s7093_s11 = sld [smem:[#allocation18 + $0x89]]  ;;  %s7097_s15 = sld [smem:[#allocation18 + $0xd]] }
0x16b5   : > { %v3106_v59 = vadd.f32 %v3105_v52, %v6717_v50  ;;  %v3170_v60 = vadd.f32 %v3169_v28, %v6719_v47  ;;  %v3235_v61 = vadd.f32 %v3234_v12, %v6721_v53  ;;  %v3253_v52 = vstv %s3610_s29  ;;  %s7101_s29 = sld [smem:[#allocation18 + $0x88]] }
0x16b7   : > { %v3110_v57 = vadd.f32 %v3109_v32, %v3106_v59  ;;  %v3174_v43 = vadd.f32 %v3173_v2, %v3170_v60  ;;  %v3239_v44 = vadd.f32 %v3238_v58, %v3235_v61 }
0x16b9   : > { %v7044_v34 = vadd.f32 %v3113_v62, %v3110_v57  ;;  %v7046_v6 = vadd.f32 %v3177_v63, %v3174_v43  ;;  %v7048_v30 = vadd.f32 %v3242_v31, %v3239_v44  ;;  %v5135_v43 = vld [vmem:[%s5971_s4] sm:$0xff] }
0x16ba   : > { %v1918_v44 = vmax.f32 %v5135_v43, 0.0 }
0x16ce   : > { %v2921_v25 = vpop.f32.mrb[72].mxu1 }
0x16cf   : > { %v2922_v35 = vadd.f32 %v6971_v42, %v2921_v25  ;;  %v4759_v50 = vpop.f32.mrb[73].mxu1  ;;  %v3273_v25 = vstv %s3615_s26  ;;  %s7137_s26 = sld [smem:[#allocation18 + $0xe]] }
0x16d0   : > { %v2924_v36 = vpop.f32.mrb[74].mxu1 }
0x16d1   : > { %v2927_v47 = vmax.f32 %v2922_v35, 0.0  ;;  %v4760_v37 = vpop.f32.mrb[75].mxu1  ;;  %v7126_v36 = vmul.f32 %v3273_v25, %v1918_v44 }
0x16d2   : > { %v2500_v37 = vadd.f32 %v6712_v29, %v6770_v8 }
0x16d3   : > { %v2928_v53 = vpack.c.bf16 %v2927_v47, %v2927_v47  ;;  %v3132_v47 = vstv %s7091_s10  ;;  %s7139_s10 = sld [smem:[#allocation18 + $0x8e]] }
0x16d5   : > { %4778 = vmatmul.mubr.bf16.vlgmr.msra.gmra.mrb[76].mxu0 %v2928_v53 }
0x16d6   : > { %4802 = vmatpush3.bf16.msra.mxu0 %v6724_v5  ;;  %4817 = vmatprep.mubr.msk.bf16.mxu0 %vm5530_vm0, %v5529_v1 }
0x16d7   : > { %4803 = vmatprep.subr.bf16.mxu0 %v5529_v1 }
0x16da   : > { %4804 = vmatpush3.bf16.msra.mxu0 %v6730_v7 }
0x16db   : > { %4805 = vmatprep.subr.bf16.mxu0 %v5529_v1 }
0x16de   : > { %4806 = vmatpush3.bf16.msra.mxu0 %v6734_v14 }
0x16df   : > { %4807 = vmatprep.subr.bf16.mxu0 %v5529_v1 }
0x16e2   : > { %4808 = vmatpush3.bf16.msra.mxu0 %v6738_v16 }
0x16e3   : > { %4809 = vmatprep.subr.bf16.mxu0 %v5529_v1 }
0x16e6   : > { %4810 = vmatpush3.bf16.msra.mxu0 %v6742_v26 }
0x16e7   : > { %4811 = vmatprep.subr.bf16.mxu0 %v5529_v1 }
0x16ea   : > { %4812 = vmatpush3.bf16.msra.mxu0 %v6746_v27 }
0x16eb   : > { %4813 = vmatprep.subr.bf16.mxu0 %v5529_v1 }
0x16ee   : > { %v3004_v5 = vpop.f32.mrb[76].mxu1  ;;  %4814 = vmatpush3.bf16.msra.mxu0 %v6750_v46  ;;  %v2459_v46 = vadd.f32 %v6712_v29, %v6791_v45 }
0x16ef   : > { %v3005_v7 = vadd.f32 %v6971_v42, %v3004_v5  ;;  %v4799_v14 = vpop.f32.mrb[77].mxu1  ;;  %4815 = vmatprep.subr.bf16.mxu0 %v5529_v1  ;;  %v1871_v1 = vadd.f32 %v6712_v29, %v6497_v20  ;;  %v3249_v20 = vstv %s3609_s13  ;;  %s7095_s13 = sld [smem:[#allocation18 + $0x109]]  ;;  %v3196_v5 = vstv %s7093_s11 }
0x16f0   : > { %v3007_v38 = vpop.f32.mrb[78].mxu1  ;;  %v2464_v23 = vmax.f32 %v2459_v46, 0.0  ;;  %v5136_v14 = vld [vmem:[%s5971_s4 + $0x8] sm:$0xff]  ;;  %v3212_v46 = vstv %s7106_s6  ;;  %s7150_s4 = sld [smem:[#allocation18 + $0x10e]]  ;;  %s7365_s6 = smul.u32 24, %s5965_s25 }
0x16f1   : > { %v3010_v16 = vmax.f32 %v3005_v7, 0.0  ;;  %v4800_v39 = vpop.f32.mrb[79].mxu1  ;;  %v1876_v49 = vmax.f32 %v1871_v1, 0.0  ;;  %v2506_v38 = vmax.f32 %v5136_v14, 0.0  ;;  %v3148_v1 = vstv %s7097_s15  ;;  %s7366_s15 = sld [smem:[#allocation60_spill]] }
0x16f2   : > { %4816 = vmatpush3.bf16.msra.mxu0 %v6921_v48  ;;  %v3125_v3 = vmul.f32 %v3124_v24, %v2464_v23  ;;  %v3189_v58 = vmul.f32 %v3188_v55, %v2464_v23  ;;  %v3254_v59 = vmul.f32 %v3253_v52, %v2464_v23 }
0x16f3   : > { %v3011_v26 = vpack.c.bf16 %v3010_v16, %v3010_v16  ;;  %v3121_v56 = vmul.f32 %v3120_v13, %v1876_v49  ;;  %v3185_v51 = vmul.f32 %v3184_v19, %v1876_v49  ;;  %v3250_v28 = vmul.f32 %v3249_v20, %v1876_v49 }
0x16f4   : > { %v3140_v20 = vstv %s7118_s17  ;;  %s7165_s17 = sld [smem:[#allocation19 + $0x1]] }
0x16f5   : > { %4818 = vmatmul.mubr.bf16.vlgmr.msra.gmra.mrb[80].mxu0 %v3011_v26  ;;  %v3261_v7 = vstv %s7095_s13  ;;  %v3128_v26 = vstv %s7099_s22 }
0x170e   : > { %v7069_v40 = vpop.f32.mrb[80].mxu1 }
0x170f   : > { %v4839_v27 = vpop.f32.mrb[81].mxu1  ;;  %v3088_v8 = vadd.f32 %v6712_v29, %v7069_v40 }
0x1710   : > { %v3090_v41 = vpop.f32.mrb[82].mxu1  ;;  %v3192_v27 = vstv %s7101_s29 }
0x1711   : > { %v4840_v0 = vpop.f32.mrb[83].mxu1  ;;  %v3257_v41 = vstv %s7103_s3  ;;  %s7167_s3 = sld [smem:[#allocation19 + $0x2]] }
0x17a8   : > { %v2963_v48 = vpop.f32.mrb[76].mxu0 }
0x17a9   : > { %v2964_v42 = vadd.f32 %v6712_v29, %v2963_v48  ;;  %v4779_v4 = vpop.f32.mrb[77].mxu0  ;;  %v3277_v48 = vstv %s7108_s7 }
0x17aa   : > { %v2966_v11 = vpop.f32.mrb[78].mxu0  ;;  %v3278_v43 = vmul.f32 %v3277_v48, %v2506_v38 }
0x17ab   : > { %v2969_v21 = vmax.f32 %v2964_v42, 0.0  ;;  %v4780_v22 = vpop.f32.mrb[79].mxu0 }
0x17ac   : > { %v3093_v22 = vmax.f32 %v3088_v8, 0.0 }
0x17ad   : > { %v3117_v9 = vmul.f32 %v3116_v54, %v2969_v21  ;;  %v3181_v45 = vmul.f32 %v3180_v17, %v2969_v21  ;;  %v3246_v33 = vmul.f32 %v3245_v18, %v2969_v21  ;;  %v2505_v17 = vmax.f32 %v2500_v37, 0.0 }
0x17ae   : > { %v3136_v18 = vstv %s7112_s9  ;;  %v3265_v21 = vstv %s7116_s16  ;;  %s3620_s9 = sshll.u32 %s5656_s2, 7  ;;  %s762_s16 = scalar_lea.vmem [#allocation21], %s7365_s6 }
0x17af   : > { %v3118_v12 = vadd.f32 %v3117_v9, %v7044_v34  ;;  %v3182_v32 = vadd.f32 %v3181_v45, %v7046_v6  ;;  %v3247_v2 = vadd.f32 %v3246_v33, %v7048_v30  ;;  %v3144_v34 = vstv %s3583_s24  ;;  %s7124_s24 = sld [smem:[#allocation18 + $0x8b]]  ;;  %s3302_s7 = sshll.u32 %s762_s16, 4  ;;  %s7184_s7 = int_to_ptr.vmem [resolvable:$true] %s3302_s7 }
0x17b0   : > { %v3208_v6 = vstv %s3598_s12  ;;  %v1912_v30 = vadd.f32 %v6712_v29, %v6471_v15  ;;  %v7120_v35 = vmul.f32 %v3144_v34, %v1918_v44  ;;  %s7131_s12 = sld [smem:[#allocation18 + $0x10b]]  ;;  %v3137_v45 = vmul.f32 %v3136_v18, %v2505_v17  ;;  %s7182_s22 = scalar_lea.hbm %s7366_s15, %s3620_s9 }
0x17b1   : > { %v3122_v60 = vadd.f32 %v3121_v56, %v3118_v12  ;;  %v3186_v61 = vadd.f32 %v3185_v51, %v3182_v32  ;;  %v3251_v62 = vadd.f32 %v3250_v28, %v3247_v2  ;;  %v7122_v50 = vmul.f32 %v3208_v6, %v1918_v44  ;;  %s3290_s2 = scalar_lea.sflag [#allocation4], %s5965_s25  ;;  %s5421_s29 = scalar_lea.vmem %s7184_s7, 384 }
0x17b2   : > { %v1917_v15 = vmax.f32 %v1912_v30, 0.0  ;;  %v3094_v56 = vmax.f32 %v6773_v10, 0.0  ;;  %v3266_v52 = vmul.f32 %v3265_v21, %v2505_v17  ;;  %v3152_v2 = vstv %s7137_s26  ;;  %p5422_p7 = scmp.ne.s32.totalorder %s7184_s7, %s5421_s29 }
0x17b3   : > { %v7085_v63 = vadd.f32 %v3125_v3, %v3122_v60  ;;  %v7087_v31 = vadd.f32 %v3189_v58, %v3186_v61  ;;  %v7089_v57 = vadd.f32 %v3254_v59, %v3251_v62  ;;  %v3216_v3 = vstv %s7139_s10 }
0x17b4   : > { %v3133_v49 = vmul.f32 %v3132_v47, %v1917_v15  ;;  %v3197_v54 = vmul.f32 %v3196_v5, %v1917_v15  ;;  %v3262_v19 = vmul.f32 %v3261_v7, %v1917_v15  ;;  %v3141_v58 = vmul.f32 %v3140_v20, %v3093_v22  ;;  %p5423_p11 = pnand %p5422_p7, %p7367_p8 }
0x17b5   : > { %v3204_v23 = vstv %s7124_s24  ;;  %v3153_v30 = vmul.f32 %v3152_v2, %v3094_v56  ;;  %v3217_v25 = vmul.f32 %v3216_v3, %v3094_v56  ;;  %s5531_s24 = smov [#allocation21]  }
0x17b6   : > { %v3269_v51 = vstv %s7131_s12  ;;  %v3205_v59 = vmul.f32 %v3204_v23, %v3093_v22  ;;  %p5424_p12 = pneg %p5423_p11  ;;  %s5425_s12 = sshll.u32 %s5531_s24, 4  ;;  %s5426_s12 = int_to_ptr.vmem [resolvable:$false] %s5425_s12 }
0x17b7   : > { %v3270_v60 = vmul.f32 %v3269_v51, %v3093_v22  ;;  %s5427_s26 = scalar_lea.vmem %s5426_s12, 768  ;;  %p5428_p1 = scmp.lt.s32.totalorder %s7184_s7, %s5426_s12 }
0x17b8   : > { %p5429_p0 = scmp.lt.s32.totalorder %s5427_s26, %s5421_s29 }
0x17ba   : > { %p5430_p6 = por %p5429_p0, %p5428_p1 }
0x17bc   : > { %p5431_p4 = pnand %p5430_p6, %p5424_p12 }
0x17c8   : > { %v3046_v53 = vpop.f32.mrb[80].mxu0 }
0x17c9   : > { %v3047_v16 = vadd.f32 %v6712_v29, %v3046_v53  ;;  %v4819_v39 = vpop.f32.mrb[81].mxu0  ;;  %v3200_v29 = vstv %s7114_s14  ;;  %s7161_s14 = sld [smem:[#allocation19]] }
0x17ca   : > { %v3049_v0 = vpop.f32.mrb[82].mxu0  ;;  %v3201_v33 = vmul.f32 %v3200_v29, %v2505_v17  ;;  %v3285_v39 = vstv %s7167_s3 }
0x17cb   : > { %v3052_v42 = vmax.f32 %v3047_v16, 0.0  ;;  %v4820_v4 = vpop.f32.mrb[83].mxu0  ;;  %v3220_v16 = vstv %s7165_s17 }
0x17cd   : > { %v3129_v40 = vmul.f32 %v3128_v26, %v3052_v42  ;;  %v3193_v11 = vmul.f32 %v3192_v27, %v3052_v42  ;;  %v3258_v13 = vmul.f32 %v3257_v41, %v3052_v42 }
0x17cf   : > { %v3130_v24 = vadd.f32 %v3129_v40, %v7085_v63  ;;  %v3194_v55 = vadd.f32 %v3193_v11, %v7087_v31  ;;  %v3259_v9 = vadd.f32 %v3258_v13, %v7089_v57  ;;  %v3149_v63 = vmul.f32 %v3148_v1, %v2506_v38 }
0x17d0   : > { %v3213_v31 = vmul.f32 %v3212_v46, %v2506_v38  ;;  %v3281_v57 = vstv %s7150_s4  ;;  %v3156_v38 = vstv %s7161_s14 }
0x17d1   : > { %v3134_v28 = vadd.f32 %v3133_v49, %v3130_v24  ;;  %v3198_v12 = vadd.f32 %v3197_v54, %v3194_v55  ;;  %v3263_v32 = vadd.f32 %v3262_v19, %v3259_v9  ;;  %v3282_v15 = vmul.f32 %v3281_v57, %v3094_v56 }
0x17d3   : > { %v3138_v61 = vadd.f32 %v3137_v45, %v3134_v28  ;;  %v3202_v10 = vadd.f32 %v3201_v33, %v3198_v12  ;;  %v3267_v62 = vadd.f32 %v3266_v52, %v3263_v32 }
0x17d5   : > { %v3142_v44 = vadd.f32 %v3141_v58, %v3138_v61  ;;  %v3206_v34 = vadd.f32 %v3205_v59, %v3202_v10  ;;  %v3271_v6 = vadd.f32 %v3270_v60, %v3267_v62 }
0x17d7   : > { %v3146_v47 = vadd.f32 %v7120_v35, %v3142_v44  ;;  %v3210_v37 = vadd.f32 %v7122_v50, %v3206_v34  ;;  %v3275_v53 = vadd.f32 %v7126_v36, %v3271_v6 }
0x17d9   : > { %v3150_v5 = vadd.f32 %v3149_v63, %v3146_v47  ;;  %v3214_v7 = vadd.f32 %v3213_v31, %v3210_v37  ;;  %v3279_v14 = vadd.f32 %v3278_v43, %v3275_v53 }
0x17db   : > { %v3154_v8 = vadd.f32 %v3153_v30, %v3150_v5  ;;  %v3218_v26 = vadd.f32 %v3217_v25, %v3214_v7  ;;  %v3283_v27 = vadd.f32 %v3282_v15, %v3279_v14 }
0x17dd   : > { %v3157_v35 = vadd.f32 %v3156_v38, %v3154_v8  ;;  %v3221_v50 = vadd.f32 %v3220_v16, %v3218_v26  ;;  %v3286_v36 = vadd.f32 %v3285_v39, %v3283_v27 }
0x17df   : > { %3158 = vst [vmem:[%s762_s16] sm:$0xff] %v3157_v35  ;;  %3602 = vst [vmem:[%s762_s16 + $0x8] sm:$0xff] %v3221_v50 }
0x17e0   : > { %3619 = vst [vmem:[%s762_s16 + $0x10] sm:$0xff] %v3286_v36 }
0x17e1   : > { %5434 = shalt.err (!%p5431_p4)
}
0x17e2   : > { %s5435_s10 = scalar_lea.hbm %s7182_s22, 384  ;;  %s5439_s17 = scalar_lea.hbm %s7366_s15, 768 }
0x17e3   : > { %p5436_p9 = scmp.ne.s32.totalorder %s7182_s22, %s5435_s10  ;;  %p5440_p13 = scmp.lt.u32.totalorder %s7182_s22, %s7366_s15 }
0x17e4   : > { %p5441_p2 = scmp.lt.u32.totalorder %s5439_s17, %s5435_s10  ;;  %p5443_p7 = scmp.lt.u32.totalorder %s5435_s10, %s7182_s22 }
0x17e5   : > { %p5437_p10 = pnand %p5436_p9, %p7367_p8 }
0x17e6   : > { %p5442_p5 = por %p5441_p2, %p5440_p13 }
0x17e7   : > { %p5438_p3 = pneg %p5437_p10 }
0x17e8   : > { %p5444_p11 = por %p5443_p7, %p5442_p5 }
0x17ea   : > { %p5445_p12 = pnand %p5444_p11, %p5438_p3 }
0x17ec   : > { %5448 = shalt.err (!%p5445_p12)
}
0x17ed   : > { %s5532_s6 = smov 128   ;;  %s5533_s16 = smov 256  }
0x17ee   : > { %s5534_s11 = smov 8  }
0x17ef   : > { %4885 = dma.vmem_to_hbm [thread:$0]  (%p7367_p8), %s7184_s7, 384, %s7182_s22, %s3290_s2, %s5532_s6, %s5533_s16, %s5534_s11  }
0x17f0 PF: > { %s3317_s13 = sand.u32 1, %s5499_s0   ;;  %p7368_p1 = scmp.ne.s32.totalorder %s7317_s5, 0 }
0x17f1   : > { %p7369_p0 = scmp.ge.s32.totalorder %s5511_s21, 2  ;;  %s3318_s29 = scalar_lea.sflag [#allocation4], %s3317_s13 }
0x17f3   : > { %p4923_p6 = pnand %p7369_p0, %p7368_p1 }
0x17f5   : > { %5494 = dma.done.wait (!%p4923_p6), %s3318_s29, 384  }
0x17f6   : > { %5496 = vsyncadd (!%p4923_p6), %s3318_s29, 4294966912  ;;  %p38_p4 = scmp.ge.s32.totalorder %s5892_s1, 4   ;;  %s7370_s0 = smov %s5503_s30 }
0x17f7   : > { %s7371_s30 = smov %s5507_s20  ;;  %s7372_s20 = smov %s5903_s8 }
0x17f8   : > { %s7373_s21 = smov %s5892_s1  ;;  %40 = sbr.rel (!%p38_p4) target bundleno = 31 (0x1f), region = 186 }
0x17ff   :  { %3323 = vsyncpa [#allocation3], 1 }
0x1800   :  { %3325 = vsyncpa [#allocation3 + $0x1], 1 }
0x1801   :  { %3326 = vsyncpa [#allocation7], 1 }
0x1802   :  { %3327 = vsyncpa [#allocation10], 1 }
0x1803   :  { %3328 = vsyncpa [#allocation13], 1 }
0x1804   :  { %3329 = vsyncpa [#allocation16], 1 }
0x1805   :  { %3330 = vsyncpa [#allocation4], 1 }
0x1806   :  { %3332 = vsyncpa [#allocation4 + $0x1], 1 }
0x1807   :  { %3333 = vsyncpa [#allocation5], 1 }
0x1808   :  { %3335 = vsyncpa [#allocation5 + $0x1], 1 }
0x1809   :  { %3336 = vsyncpa [#allocation20], 1 }

</bundles_post_ra>
